<compile_context>
chip_gen: v6e
topology: v6e:2x2x1
jax: 0.10.0
libtpu: 0.0.40
codegen_flags: <defaults>
</compile_context>

<pallas_src>
import functools

import jax
import jax.numpy as jnp
from jax.experimental import pallas as pl
from jax.experimental.pallas import tpu as pltpu


LANES = 128           # lane width; losses are packed 128 per vreg row
TILE_B = 1024         # examples per grid step -> (8, 128) output block


def _glove_kernel(i_sref, j_sref, x_ref, bi_ref, bj_ref, w_hbm, c_hbm,
                  out_ref, w_rows, c_rows, sems, *, alpha, x_max, tile_b):
    """One grid step == one tile of `tile_b` training triples.

    i_sref, j_sref : (B_pad,) i32 SMEM  scalar-prefetched indices
    x_ref          : (8, 128) f32 VMEM  co-occurrence counts for this tile
    bi_ref, bj_ref : (8, 128) f32 VMEM  per-example bias lookups for this tile
    w_hbm, c_hbm   : (V, D)   HBM       embedding tables (stored dtype)
    out_ref        : (8, 128) f32 VMEM  per-example losses (lane-dense)
    w_rows, c_rows : (tile_b, D) VMEM scratch  gathered rows
    sems           : (2,) DMA semaphores (one per table)
    """
    t = pl.program_id(0)
    base = t * tile_b
    d = w_rows.shape[-1]
    rows = out_ref.shape[0]                       # tile_b // 128

    def copy(table, dst, sem_idx, src_row, dst_row):
        return pltpu.make_async_copy(table.at[src_row], dst.at[dst_row],
                                     sems.at[sem_idx])

    # Issue all 2*tile_b row-gather DMAs back-to-back; their HBM latency
    # overlaps while the rest of the descriptors are being issued.
    @pl.loop(0, tile_b)
    def _issue(e):
        copy(w_hbm, w_rows, 0, i_sref[base + e], e).start()
        copy(c_hbm, c_rows, 1, j_sref[base + e], e).start()

    # Drain: one wait per issued copy (all copies are equal-sized rows that
    # share a per-table semaphore, so signals and waits match one-to-one).
    @pl.loop(0, tile_b)
    def _drain(e):
        copy(w_hbm, w_rows, 0, 0, e).wait()
        copy(c_hbm, c_rows, 1, 0, e).wait()

    # Vectorized compute over the whole tile. Upcast only the gathered rows
    # (tables stay in their stored dtype in HBM).
    w = w_rows[...].astype(jnp.float32).reshape(rows, LANES, d)
    c = c_rows[...].astype(jnp.float32).reshape(rows, LANES, d)
    w_c = jnp.sum(w * c, axis=-1)                 # (rows, 128) per-example dots

    xv = x_ref[...]                               # (rows, 128)
    f_x = jnp.where(xv < x_max, (xv / x_max) ** alpha, jnp.ones_like(xv))
    loss = f_x * (w_c + bi_ref[...] + bj_ref[...] - jnp.log(xv))

    out_ref[...] = loss                           # full, unmasked (8,128) store


def glove_forward(x, i, j, W, C, w_bias, c_bias, *, alpha=0.75, x_max=100.0,
                  tile_b=TILE_B):
    """Batched GloVe forward. Returns loss of shape [B]."""
    B = x.shape[0]
    V, D = W.shape
    assert tile_b % LANES == 0
    rows_per_tile = tile_b // LANES

    num_tiles = -(-B // tile_b)                   # ceil
    b_pad = num_tiles * tile_b

    # Pad the batch to a whole number of tiles (index 0 / x = 1.0 are safe).
    i32 = jnp.zeros((b_pad,), jnp.int32).at[:B].set(i.astype(jnp.int32))
    j32 = jnp.zeros((b_pad,), jnp.int32).at[:B].set(j.astype(jnp.int32))
    x_p = jnp.ones((b_pad,), jnp.float32).at[:B].set(x.astype(jnp.float32))
    # Per-example bias lookups: a cheap O(B) XLA gather; the add stays in-kernel.
    bi = jnp.zeros((b_pad,), jnp.float32).at[:B].set(w_bias[i].astype(jnp.float32))
    bj = jnp.zeros((b_pad,), jnp.float32).at[:B].set(c_bias[j].astype(jnp.float32))

    x2d = x_p.reshape(b_pad // LANES, LANES)
    bi2d = bi.reshape(b_pad // LANES, LANES)
    bj2d = bj.reshape(b_pad // LANES, LANES)

    kernel = functools.partial(_glove_kernel, alpha=float(alpha),
                               x_max=float(x_max), tile_b=tile_b)

    tile_spec = pl.BlockSpec((rows_per_tile, LANES), lambda t, i_r, j_r: (t, 0))

    grid_spec = pltpu.PrefetchScalarGridSpec(
        num_scalar_prefetch=2,                    # i, j -> SMEM, drive the gather
        grid=(num_tiles,),
        in_specs=[
            tile_spec,                            # x       (tiled, VMEM)
            tile_spec,                            # bias_i  (tiled, VMEM)
            tile_spec,                            # bias_j  (tiled, VMEM)
            pl.BlockSpec(memory_space=pl.ANY),    # W       (stays in HBM)
            pl.BlockSpec(memory_space=pl.ANY),    # C       (stays in HBM)
        ],
        out_specs=tile_spec,
        scratch_shapes=[
            pltpu.VMEM((tile_b, D), W.dtype),     # gathered W rows
            pltpu.VMEM((tile_b, D), C.dtype),     # gathered C rows
            pltpu.SemaphoreType.DMA((2,)),        # one DMA semaphore per table
        ],
    )

    out2d = pl.pallas_call(
        kernel,
        out_shape=jax.ShapeDtypeStruct((b_pad // LANES, LANES), jnp.float32),
        grid_spec=grid_spec,
        compiler_params=pltpu.CompilerParams(
            dimension_semantics=("parallel",)),   # self-contained steps -> v7x megacore OK
    )(i32, j32, x2d, bi2d, bj2d, W, C)            # tables passed in stored dtype

    return out2d.reshape(-1)[:B]


def glove_reference(x, i, j, W, C, w_bias, c_bias, alpha, x_max):
    """Pure-JAX reference mirroring the PyTorch forward."""
    f_x = jnp.where(x < x_max, (x / x_max) ** alpha, 1.0)
    w_vec = W[i].astype(jnp.float32)
    c_vec = C[j].astype(jnp.float32)
    w_c = jnp.sum(w_vec * c_vec, axis=-1)
    return f_x * (w_c + w_bias[i] + c_bias[j] - jnp.log(x))


if __name__ == "__main__":
    V, D = 64, 128                # vocabulary, embedding size
    B = 2048                      # 2 tiles of 1024 -> grid of 2 (even, megacore-friendly)
    ALPHA, X_MAX = 0.75, 100.0

    key = jax.random.PRNGKey(0)
    kW, kC, kwb, kcb, kx, ki, kj = jax.random.split(key, 7)

    # Deterministic parameter init (nn.Embedding default ~ N(0, 1)).
    W = jax.random.normal(kW, (V, D), jnp.float32)
    C = jax.random.normal(kC, (V, D), jnp.float32)
    w_bias = jax.random.normal(kwb, (V,), jnp.float32)
    c_bias = jax.random.normal(kcb, (V,), jnp.float32)

    # Example inputs: co-occurrence counts (some exceed x_max) and indices.
    x = jax.random.uniform(kx, (B,), jnp.float32, minval=1.0, maxval=150.0)
    i = jax.random.randint(ki, (B,), 0, V, dtype=jnp.int32)
    j = jax.random.randint(kj, (B,), 0, V, dtype=jnp.int32)

    out = glove_forward(x, i, j, W, C, w_bias, c_bias, alpha=ALPHA, x_max=X_MAX)
    out = jax.block_until_ready(out)

    ref = glove_reference(x, i, j, W, C, w_bias, c_bias, ALPHA, X_MAX)
    assert out.shape == (B,) and out.dtype == jnp.float32
    max_err = float(jnp.max(jnp.abs(out - ref)))
    assert jnp.allclose(out, ref, rtol=1e-3, atol=1e-3), ("max abs err", max_err)

    print("KERNEL_OK")
</pallas_src>

<mosaic_0001>
module attributes {stable_mosaic.version = 11 : i64} {
  func.func @_glove_kernel(%arg0: i32, %arg1: memref<2048xi32, #tpu.memory_space<smem>>, %arg2: memref<2048xi32, #tpu.memory_space<smem>>, %arg3: memref<8x128xf32, #tpu.memory_space<vmem>>, %arg4: memref<8x128xf32, #tpu.memory_space<vmem>>, %arg5: memref<8x128xf32, #tpu.memory_space<vmem>>, %arg6: memref<64x128xf32, #tpu.memory_space<any>>, %arg7: memref<64x128xf32, #tpu.memory_space<any>>, %arg8: memref<8x128xf32, #tpu.memory_space<vmem>>, %arg9: memref<1024x128xf32, #tpu.memory_space<vmem>>, %arg10: memref<1024x128xf32, #tpu.memory_space<vmem>>, %arg11: memref<2x!tpu.dma_semaphore, #tpu.memory_space<semaphore_mem>>) attributes {dimension_semantics = [#tpu.dimension_semantics<parallel>], iteration_bounds = array<i64: 2>, scalar_prefetch = 2 : i64, scratch_operands = 3 : i64, tpu.core_type = #tpu.core_type<tc>, window_params = [{transform_indices = @transform_0, window_bounds = array<i64: 8, 128>}, {transform_indices = @transform_1, window_bounds = array<i64: 8, 128>}, {transform_indices = @transform_2, window_bounds = array<i64: 8, 128>}, {}, {}, {transform_indices = @transform_5, window_bounds = array<i64: 8, 128>}]} {
    %c1024_i32 = arith.constant 1024 : i32
    %0 = arith.muli %arg0, %c1024_i32 : i32
    %c0_i32 = arith.constant 0 : i32
    %c1024_i32_0 = arith.constant 1024 : i32
    %1 = arith.addi %c0_i32, %c1024_i32_0 : i32
    %c1_i32 = arith.constant 1 : i32
    scf.for %arg12 = %c0_i32 to %1 step %c1_i32  : i32 {
      %c1_i32_21 = arith.constant 1 : i32
      %26 = arith.muli %arg12, %c1_i32_21 : i32
      %c0_i32_22 = arith.constant 0 : i32
      %27 = arith.addi %c0_i32_22, %26 : i32
      %28 = arith.addi %0, %27 : i32
      %29 = arith.index_cast %28 : i32 to index
      %30 = memref.load %arg1[%29] : memref<2048xi32, #tpu.memory_space<smem>>
      %c0_i32_23 = arith.constant 0 : i32
      %c0_i32_24 = arith.constant 0 : i32
      %31 = tpu.memref_slice %arg6[%30, %c0_i32_24] : memref<64x128xf32, #tpu.memory_space<any>> -> memref<1x128xf32, #tpu.memory_space<any>>
      %32 = tpu.memref_squeeze %31 : memref<1x128xf32, #tpu.memory_space<any>> -> memref<128xf32, #tpu.memory_space<any>>
      %c0_i32_25 = arith.constant 0 : i32
      %33 = tpu.memref_slice %arg9[%27, %c0_i32_25] : memref<1024x128xf32, #tpu.memory_space<vmem>> -> memref<1x128xf32, #tpu.memory_space<vmem>>
      %34 = tpu.memref_squeeze %33 : memref<1x128xf32, #tpu.memory_space<vmem>> -> memref<128xf32, #tpu.memory_space<vmem>>
      %35 = tpu.memref_slice %arg11[%c0_i32_23] : memref<2x!tpu.dma_semaphore, #tpu.memory_space<semaphore_mem>> -> memref<1x!tpu.dma_semaphore, #tpu.memory_space<semaphore_mem>>
      %36 = tpu.memref_squeeze %35 : memref<1x!tpu.dma_semaphore, #tpu.memory_space<semaphore_mem>> -> memref<!tpu.dma_semaphore, #tpu.memory_space<semaphore_mem>>
      tpu.enqueue_dma source(%32 : memref<128xf32, #tpu.memory_space<any>>) target(%34 : memref<128xf32, #tpu.memory_space<vmem>>) target_semaphore(%36 : memref<!tpu.dma_semaphore, #tpu.memory_space<semaphore_mem>>)
      %37 = arith.addi %0, %27 : i32
      %38 = arith.index_cast %37 : i32 to index
      %39 = memref.load %arg2[%38] : memref<2048xi32, #tpu.memory_space<smem>>
      %c1_i32_26 = arith.constant 1 : i32
      %c0_i32_27 = arith.constant 0 : i32
      %40 = tpu.memref_slice %arg7[%39, %c0_i32_27] : memref<64x128xf32, #tpu.memory_space<any>> -> memref<1x128xf32, #tpu.memory_space<any>>
      %41 = tpu.memref_squeeze %40 : memref<1x128xf32, #tpu.memory_space<any>> -> memref<128xf32, #tpu.memory_space<any>>
      %c0_i32_28 = arith.constant 0 : i32
      %42 = tpu.memref_slice %arg10[%27, %c0_i32_28] : memref<1024x128xf32, #tpu.memory_space<vmem>> -> memref<1x128xf32, #tpu.memory_space<vmem>>
      %43 = tpu.memref_squeeze %42 : memref<1x128xf32, #tpu.memory_space<vmem>> -> memref<128xf32, #tpu.memory_space<vmem>>
      %44 = tpu.memref_slice %arg11[%c1_i32_26] : memref<2x!tpu.dma_semaphore, #tpu.memory_space<semaphore_mem>> -> memref<1x!tpu.dma_semaphore, #tpu.memory_space<semaphore_mem>>
      %45 = tpu.memref_squeeze %44 : memref<1x!tpu.dma_semaphore, #tpu.memory_space<semaphore_mem>> -> memref<!tpu.dma_semaphore, #tpu.memory_space<semaphore_mem>>
      tpu.enqueue_dma source(%41 : memref<128xf32, #tpu.memory_space<any>>) target(%43 : memref<128xf32, #tpu.memory_space<vmem>>) target_semaphore(%45 : memref<!tpu.dma_semaphore, #tpu.memory_space<semaphore_mem>>)
    }
    %c1024_i32_1 = arith.constant 1024 : i32
    %c0_i32_2 = arith.constant 0 : i32
    %c1024_i32_3 = arith.constant 1024 : i32
    %2 = arith.addi %c0_i32_2, %c1024_i32_3 : i32
    %c1_i32_4 = arith.constant 1 : i32
    scf.for %arg12 = %c0_i32_2 to %2 step %c1_i32_4  : i32 {
      %c1_i32_21 = arith.constant 1 : i32
      %26 = arith.muli %arg12, %c1_i32_21 : i32
      %c0_i32_22 = arith.constant 0 : i32
      %27 = arith.addi %c0_i32_22, %26 : i32
      %c0_i32_23 = arith.constant 0 : i32
      %c0_i32_24 = arith.constant 0 : i32
      %c0_i32_25 = arith.constant 0 : i32
      %28 = tpu.memref_slice %arg6[%c0_i32_23, %c0_i32_25] : memref<64x128xf32, #tpu.memory_space<any>> -> memref<1x128xf32, #tpu.memory_space<any>>
      %29 = tpu.memref_squeeze %28 : memref<1x128xf32, #tpu.memory_space<any>> -> memref<128xf32, #tpu.memory_space<any>>
      %c0_i32_26 = arith.constant 0 : i32
      %30 = tpu.memref_slice %arg9[%27, %c0_i32_26] : memref<1024x128xf32, #tpu.memory_space<vmem>> -> memref<1x128xf32, #tpu.memory_space<vmem>>
      %31 = tpu.memref_squeeze %30 : memref<1x128xf32, #tpu.memory_space<vmem>> -> memref<128xf32, #tpu.memory_space<vmem>>
      %32 = tpu.memref_slice %arg11[%c0_i32_24] : memref<2x!tpu.dma_semaphore, #tpu.memory_space<semaphore_mem>> -> memref<1x!tpu.dma_semaphore, #tpu.memory_space<semaphore_mem>>
      %33 = tpu.memref_squeeze %32 : memref<1x!tpu.dma_semaphore, #tpu.memory_space<semaphore_mem>> -> memref<!tpu.dma_semaphore, #tpu.memory_space<semaphore_mem>>
      tpu.wait_dma2 semaphore(%33 : memref<!tpu.dma_semaphore, #tpu.memory_space<semaphore_mem>>) src(%29 : memref<128xf32, #tpu.memory_space<any>>) dst(%31 : memref<128xf32, #tpu.memory_space<vmem>>)
      %c0_i32_27 = arith.constant 0 : i32
      %c1_i32_28 = arith.constant 1 : i32
      %c0_i32_29 = arith.constant 0 : i32
      %34 = tpu.memref_slice %arg7[%c0_i32_27, %c0_i32_29] : memref<64x128xf32, #tpu.memory_space<any>> -> memref<1x128xf32, #tpu.memory_space<any>>
      %35 = tpu.memref_squeeze %34 : memref<1x128xf32, #tpu.memory_space<any>> -> memref<128xf32, #tpu.memory_space<any>>
      %c0_i32_30 = arith.constant 0 : i32
      %36 = tpu.memref_slice %arg10[%27, %c0_i32_30] : memref<1024x128xf32, #tpu.memory_space<vmem>> -> memref<1x128xf32, #tpu.memory_space<vmem>>
      %37 = tpu.memref_squeeze %36 : memref<1x128xf32, #tpu.memory_space<vmem>> -> memref<128xf32, #tpu.memory_space<vmem>>
      %38 = tpu.memref_slice %arg11[%c1_i32_28] : memref<2x!tpu.dma_semaphore, #tpu.memory_space<semaphore_mem>> -> memref<1x!tpu.dma_semaphore, #tpu.memory_space<semaphore_mem>>
      %39 = tpu.memref_squeeze %38 : memref<1x!tpu.dma_semaphore, #tpu.memory_space<semaphore_mem>> -> memref<!tpu.dma_semaphore, #tpu.memory_space<semaphore_mem>>
      tpu.wait_dma2 semaphore(%39 : memref<!tpu.dma_semaphore, #tpu.memory_space<semaphore_mem>>) src(%35 : memref<128xf32, #tpu.memory_space<any>>) dst(%37 : memref<128xf32, #tpu.memory_space<vmem>>)
    }
    %c1024_i32_5 = arith.constant 1024 : i32
    %c0 = arith.constant 0 : index
    %c0_6 = arith.constant 0 : index
    %3 = vector.load %arg9[%c0, %c0_6] : memref<1024x128xf32, #tpu.memory_space<vmem>>, vector<1024x128xf32>
    %4 = vector.shape_cast %3 : vector<1024x128xf32> to vector<8x128x128xf32>
    %c0_7 = arith.constant 0 : index
    %c0_8 = arith.constant 0 : index
    %5 = vector.load %arg10[%c0_7, %c0_8] : memref<1024x128xf32, #tpu.memory_space<vmem>>, vector<1024x128xf32>
    %6 = vector.shape_cast %5 : vector<1024x128xf32> to vector<8x128x128xf32>
    %7 = arith.mulf %4, %6 : vector<8x128x128xf32>
    %cst = arith.constant dense<0.000000e+00> : vector<8x128xf32>
    %8 = vector.multi_reduction <add>, %7, %cst [2] : vector<8x128x128xf32> to vector<8x128xf32>
    %c0_9 = arith.constant 0 : index
    %c0_10 = arith.constant 0 : index
    %9 = vector.load %arg3[%c0_9, %c0_10] : memref<8x128xf32, #tpu.memory_space<vmem>>, vector<8x128xf32>
    %cst_11 = arith.constant 1.000000e+02 : f32
    %10 = vector.broadcast %cst_11 : f32 to vector<8x128xf32>
    %11 = arith.cmpf olt, %9, %10 : vector<8x128xf32>
    %cst_12 = arith.constant 1.000000e+02 : f32
    %12 = vector.broadcast %cst_12 : f32 to vector<8x128xf32>
    %13 = arith.divf %9, %12 : vector<8x128xf32>
    %cst_13 = arith.constant 7.500000e-01 : f32
    %14 = vector.broadcast %cst_13 : f32 to vector<8x128xf32>
    %15 = math.powf %13, %14 : vector<8x128xf32>
    %cst_14 = arith.constant 1.000000e+00 : f32
    %16 = vector.broadcast %cst_14 : f32 to vector<8x128xf32>
    %17 = arith.select %11, %15, %16 : vector<8x128xi1>, vector<8x128xf32>
    %c0_15 = arith.constant 0 : index
    %c0_16 = arith.constant 0 : index
    %18 = vector.load %arg4[%c0_15, %c0_16] : memref<8x128xf32, #tpu.memory_space<vmem>>, vector<8x128xf32>
    %19 = arith.addf %8, %18 : vector<8x128xf32>
    %c0_17 = arith.constant 0 : index
    %c0_18 = arith.constant 0 : index
    %20 = vector.load %arg5[%c0_17, %c0_18] : memref<8x128xf32, #tpu.memory_space<vmem>>, vector<8x128xf32>
    %21 = arith.addf %19, %20 : vector<8x128xf32>
    %22 = math.log %9 : vector<8x128xf32>
    %23 = arith.subf %21, %22 : vector<8x128xf32>
    %24 = arith.mulf %17, %23 : vector<8x128xf32>
    %c0_19 = arith.constant 0 : index
    %c0_20 = arith.constant 0 : index
    %25 = vector.load %arg8[%c0_19, %c0_20] : memref<8x128xf32, #tpu.memory_space<vmem>>, vector<8x128xf32>
    tpu.vector_store %arg8[%c0_19, %c0_20], %24 {strides = array<i32>} : memref<8x128xf32, #tpu.memory_space<vmem>>, vector<8x128xf32>,
    return
  }
  func.func @transform_0(%arg0: i32, %arg1: memref<2048xi32, #tpu.memory_space<smem>>, %arg2: memref<2048xi32, #tpu.memory_space<smem>>) -> (i32, i32) {
    %c0_i32 = arith.constant 0 : i32
    %c0_i32_0 = arith.constant 0 : i32
    return %arg0, %c0_i32 : i32, i32
  }
  func.func @transform_1(%arg0: i32, %arg1: memref<2048xi32, #tpu.memory_space<smem>>, %arg2: memref<2048xi32, #tpu.memory_space<smem>>) -> (i32, i32) {
    %c0_i32 = arith.constant 0 : i32
    %c0_i32_0 = arith.constant 0 : i32
    return %arg0, %c0_i32 : i32, i32
  }
  func.func @transform_2(%arg0: i32, %arg1: memref<2048xi32, #tpu.memory_space<smem>>, %arg2: memref<2048xi32, #tpu.memory_space<smem>>) -> (i32, i32) {
    %c0_i32 = arith.constant 0 : i32
    %c0_i32_0 = arith.constant 0 : i32
    return %arg0, %c0_i32 : i32, i32
  }
  func.func @transform_5(%arg0: i32, %arg1: memref<2048xi32, #tpu.memory_space<smem>>, %arg2: memref<2048xi32, #tpu.memory_space<smem>>) -> (i32, i32) {
    %c0_i32 = arith.constant 0 : i32
    %c0_i32_0 = arith.constant 0 : i32
    return %arg0, %c0_i32 : i32, i32
  }
}

</mosaic_0001>

<bundles_post_ra>
// kernel: tpu_custom_call.1
= control target key start
LH: loop header
LB: loop body
LE: loop exit
PB: predicated region body
PF: predicated region fallthrough
CT: control target
= control target key end

     0   :  { %s5054_s24 = smov [#allocation6]   ;;  %s5055_s27 = smov [#allocation7]   ;;  %s7392_s0 = inlined_call_operand.hbm [shape: s32[2048], index: 0, kind: input, shape index: {}]   ;;  %s7393_s2 = inlined_call_operand.hbm [shape: f32[16,128], index: 2, kind: input, shape index: {}]   ;;  %s7394_s3 = inlined_call_operand.hbm [shape: f32[16,128], index: 3, kind: input, shape index: {}]   ;;  %s7395_s4 = inlined_call_operand.hbm [shape: f32[16,128], index: 4, kind: input, shape index: {}]   ;;  %s7396_s5 = inlined_call_operand.hbm [shape: f32[64,128], index: 5, kind: input, shape index: {}]   ;;  %s7397_s6 = inlined_call_operand.hbm [shape: f32[64,128], index: 6, kind: input, shape index: {}]   ;;  %s7398_s7 = inlined_call_operand.hbm [shape: f32[16,128], index: 7, kind: output, shape index: {}]   ;;  %s7399_s1 = inlined_call_operand.hbm [shape: s32[2048], index: 1, kind: input, shape index: {}]  }
   0x1   :  { %7410 = sst [smem:[#allocation425_spill]] %s7393_s2 }
   0x2   :  { %7411 = sst [smem:[#allocation426_spill]] %s7394_s3 }
   0x3   :  { %13 = dma.hbm_to_smem %s7392_s0, 256, %s5054_s24, [#allocation5] }
   0x4   :  { %15 = dma.hbm_to_smem %s7399_s1, 256, %s5055_s27, [#allocation5] }
   0x5   :  { %5012 = dma.done.wait [#allocation5], 512 }
   0x6   :  { %5013 = vsyncadd [#allocation5], 4294966784 }
   0x7   :  { %17 = sfence }
   0x8   :  { %18 = vsyncpa [#allocation9], 0 }
   0x9   :  { %20 = vsyncpa [#allocation9 + $0x1], 0 }
   0xa   :  { %21 = vsyncpa [#allocation12], 0 }
   0xb   :  { %23 = vsyncpa [#allocation12 + $0x1], 0 }
   0xc   :  { %24 = vsyncpa [#allocation10], 0 }
   0xd   :  { %26 = vsyncpa [#allocation10 + $0x1], 0  ;;  %s5109_s30 = smov 0   ;;  %s5111_s8 = smov 0  }
   0xe   :  { %s5113_s9 = smov 0   ;;  %s5115_s0 = smov 0  }
   0xf LB: > { %7412 = sst [smem:[#allocation27_spill]] %s5040_s9  ;;  %s5130_s1 = sadd.s32 4294967295, %s5044_s0   ;;  %s5044_s0 = sphi %s5115_s0, %s8286_s0   ;;  %s5040_s9 = sphi %s5113_s9, %s8288_s9   ;;  %s5036_s8 = sphi %s5111_s8, %s8290_s8   ;;  %s5032_s30 = sphi %s5109_s30, %s8289_s30  }
  0x10   : > { %s4695_s10 = sadd.s32 4294967294, %s5044_s0   ;;  %s5134_s11 = sadd.s32 1, %s5044_s0  }
  0x11   : > { %7413 = sst [smem:[#allocation28_spill]] %s5134_s11  ;;  %s39_s12 = sadd.s32 1, %s5040_s9 }
  0x12   : > { %s36_s13 = ssub.s32 %s5044_s0, %s5134_s11  ;;  %p46_p0 = scmp.ne.s32.totalorder %s5040_s9, %s5036_s8 }
  0x13   : > { %p37_p1 = scmp.eq.s32.totalorder %s36_s13, 0  ;;  %p47_p2 = scmp.eq.s32.totalorder %s5044_s0, 0 }
  0x14   : > { %p52_p3 = scmp.ne.s32.totalorder %s5036_s8, %s5032_s30  ;;  %p53_p4 = scmp.eq.s32.totalorder %s5130_s1, 0 }
  0x15   : > { %s5146_s14 = scalar_select %p37_p1, %s5040_s9, %s39_s12  }
  0x16   : > { %p48_p5 = por %p47_p2, %p46_p0  ;;  %p5148_p6 = por %p53_p4, %p52_p3 }
  0x17   : > { %7414 = sst [smem:[#allocation29_spill]] %s5146_s14  ;;  %p128_p7 = scmp.eq.s32.totalorder %s5130_s1, 1 }
  0x18   : > { %s7415_s15 = scalar_select %p5148_p6, 1, 0 }
  0x19   : > { %p134_p8 = scmp.eq.s32.totalorder %s4695_s10, 1  ;;  %p4756_p10 = scmp.lt.s32.totalorder %s5044_s0, 2 }
  0x1a   : > { %p5155_p11 = por %p128_p7, %p46_p0  ;;  %s7400_s18 = sand.u32 1, %s5040_s9  }
  0x1b   : > { %p5159_p12 = por %p134_p8, %p52_p3  ;;  %s5165_s19 = sshll.u32 %s5044_s0, 7 }
  0x1c   : > { %s7416_s16 = scalar_select %p5155_p11, 1, 0 }
  0x1d   : > { %s7417_s17 = scalar_select %p5159_p12, 1, 0 }
  0x1e   : > { %s5169_s20 = sshll.u32 %s7400_s18, 3  ;;  %p5171_p13 = pnand %p4756_p10, %p48_p5 }
  0x1f   : > { %s172_s22 = sand.u32 1, %s5044_s0   ;;  %s7419_s3 = sld [smem:[#allocation426_spill]] }
  0x20   : > { %s176_s26 = scalar_lea.vmem [#allocation11], %s5169_s20  ;;  %s5184_s28 = scalar_lea.sflag [#allocation12], %s172_s22 }
  0x21   : > { %s183_s27 = sshll.u32 %s176_s26, 4  ;;  %p5190_p2 = pneg %p5171_p13  ;;  %s184_s27 = int_to_ptr.vmem [resolvable:$true] %s183_s27 }
  0x25   : > { %s5180_s25 = scalar_lea.hbm %s7419_s3, %s5165_s19  ;;  %s4839_s23 = scalar_lea.hbm %s7419_s3, 256 }
  0x26   : > { %s4834_s29 = scalar_lea.hbm %s5180_s25, 128  ;;  %p4840_p5 = scmp.lt.s32.totalorder %s5180_s25, %s7419_s3 }
  0x27   : > { %p4835_p1 = scmp.ne.s32.totalorder %s5180_s25, %s4834_s29  ;;  %p4841_p7 = scmp.lt.s32.totalorder %s4839_s23, %s4834_s29 }
  0x29   : > { %p4837_p3 = pnand %p5190_p2, %p4835_p1  ;;  %p4842_p8 = por %p4841_p7, %p4840_p5 }
  0x2b   : > { %p4838_p4 = pneg %p4837_p3 }
  0x2d   : > { %p4843_p10 = pnand %p4842_p8, %p4838_p4 }
  0x2f   : > { %4846 = shalt.err (!%p4843_p10)
}
  0x30   : > { %s4847_s22 = scalar_lea.vmem %s184_s27, 128  ;;  %s5056_s18 = smov [#allocation11]  }
  0x31   : > { %p4848_p9 = scmp.ne.s32.totalorder %s184_s27, %s4847_s22  ;;  %s4852_s14 = sshll.u32 %s5056_s18, 4  ;;  %s4853_s14 = int_to_ptr.vmem [resolvable:$false] %s4852_s14 }
  0x32   : > { %s4854_s11 = scalar_lea.vmem %s4853_s14, 256  ;;  %p4855_p1 = scmp.lt.s32.totalorder %s184_s27, %s4853_s14 }
  0x33   : > { %p4850_p0 = pnand %p4848_p9, %p5190_p2  ;;  %p4856_p3 = scmp.lt.s32.totalorder %s4854_s11, %s4847_s22 }
  0x35   : > { %p4851_p12 = pneg %p4850_p0  ;;  %p4857_p11 = por %p4856_p3, %p4855_p1 }
  0x37   : > { %p4858_p6 = pnand %p4857_p11, %p4851_p12 }
  0x39   : > { %4861 = shalt.err (!%p4858_p6)
}
  0x3a   : > { %4748 = dma.hbm_to_vmem [thread:$0]  (!%p5171_p13), %s5180_s25, 128, %s184_s27, %s5184_s28  }
  0x3b   : > { %p206_p9 = scmp.lt.s32.totalorder %s5044_s0, 3  ;;  %s7421_s2 = sld [smem:[#allocation425_spill]] }
  0x3c   : > { %p7422_p0 = scmp.ge.s32.totalorder %s5044_s0, 1  ;;  %s158_s12 = scalar_lea.vmem [#allocation8], %s5169_s20 }
  0x3d   : > { %s165_s13 = sshll.u32 %s158_s12, 4  ;;  %s7424_s23 = sand.u32 1, %s5040_s9   ;;  %s166_s13 = int_to_ptr.vmem [resolvable:$true] %s165_s13 }
  0x3e   : > { %p5218_p6 = pnand %p7422_p0, %p206_p9  ;;  %s155_s24 = scalar_lea.sflag [#allocation9], %s7424_s23 }
  0x40   : > { %s7423_s11 = scalar_select %p5218_p6, 1, 0 }
  0x41   : > { %s5214_s14 = scalar_lea.hbm %s7421_s2, %s5165_s19  ;;  %s4867_s22 = scalar_lea.hbm %s7421_s2, 256 }
  0x42   : > { %s4862_s25 = scalar_lea.hbm %s5214_s14, 128  ;;  %p4868_p5 = scmp.lt.s32.totalorder %s5214_s14, %s7421_s2 }
  0x43   : > { %p4863_p11 = scmp.ne.s32.totalorder %s5214_s14, %s4862_s25  ;;  %p4869_p7 = scmp.lt.s32.totalorder %s4867_s22, %s4862_s25 }
  0x45   : > { %p4865_p12 = pnand %p4863_p11, %p5190_p2  ;;  %p4870_p8 = por %p4869_p7, %p4868_p5 }
  0x47   : > { %p4866_p4 = pneg %p4865_p12 }
  0x49   : > { %p4871_p10 = pnand %p4870_p8, %p4866_p4 }
  0x4b   : > { %4874 = shalt.err (!%p4871_p10)
}
  0x4c   : > { %s4875_s12 = scalar_lea.vmem %s166_s13, 128  ;;  %s5057_s23 = smov [#allocation8]  }
  0x4d   : > { %p4876_p1 = scmp.ne.s32.totalorder %s166_s13, %s4875_s12  ;;  %s4880_s3 = sshll.u32 %s5057_s23, 4  ;;  %s4881_s3 = int_to_ptr.vmem [resolvable:$false] %s4880_s3 }
  0x4e   : > { %s4882_s9 = scalar_lea.vmem %s4881_s3, 256  ;;  %p4883_p0 = scmp.lt.s32.totalorder %s166_s13, %s4881_s3 }
  0x4f   : > { %p4878_p3 = pnand %p4876_p1, %p5190_p2  ;;  %p4884_p11 = scmp.lt.s32.totalorder %s4882_s9, %s4875_s12 }
  0x51   : > { %p4879_p9 = pneg %p4878_p3  ;;  %p4885_p12 = por %p4884_p11, %p4883_p0 }
  0x53   : > { %p4886_p6 = pnand %p4885_p12, %p4879_p9 }
  0x55   : > { %4889 = shalt.err (!%p4886_p6)
}
  0x56   : > { %4745 = dma.hbm_to_vmem [thread:$0]  (!%p5171_p13), %s5214_s14, 128, %s166_s13, %s155_s24  }
  0x57   : > { %s199_s26 = scalar_lea.hbm %s7395_s4, %s5165_s19  ;;  %s194_s22 = scalar_lea.vmem [#allocation13], %s5169_s20 }
  0x58   : > { %s201_s18 = sshll.u32 %s194_s22, 4  ;;  %s4890_s29 = scalar_lea.hbm %s199_s26, 128  ;;  %s202_s18 = int_to_ptr.vmem [resolvable:$true] %s201_s18 }
  0x59   : > { %p4891_p4 = scmp.ne.s32.totalorder %s199_s26, %s4890_s29  ;;  %s4895_s12 = scalar_lea.hbm %s7395_s4, 256 }
  0x5a   : > { %p4896_p6 = scmp.lt.s32.totalorder %s199_s26, %s7395_s4  ;;  %p4897_p8 = scmp.lt.s32.totalorder %s4895_s12, %s4890_s29 }
  0x5b   : > { %p4893_p5 = pnand %p4891_p4, %p5190_p2 }
  0x5c   : > { %p4898_p10 = por %p4897_p8, %p4896_p6 }
  0x5d   : > { %p4894_p7 = pneg %p4893_p5 }
  0x5f   : > { %p4899_p1 = pnand %p4898_p10, %p4894_p7 }
  0x61   : > { %4902 = shalt.err (!%p4899_p1)
}
  0x62   : > { %s4903_s19 = scalar_lea.vmem %s202_s18, 128  ;;  %s5058_s20 = smov [#allocation13]  }
  0x63   : > { %p4904_p3 = scmp.ne.s32.totalorder %s202_s18, %s4903_s19  ;;  %s4908_s14 = sshll.u32 %s5058_s20, 4  ;;  %s4909_s14 = int_to_ptr.vmem [resolvable:$false] %s4908_s14 }
  0x64   : > { %s4910_s13 = scalar_lea.vmem %s4909_s14, 256  ;;  %p4911_p11 = scmp.lt.s32.totalorder %s202_s18, %s4909_s14 }
  0x65   : > { %p4906_p9 = pnand %p4904_p3, %p5190_p2  ;;  %p4912_p12 = scmp.lt.s32.totalorder %s4910_s13, %s4903_s19 }
  0x67   : > { %p4907_p0 = pneg %p4906_p9  ;;  %p4913_p4 = por %p4912_p12, %p4911_p11 }
  0x69   : > { %p4914_p5 = pnand %p4913_p4, %p4907_p0 }
  0x6b   : > { %4917 = shalt.err (!%p4914_p5)
}
  0x6c   : > { %4751 = dma.hbm_to_vmem [thread:$0]  (!%p5171_p13), %s199_s26, 128, %s202_s18, %s5184_s28  }
  0x6d   : > { %p7425_p7 = scmp.ne.s32.totalorder %s7423_s11, 0 }
  0x6f   : > { %210 = sbr.rel (%p7425_p7) target bundleno = 1627 (0x65b), region = 32 }
  0x74   : > { %s5262_s2 = sand.u32 1, %s5036_s8   ;;  %p7426_p2 = scmp.ne.s32.totalorder %s7415_s15, 0 }
  0x75   : > { %s5265_s10 = sshll.u32 %s5262_s2, 3  ;;  %s213_s24 = scalar_lea.sflag [#allocation9], %s5262_s2 }
  0x76   : > { %5015 = dma.done.wait (%p7426_p2), %s213_s24, 128  }
  0x77   : > { %5017 = vsyncadd (%p7426_p2), %s213_s24, 4294967168  ;;  %s221_s21 = sand.u32 1, %s5130_s1   ;;  %s225_s11 = scalar_lea.vmem [#allocation11], %s5265_s10 }
  0x78   : > { %s222_s28 = scalar_lea.sflag [#allocation12], %s221_s21 }
  0x79   : > { %5019 = dma.done.wait (%p7426_p2), %s222_s28, 256  }
  0x7a   : > { %5021 = vsyncadd (%p7426_p2), %s222_s28, 4294967040  ;;  %s5282_s18 = smov 0  }
  0x7b LB: >> { %s7427_s27 = sshll.u32 %s5130_s1, 10  ;;  %s278_s9 = scalar_lea.vmem [#allocation2], %s5048_s18  ;;  %s5048_s18 = sphi %s5282_s18, %s273_s18  }
  0x7c   : >> { %s274_s15 = sadd.s32 %s5048_s18, %s7427_s27  ;;  %s286_s12 = sshll.u32 %s278_s9, 4  ;;  %s287_s12 = int_to_ptr.vmem [resolvable:$true] %s286_s12 }
  0x7d   : >> { %s275_s29 = sld [smem:[#allocation6 + %s274_s15]]  ;;  %s293_s23 = scalar_lea.vmem [#allocation3], %s5048_s18 }
  0x7e   : >> { %s5290_s3 = sld [smem:[#allocation7 + %s274_s15]]  ;;  %s302_s19 = sshll.u32 %s293_s23, 4  ;;  %s5294_s19 = int_to_ptr.vmem [resolvable:$true] %s302_s19 }
  0x7f   : >> { %s4920_s15 = scalar_lea.hbm %s7396_s5, 1024 }
  0x83   : >> { %s4710_s20 = sshll.u32 %s275_s29, 4 }
  0x84   : >> { %s277_s24 = scalar_lea.hbm %s7396_s5, %s4710_s20  ;;  %s4711_s21 = sshll.u32 %s5290_s3, 4 }
  0x85   : >> { %s4918_s28 = scalar_lea.hbm %s277_s24, 16  ;;  %p4921_p6 = scmp.lt.s32.totalorder %s277_s24, %s7396_s5 }
  0x86   : >> { %p4919_p13 = scmp.ne.s32.totalorder %s277_s24, %s4918_s28  ;;  %p4922_p8 = scmp.lt.s32.totalorder %s4920_s15, %s4918_s28 }
  0x88   : >> { %p4923_p10 = por %p4922_p8, %p4921_p6 }
  0x8a   : >> { %p4924_p1 = pnand %p4923_p10, %p4919_p13 }
  0x8c   : >> { %4927 = shalt.err (!%p4924_p1)  }
  0x8d   : >> { %s4928_s29 = scalar_lea.vmem %s287_s12, 16  ;;  %s5059_s9 = smov [#allocation2]  }
  0x8e   : >> { %p4929_p3 = scmp.ne.s32.totalorder %s287_s12, %s4928_s29  ;;  %s4930_s23 = sshll.u32 %s5059_s9, 4  ;;  %s4931_s23 = int_to_ptr.vmem [resolvable:$false] %s4930_s23 }
  0x8f   : >> { %s4932_s3 = scalar_lea.vmem %s4931_s23, 16384  ;;  %p4933_p9 = scmp.lt.s32.totalorder %s287_s12, %s4931_s23 }
  0x90   : >> { %p4934_p0 = scmp.lt.s32.totalorder %s4932_s3, %s4928_s29 }
  0x92   : >> { %p4935_p11 = por %p4934_p0, %p4933_p9 }
  0x94   : >> { %p4936_p12 = pnand %p4935_p11, %p4929_p3 }
  0x96   : >> { %4939 = shalt.err (!%p4936_p12)  }
  0x97   : >> { %289 = dma.hbm_to_vmem [thread:$0]  %s277_s24, 16, %s287_s12, [#allocation4] }
  0x98   : >> { %s292_s25 = scalar_lea.hbm %s7397_s6, %s4711_s21  ;;  %s4942_s13 = scalar_lea.hbm %s7397_s6, 1024 }
  0x99   : >> { %s4940_s26 = scalar_lea.hbm %s292_s25, 16  ;;  %p4943_p5 = scmp.lt.s32.totalorder %s292_s25, %s7397_s6 }
  0x9a   : >> { %p4941_p4 = scmp.ne.s32.totalorder %s292_s25, %s4940_s26  ;;  %p4944_p7 = scmp.lt.s32.totalorder %s4942_s13, %s4940_s26 }
  0x9c   : >> { %p4945_p2 = por %p4944_p7, %p4943_p5 }
  0x9e   : >> { %p4946_p13 = pnand %p4945_p2, %p4941_p4 }
  0xa0   : >> { %4949 = shalt.err (!%p4946_p13)  }
  0xa1   : >> { %s4950_s12 = scalar_lea.vmem %s5294_s19, 16  ;;  %s5060_s24 = smov [#allocation3]  }
  0xa2   : >> { %p4951_p6 = scmp.ne.s32.totalorder %s5294_s19, %s4950_s12  ;;  %s4952_s21 = sshll.u32 %s5060_s24, 4  ;;  %s4953_s21 = int_to_ptr.vmem [resolvable:$false] %s4952_s21 }
  0xa3   : >> { %s4954_s29 = scalar_lea.vmem %s4953_s21, 16384  ;;  %p4955_p8 = scmp.lt.s32.totalorder %s5294_s19, %s4953_s21 }
  0xa4   : >> { %p4956_p10 = scmp.lt.s32.totalorder %s4954_s29, %s4950_s12 }
  0xa6   : >> { %p4957_p1 = por %p4956_p10, %p4955_p8 }
  0xa8   : >> { %p4958_p3 = pnand %p4957_p1, %p4951_p6 }
  0xaa   : >> { %4961 = shalt.err (!%p4958_p3)  }
  0xab   : >> { %305 = dma.hbm_to_vmem [thread:$0]  %s292_s25, 16, %s5294_s19, [#allocation4 + $0x1] }
  0xac   : >> { %s273_s18 = sadd.s32 1, %s5048_s18  }
  0xad   : >> { %p270_p9 = scmp.ge.s32.totalorder %s273_s18, 1024  }
  0xae   : > { %s5050_s9 = smov (%p270_p9), 0  }
  0xaf   : > { %272 = sbr.rel (!%p270_p9) target bundleno = 123 (0x7b), region = 130 }
  0xb4 LB: >> { %5022 = dma.done.wait [#allocation4], 16  ;;  %s5052_s9 = sphi %s5050_s9, %s311_s9  }
  0xb5   : >> { %5023 = vsyncadd [#allocation4], 4294967280 }
  0xb6   : >> { %5024 = dma.done.wait [#allocation4 + $0x1], 16 }
  0xb7   : >> { %5025 = vsyncadd [#allocation4 + $0x1], 4294967280  ;;  %s311_s9 = sadd.s32 1, %s5052_s9  }
  0xb8   : >> { %p308_p0 = scmp.ge.s32.totalorder %s311_s9, 1024  }
  0xb9   : > { %v319_v0 = vld [vmem:[#allocation2 + $0x10] sm:$0xff] (%p308_p0)  ;;  %v317_v2 = vld [vmem:[#allocation2] sm:$0xff] (%p308_p0)  ;;  %v320_v5 = vld [vmem:[#allocation2 + $0x18] sm:$0xff] (%p308_p0)  ;;  %s7699_s18 = scalar_lea.vmem (%p308_p0), [#allocation8], %s5265_s10  ;;  %vm3869_vm0 = vcmask (%p308_p0), 130112   ;;  %vm3876_vm1 = vcmask (%p308_p0), 195712  }
  0xba   : > { %310 = sbr.rel (!%p308_p0) target bundleno = 180 (0xb4), region = 141  ;;  %v447_v1 = vld [vmem:[#allocation3 + $0x10] sm:$0xff] (%p308_p0)  ;;  %v445_v4 = vld [vmem:[#allocation3] sm:$0xff] (%p308_p0)  ;;  %v448_v6 = vld [vmem:[#allocation3 + $0x18] sm:$0xff] (%p308_p0)  ;;  %vm3883_vm2 = vcmask (%p308_p0), 261312   ;;  %vm3890_vm3 = vcmask (%p308_p0), 326912   ;;  %s8276_s19 = smov (%p308_p0), %s7699_s18 }
  0xbb   : > { %v575_v3 = vmul.f32 (%p308_p0), %v447_v1, %v319_v0  ;;  %v573_v7 = vmul.f32 (%p308_p0), %v445_v4, %v317_v2  ;;  %v318_v8 = vld [vmem:[#allocation2 + $0x8] sm:$0xff] (%p308_p0)  ;;  %v576_v10 = vmul.f32 (%p308_p0), %v448_v6, %v320_v5  ;;  %v321_v14 = vld [vmem:[#allocation2 + $0x20] sm:$0xff] (%p308_p0)  ;;  %v324_v18 = vld [vmem:[#allocation2 + $0x38] sm:$0xff] (%p308_p0)  ;;  %vm3897_vm4 = vcmask (%p308_p0), 392512   ;;  %s4713_s23 = sshll.u32 (%p308_p0), %s5130_s1, 7  ;;  %s8281_s3 = scalar_lea.vmem (%p308_p0), [#allocation14], %s5265_s10 }
  0xbc   : > { %v446_v9 = vld [vmem:[#allocation3 + $0x8] sm:$0xff] (%p308_p0)  ;;  %v449_v15 = vld [vmem:[#allocation3 + $0x20] sm:$0xff] (%p308_p0)  ;;  %v452_v19 = vld [vmem:[#allocation3 + $0x38] sm:$0xff] (%p308_p0)  ;;  %vm3904_vm5 = vcmask (%p308_p0), 458112   ;;  %vm3911_vm6 = vcmask (%p308_p0), 523712   ;;  %vm3918_vm7 = vcmask (%p308_p0), 589312   ;;  %s4551_s26 = scalar_lea.hbm (%p308_p0), %s7398_s7, %s4713_s23  ;;  %s8282_s20 = smov (%p308_p0), %s8281_s3 }
  0xbd   : > { %705 = vadd.xlane.f32.xlu1 (%p308_p0), %v575_v3  ;;  %701 = vadd.xlane.f32.xlu0 (%p308_p0), %v573_v7  ;;  %v574_v11 = vmul.f32 (%p308_p0), %v446_v9, %v318_v8  ;;  %v322_v12 = vld [vmem:[#allocation2 + $0x28] sm:$0xff] (%p308_p0)  ;;  %v577_v17 = vmul.f32 (%p308_p0), %v449_v15, %v321_v14  ;;  %v323_v20 = vld [vmem:[#allocation2 + $0x30] sm:$0xff] (%p308_p0)  ;;  %v580_v22 = vmul.f32 (%p308_p0), %v452_v19, %v324_v18  ;;  %v325_v26 = vld [vmem:[#allocation2 + $0x40] sm:$0xff] (%p308_p0)  ;;  %vm3925_vm8 = vcmask (%p308_p0), 654912   ;;  %s4553_s27 = sshll.u32 (%p308_p0), %s8281_s3, 4  ;;  %s4540_s14 = scalar_lea.sflag (%p308_p0), [#allocation10], %s5262_s2  ;;  %s4554_s27 = int_to_ptr.vmem [resolvable:$true] %s4553_s27 }
  0xbe   : > { %v450_v13 = vld [vmem:[#allocation3 + $0x28] sm:$0xff] (%p308_p0)  ;;  %v451_v21 = vld [vmem:[#allocation3 + $0x30] sm:$0xff] (%p308_p0)  ;;  %v453_v27 = vld [vmem:[#allocation3 + $0x40] sm:$0xff] (%p308_p0)  ;;  %vm3932_vm9 = vcmask (%p308_p0), 720512   ;;  %vm3939_vm10 = vcmask (%p308_p0), 786112   ;;  %vm7409_vm11 = vcmask (%p308_p0), 851712  }
  0xbf   : > { %v578_v16 = vmul.f32 %v450_v13, %v322_v12  ;;  %v579_v23 = vmul.f32 %v451_v21, %v323_v20  ;;  %v326_v24 = vld [vmem:[#allocation2 + $0x48] sm:$0xff]  ;;  %v581_v29 = vmul.f32 %v453_v27, %v325_v26  ;;  %v328_v30 = vld [vmem:[#allocation2 + $0x58] sm:$0xff]  ;;  %v327_v32 = vld [vmem:[#allocation2 + $0x50] sm:$0xff]  ;;  %vm3953_vm12 = vcmask 917312   ;;  %s4962_s13 = scalar_lea.vmem %s4554_s27, 128  ;;  %p8283_p12 = scmp.ne.s32.totalorder %s7416_s16, 0 }
  0xc0   : > { %v454_v25 = vld [vmem:[#allocation3 + $0x48] sm:$0xff]  ;;  %v456_v31 = vld [vmem:[#allocation3 + $0x58] sm:$0xff]  ;;  %v455_v33 = vld [vmem:[#allocation3 + $0x50] sm:$0xff]  ;;  %vm3960_vm13 = vcmask 982912   ;;  %vm3967_vm14 = vcmask 1048512   ;;  %vm4522_vm15 = vcmask 1041409   ;;  %p4963_p11 = scmp.ne.s32.totalorder %s4554_s27, %s4962_s13 }
  0xc1   : > { %707 = vadd.xlane.f32.xlu1 %v576_v10  ;;  %703 = vadd.xlane.f32.xlu0 %v574_v11  ;;  %v582_v28 = vmul.f32 %v454_v25, %v326_v24  ;;  %v584_v34 = vmul.f32 %v456_v31, %v328_v30  ;;  %v583_v35 = vmul.f32 %v455_v33, %v327_v32  ;;  %v330_v36 = vld [vmem:[#allocation2 + $0x68] sm:$0xff]  ;;  %v329_v38 = vld [vmem:[#allocation2 + $0x60] sm:$0xff]  ;;  %v332_v42 = vld [vmem:[#allocation2 + $0x78] sm:$0xff]  ;;  %s5062_s1 = smov [#allocation14]  }
  0xc2   : > { %v458_v37 = vld [vmem:[#allocation3 + $0x68] sm:$0xff]  ;;  %v457_v39 = vld [vmem:[#allocation3 + $0x60] sm:$0xff]  ;;  %v460_v43 = vld [vmem:[#allocation3 + $0x78] sm:$0xff]  ;;  %p4964_p4 = pnand %p4963_p11, %p8283_p12  ;;  %s4966_s28 = sshll.u32 %s5062_s1, 4  ;;  %s4967_s28 = int_to_ptr.vmem [resolvable:$false] %s4966_s28 }
  0xc3   : > { %v586_v40 = vmul.f32 %v458_v37, %v330_v36  ;;  %v585_v41 = vmul.f32 %v457_v39, %v329_v38  ;;  %v331_v44 = vld [vmem:[#allocation2 + $0x70] sm:$0xff]  ;;  %v588_v46 = vmul.f32 %v460_v43, %v332_v42  ;;  %v334_v48 = vld [vmem:[#allocation2 + $0x88] sm:$0xff]  ;;  %v333_v50 = vld [vmem:[#allocation2 + $0x80] sm:$0xff]  ;;  %s4968_s15 = scalar_lea.vmem %s4967_s28, 256  ;;  %p4969_p7 = scmp.lt.s32.totalorder %s4554_s27, %s4967_s28 }
  0xc4   : > { %v459_v45 = vld [vmem:[#allocation3 + $0x70] sm:$0xff]  ;;  %v462_v49 = vld [vmem:[#allocation3 + $0x88] sm:$0xff]  ;;  %v461_v51 = vld [vmem:[#allocation3 + $0x80] sm:$0xff]  ;;  %p4965_p5 = pneg %p4964_p4  ;;  %p4970_p2 = scmp.lt.s32.totalorder %s4968_s15, %s4962_s13 }
  0xc5   : > { %711 = vadd.xlane.f32.xlu1 %v578_v16  ;;  %709 = vadd.xlane.f32.xlu0 %v577_v17  ;;  %v587_v47 = vmul.f32 %v459_v45, %v331_v44  ;;  %v590_v52 = vmul.f32 %v462_v49, %v334_v48  ;;  %v589_v53 = vmul.f32 %v461_v51, %v333_v50  ;;  %v336_v54 = vld [vmem:[#allocation2 + $0x98] sm:$0xff]  ;;  %v335_v56 = vld [vmem:[#allocation2 + $0x90] sm:$0xff]  ;;  %v338_v60 = vld [vmem:[#allocation2 + $0xa8] sm:$0xff] }
  0xc6   : > { %v464_v55 = vld [vmem:[#allocation3 + $0x98] sm:$0xff]  ;;  %v463_v57 = vld [vmem:[#allocation3 + $0x90] sm:$0xff]  ;;  %v466_v61 = vld [vmem:[#allocation3 + $0xa8] sm:$0xff]  ;;  %p4971_p13 = por %p4970_p2, %p4969_p7 }
  0xc7   : > { %v592_v58 = vmul.f32 %v464_v55, %v336_v54  ;;  %v591_v59 = vmul.f32 %v463_v57, %v335_v56  ;;  %v337_v62 = vld [vmem:[#allocation2 + $0xa0] sm:$0xff]  ;;  %v594_v0 = vmul.f32 %v466_v61, %v338_v60  ;;  %v340_v2 = vld [vmem:[#allocation2 + $0xb8] sm:$0xff]  ;;  %v339_v4 = vld [vmem:[#allocation2 + $0xb0] sm:$0xff] }
  0xc8   : > { %v465_v63 = vld [vmem:[#allocation3 + $0xa0] sm:$0xff]  ;;  %v468_v3 = vld [vmem:[#allocation3 + $0xb8] sm:$0xff]  ;;  %v467_v5 = vld [vmem:[#allocation3 + $0xb0] sm:$0xff]  ;;  %p4972_p6 = pnand %p4971_p13, %p4965_p5 }
  0xc9   : > { %715 = vadd.xlane.f32.xlu1 %v580_v22  ;;  %713 = vadd.xlane.f32.xlu0 %v579_v23  ;;  %v593_v1 = vmul.f32 %v465_v63, %v337_v62  ;;  %v596_v6 = vmul.f32 %v468_v3, %v340_v2  ;;  %v595_v7 = vmul.f32 %v467_v5, %v339_v4  ;;  %v342_v8 = vld [vmem:[#allocation2 + $0xc8] sm:$0xff]  ;;  %v341_v10 = vld [vmem:[#allocation2 + $0xc0] sm:$0xff]  ;;  %v344_v14 = vld [vmem:[#allocation2 + $0xd8] sm:$0xff] }
  0xca   : > { %v470_v9 = vld [vmem:[#allocation3 + $0xc8] sm:$0xff]  ;;  %v469_v11 = vld [vmem:[#allocation3 + $0xc0] sm:$0xff]  ;;  %v472_v15 = vld [vmem:[#allocation3 + $0xd8] sm:$0xff] }
  0xcb   : > { %v598_v12 = vmul.f32 %v470_v9, %v342_v8  ;;  %v597_v13 = vmul.f32 %v469_v11, %v341_v10  ;;  %v343_v16 = vld [vmem:[#allocation2 + $0xd0] sm:$0xff]  ;;  %v600_v18 = vmul.f32 %v472_v15, %v344_v14  ;;  %v346_v20 = vld [vmem:[#allocation2 + $0xe8] sm:$0xff]  ;;  %v345_v22 = vld [vmem:[#allocation2 + $0xe0] sm:$0xff] }
  0xcc   : > { %v471_v17 = vld [vmem:[#allocation3 + $0xd0] sm:$0xff]  ;;  %v474_v21 = vld [vmem:[#allocation3 + $0xe8] sm:$0xff]  ;;  %v473_v23 = vld [vmem:[#allocation3 + $0xe0] sm:$0xff] }
  0xcd   : > { %719 = vadd.xlane.f32.xlu1 %v582_v28  ;;  %717 = vadd.xlane.f32.xlu0 %v581_v29  ;;  %v599_v19 = vmul.f32 %v471_v17, %v343_v16  ;;  %v602_v24 = vmul.f32 %v474_v21, %v346_v20  ;;  %v601_v25 = vmul.f32 %v473_v23, %v345_v22  ;;  %v348_v26 = vld [vmem:[#allocation2 + $0xf8] sm:$0xff]  ;;  %v347_v28 = vld [vmem:[#allocation2 + $0xf0] sm:$0xff]  ;;  %v350_v32 = vld [vmem:[#allocation2 + $0x108] sm:$0xff] }
  0xce   : > { %v476_v27 = vld [vmem:[#allocation3 + $0xf8] sm:$0xff]  ;;  %v475_v29 = vld [vmem:[#allocation3 + $0xf0] sm:$0xff]  ;;  %v478_v33 = vld [vmem:[#allocation3 + $0x108] sm:$0xff] }
  0xcf   : > { %v604_v30 = vmul.f32 %v476_v27, %v348_v26  ;;  %v603_v31 = vmul.f32 %v475_v29, %v347_v28  ;;  %v606_v36 = vmul.f32 %v478_v33, %v350_v32  ;;  %v352_v38 = vld [vmem:[#allocation2 + $0x118] sm:$0xff]  ;;  %v354_v44 = vld [vmem:[#allocation2 + $0x128] sm:$0xff] }
  0xd0   : > { %v480_v39 = vld [vmem:[#allocation3 + $0x118] sm:$0xff]  ;;  %v482_v45 = vld [vmem:[#allocation3 + $0x128] sm:$0xff] }
  0xd1   : > { %723 = vadd.xlane.f32.xlu1 %v584_v34  ;;  %721 = vadd.xlane.f32.xlu0 %v583_v35  ;;  %v349_v34 = vld [vmem:[#allocation2 + $0x100] sm:$0xff]  ;;  %v608_v42 = vmul.f32 %v480_v39, %v352_v38  ;;  %v610_v48 = vmul.f32 %v482_v45, %v354_v44  ;;  %v356_v50 = vld [vmem:[#allocation2 + $0x138] sm:$0xff]  ;;  %v358_v56 = vld [vmem:[#allocation2 + $0x148] sm:$0xff] }
  0xd2   : > { %v477_v35 = vld [vmem:[#allocation3 + $0x100] sm:$0xff]  ;;  %v484_v51 = vld [vmem:[#allocation3 + $0x138] sm:$0xff]  ;;  %v486_v57 = vld [vmem:[#allocation3 + $0x148] sm:$0xff] }
  0xd3   : > { %v605_v37 = vmul.f32 %v477_v35, %v349_v34  ;;  %v612_v54 = vmul.f32 %v484_v51, %v356_v50  ;;  %v614_v60 = vmul.f32 %v486_v57, %v358_v56  ;;  %v360_v62 = vld [vmem:[#allocation2 + $0x158] sm:$0xff]  ;;  %v362_v4 = vld [vmem:[#allocation2 + $0x168] sm:$0xff] }
  0xd4   : > { %v488_v63 = vld [vmem:[#allocation3 + $0x158] sm:$0xff]  ;;  %v490_v5 = vld [vmem:[#allocation3 + $0x168] sm:$0xff] }
  0xd5   : > { %727 = vadd.xlane.f32.xlu1 %v586_v40  ;;  %725 = vadd.xlane.f32.xlu0 %v585_v41  ;;  %v351_v40 = vld [vmem:[#allocation2 + $0x110] sm:$0xff]  ;;  %v616_v2 = vmul.f32 %v488_v63, %v360_v62  ;;  %v618_v8 = vmul.f32 %v490_v5, %v362_v4  ;;  %v364_v10 = vld [vmem:[#allocation2 + $0x178] sm:$0xff]  ;;  %v366_v16 = vld [vmem:[#allocation2 + $0x188] sm:$0xff] }
  0xd6   : > { %v479_v41 = vld [vmem:[#allocation3 + $0x110] sm:$0xff]  ;;  %v492_v11 = vld [vmem:[#allocation3 + $0x178] sm:$0xff]  ;;  %v494_v17 = vld [vmem:[#allocation3 + $0x188] sm:$0xff] }
  0xd7   : > { %v607_v43 = vmul.f32 %v479_v41, %v351_v40  ;;  %v620_v14 = vmul.f32 %v492_v11, %v364_v10  ;;  %v622_v20 = vmul.f32 %v494_v17, %v366_v16  ;;  %v368_v22 = vld [vmem:[#allocation2 + $0x198] sm:$0xff]  ;;  %v370_v28 = vld [vmem:[#allocation2 + $0x1a8] sm:$0xff] }
  0xd8   : > { %v496_v23 = vld [vmem:[#allocation3 + $0x198] sm:$0xff]  ;;  %v498_v29 = vld [vmem:[#allocation3 + $0x1a8] sm:$0xff] }
  0xd9   : > { %731 = vadd.xlane.f32.xlu1 %v588_v46  ;;  %729 = vadd.xlane.f32.xlu0 %v587_v47  ;;  %v353_v46 = vld [vmem:[#allocation2 + $0x120] sm:$0xff]  ;;  %v624_v26 = vmul.f32 %v496_v23, %v368_v22  ;;  %v626_v32 = vmul.f32 %v498_v29, %v370_v28  ;;  %v372_v34 = vld [vmem:[#allocation2 + $0x1b8] sm:$0xff]  ;;  %v374_v40 = vld [vmem:[#allocation2 + $0x1c8] sm:$0xff] }
  0xda   : > { %v481_v47 = vld [vmem:[#allocation3 + $0x120] sm:$0xff]  ;;  %v500_v35 = vld [vmem:[#allocation3 + $0x1b8] sm:$0xff]  ;;  %v502_v41 = vld [vmem:[#allocation3 + $0x1c8] sm:$0xff] }
  0xdb   : > { %v609_v49 = vmul.f32 %v481_v47, %v353_v46  ;;  %v628_v38 = vmul.f32 %v500_v35, %v372_v34  ;;  %v630_v44 = vmul.f32 %v502_v41, %v374_v40  ;;  %v376_v46 = vld [vmem:[#allocation2 + $0x1d8] sm:$0xff]  ;;  %v389_v28 = vld [vmem:[#allocation2 + $0x240] sm:$0xff]  ;;  %v394_v41 = vld [vmem:[#allocation2 + $0x268] sm:$0xff] }
  0xdc   : > { %v504_v47 = vld [vmem:[#allocation3 + $0x1d8] sm:$0xff]  ;;  %v517_v29 = vld [vmem:[#allocation3 + $0x240] sm:$0xff] }
  0xdd   : > { %735 = vadd.xlane.f32.xlu1 %v590_v52  ;;  %733 = vadd.xlane.f32.xlu0 %v589_v53  ;;  %v355_v52 = vld [vmem:[#allocation2 + $0x130] sm:$0xff]  ;;  %v632_v50 = vmul.f32 %v504_v47, %v376_v46  ;;  %v520_v34 = vld [vmem:[#allocation3 + $0x258] sm:$0xff] }
  0xde   : > { %v483_v53 = vld [vmem:[#allocation3 + $0x130] sm:$0xff] }
  0xdf   : > { %v611_v55 = vmul.f32 %v483_v53, %v355_v52  ;;  %v378_v52 = vld [vmem:[#allocation2 + $0x1e8] sm:$0xff] }
  0xe0   : > { %v506_v53 = vld [vmem:[#allocation3 + $0x1e8] sm:$0xff] }
  0xe1   : > { %739 = vadd.xlane.f32.xlu1 %v592_v58  ;;  %737 = vadd.xlane.f32.xlu0 %v591_v59  ;;  %v357_v58 = vld [vmem:[#allocation2 + $0x140] sm:$0xff]  ;;  %v634_v56 = vmul.f32 %v506_v53, %v378_v52  ;;  %v395_v52 = vld [vmem:[#allocation2 + $0x270] sm:$0xff] }
  0xe2   : > { %v485_v59 = vld [vmem:[#allocation3 + $0x140] sm:$0xff]  ;;  %v523_v53 = vld [vmem:[#allocation3 + $0x270] sm:$0xff] }
  0xe3   : > { %v613_v61 = vmul.f32 %v485_v59, %v357_v58  ;;  %v380_v58 = vld [vmem:[#allocation2 + $0x1f8] sm:$0xff] }
  0xe4   : > { %v508_v59 = vld [vmem:[#allocation3 + $0x1f8] sm:$0xff] }
  0xe5   : > { %743 = vadd.xlane.f32.xlu1 %v594_v0  ;;  %741 = vadd.xlane.f32.xlu0 %v593_v1  ;;  %v359_v0 = vld [vmem:[#allocation2 + $0x150] sm:$0xff]  ;;  %v636_v62 = vmul.f32 %v508_v59, %v380_v58  ;;  %v526_v58 = vld [vmem:[#allocation3 + $0x288] sm:$0xff] }
  0xe6   : > { %v487_v1 = vld [vmem:[#allocation3 + $0x150] sm:$0xff] }
  0xe7   : > { %v615_v3 = vmul.f32 %v487_v1, %v359_v0  ;;  %v382_v0 = vld [vmem:[#allocation2 + $0x208] sm:$0xff] }
  0xe8   : > { %v510_v1 = vld [vmem:[#allocation3 + $0x208] sm:$0xff] }
  0xe9   : > { %747 = vadd.xlane.f32.xlu1 %v596_v6  ;;  %745 = vadd.xlane.f32.xlu0 %v595_v7  ;;  %v361_v6 = vld [vmem:[#allocation2 + $0x160] sm:$0xff]  ;;  %v638_v4 = vmul.f32 %v510_v1, %v382_v0  ;;  %v400_v1 = vld [vmem:[#allocation2 + $0x298] sm:$0xff] }
  0xea   : > { %v489_v7 = vld [vmem:[#allocation3 + $0x160] sm:$0xff] }
  0xeb   : > { %v617_v9 = vmul.f32 %v489_v7, %v361_v6  ;;  %v384_v6 = vld [vmem:[#allocation2 + $0x218] sm:$0xff] }
  0xec   : > { %v512_v7 = vld [vmem:[#allocation3 + $0x218] sm:$0xff] }
  0xed   : > { %751 = vadd.xlane.f32.xlu1 %v598_v12  ;;  %749 = vadd.xlane.f32.xlu0 %v597_v13  ;;  %v363_v12 = vld [vmem:[#allocation2 + $0x170] sm:$0xff]  ;;  %v640_v10 = vmul.f32 %v512_v7, %v384_v6 }
  0xee   : > { %v491_v13 = vld [vmem:[#allocation3 + $0x170] sm:$0xff] }
  0xef   : > { %v619_v15 = vmul.f32 %v491_v13, %v363_v12  ;;  %v386_v12 = vld [vmem:[#allocation2 + $0x228] sm:$0xff] }
  0xf0   : > { %v514_v13 = vld [vmem:[#allocation3 + $0x228] sm:$0xff] }
  0xf1   : > { %755 = vadd.xlane.f32.xlu1 %v600_v18  ;;  %753 = vadd.xlane.f32.xlu0 %v599_v19  ;;  %v365_v18 = vld [vmem:[#allocation2 + $0x180] sm:$0xff]  ;;  %v642_v16 = vmul.f32 %v514_v13, %v386_v12 }
  0xf2   : > { %v493_v19 = vld [vmem:[#allocation3 + $0x180] sm:$0xff] }
  0xf3   : > { %v621_v21 = vmul.f32 %v493_v19, %v365_v18  ;;  %v388_v18 = vld [vmem:[#allocation2 + $0x238] sm:$0xff]  ;;  %v401_v12 = vld [vmem:[#allocation2 + $0x2a0] sm:$0xff] }
  0xf4   : > { %v516_v19 = vld [vmem:[#allocation3 + $0x238] sm:$0xff]  ;;  %v529_v13 = vld [vmem:[#allocation3 + $0x2a0] sm:$0xff] }
  0xf5   : > { %759 = vadd.xlane.f32.xlu1 %v602_v24  ;;  %757 = vadd.xlane.f32.xlu0 %v601_v25  ;;  %v367_v24 = vld [vmem:[#allocation2 + $0x190] sm:$0xff]  ;;  %v644_v22 = vmul.f32 %v516_v19, %v388_v18  ;;  %v532_v18 = vld [vmem:[#allocation3 + $0x2b8] sm:$0xff] }
  0xf6   : > { %v495_v25 = vld [vmem:[#allocation3 + $0x190] sm:$0xff] }
  0xf7   : > { %v623_v27 = vmul.f32 %v495_v25, %v367_v24  ;;  %v390_v25 = vld [vmem:[#allocation2 + $0x248] sm:$0xff] }
  0xf9   : > { %763 = vadd.xlane.f32.xlu1 %v604_v30  ;;  %761 = vadd.xlane.f32.xlu0 %v603_v31  ;;  %v369_v30 = vld [vmem:[#allocation2 + $0x1a0] sm:$0xff] }
  0xfa   : > { %v497_v31 = vld [vmem:[#allocation3 + $0x1a0] sm:$0xff] }
  0xfb   : > { %v625_v33 = vmul.f32 %v497_v31, %v369_v30 }
  0xfd   : > { %767 = vadd.xlane.f32.xlu1 %v606_v36  ;;  %765 = vadd.xlane.f32.xlu0 %v605_v37  ;;  %v371_v36 = vld [vmem:[#allocation2 + $0x1b0] sm:$0xff] }
  0xfe   : > { %v499_v37 = vld [vmem:[#allocation3 + $0x1b0] sm:$0xff] }
  0xff   : > { %v627_v39 = vmul.f32 %v499_v37, %v371_v36  ;;  %v391_v36 = vld [vmem:[#allocation2 + $0x250] sm:$0xff] }
 0x100   : > { %v519_v37 = vld [vmem:[#allocation3 + $0x250] sm:$0xff] }
 0x101   : > { %771 = vadd.xlane.f32.xlu1 %v608_v42  ;;  %769 = vadd.xlane.f32.xlu0 %v607_v43  ;;  %v373_v42 = vld [vmem:[#allocation2 + $0x1c0] sm:$0xff]  ;;  %v647_v40 = vmul.f32 %v519_v37, %v391_v36  ;;  %v408_v37 = vld [vmem:[#allocation2 + $0x2d8] sm:$0xff] }
 0x102   : > { %v501_v43 = vld [vmem:[#allocation3 + $0x1c0] sm:$0xff] }
 0x103   : > { %v629_v45 = vmul.f32 %v501_v43, %v373_v42  ;;  %v522_v42 = vld [vmem:[#allocation3 + $0x268] sm:$0xff] }
 0x104   : > { %v650_v46 = vmul.f32 %v522_v42, %v394_v41  ;;  %v407_v41 = vld [vmem:[#allocation2 + $0x2d0] sm:$0xff] }
 0x105   : > { %775 = vadd.xlane.f32.xlu1 %v610_v48  ;;  %773 = vadd.xlane.f32.xlu0 %v609_v49  ;;  %v375_v48 = vld [vmem:[#allocation2 + $0x1d0] sm:$0xff] }
 0x106   : > { %v503_v49 = vld [vmem:[#allocation3 + $0x1d0] sm:$0xff] }
 0x107   : > { %v631_v51 = vmul.f32 %v503_v49, %v375_v48  ;;  %v396_v49 = vld [vmem:[#allocation2 + $0x278] sm:$0xff]  ;;  %v535_v42 = vld [vmem:[#allocation3 + $0x2d0] sm:$0xff] }
 0x109   : > { %779 = vadd.xlane.f32.xlu1 %v612_v54  ;;  %777 = vadd.xlane.f32.xlu0 %v611_v55  ;;  %v377_v54 = vld [vmem:[#allocation2 + $0x1e0] sm:$0xff] }
 0x10a   : > { %v505_v55 = vld [vmem:[#allocation3 + $0x1e0] sm:$0xff] }
 0x10b   : > { %v633_v57 = vmul.f32 %v505_v55, %v377_v54 }
 0x10d   : > { %783 = vadd.xlane.f32.xlu1 %v614_v60  ;;  %781 = vadd.xlane.f32.xlu0 %v613_v61  ;;  %v379_v60 = vld [vmem:[#allocation2 + $0x1f0] sm:$0xff] }
 0x10e   : > { %v507_v61 = vld [vmem:[#allocation3 + $0x1f0] sm:$0xff] }
 0x10f   : > { %v635_v63 = vmul.f32 %v507_v61, %v379_v60  ;;  %v397_v60 = vld [vmem:[#allocation2 + $0x280] sm:$0xff] }
 0x110   : > { %v525_v61 = vld [vmem:[#allocation3 + $0x280] sm:$0xff] }
 0x111   : > { %787 = vadd.xlane.f32.xlu1 %v616_v2  ;;  %785 = vadd.xlane.f32.xlu0 %v615_v3  ;;  %v381_v2 = vld [vmem:[#allocation2 + $0x200] sm:$0xff]  ;;  %v653_v0 = vmul.f32 %v525_v61, %v397_v60  ;;  %v540_v60 = vld [vmem:[#allocation3 + $0x2f8] sm:$0xff] }
 0x112   : > { %v509_v3 = vld [vmem:[#allocation3 + $0x200] sm:$0xff] }
 0x113   : > { %v637_v5 = vmul.f32 %v509_v3, %v381_v2  ;;  %v528_v2 = vld [vmem:[#allocation3 + $0x298] sm:$0xff] }
 0x114   : > { %v656_v6 = vmul.f32 %v528_v2, %v400_v1 }
 0x115   : > { %791 = vadd.xlane.f32.xlu1 %v618_v8  ;;  %789 = vadd.xlane.f32.xlu0 %v617_v9  ;;  %v383_v8 = vld [vmem:[#allocation2 + $0x210] sm:$0xff] }
 0x116   : > { %v511_v9 = vld [vmem:[#allocation3 + $0x210] sm:$0xff] }
 0x117   : > { %v639_v11 = vmul.f32 %v511_v9, %v383_v8  ;;  %v402_v9 = vld [vmem:[#allocation2 + $0x2a8] sm:$0xff] }
 0x119   : > { %795 = vadd.xlane.f32.xlu1 %v620_v14  ;;  %793 = vadd.xlane.f32.xlu0 %v619_v15  ;;  %v385_v14 = vld [vmem:[#allocation2 + $0x220] sm:$0xff] }
 0x11a   : > { %v513_v15 = vld [vmem:[#allocation3 + $0x220] sm:$0xff] }
 0x11b   : > { %v641_v17 = vmul.f32 %v513_v15, %v385_v14 }
 0x11d   : > { %799 = vadd.xlane.f32.xlu1 %v622_v20  ;;  %797 = vadd.xlane.f32.xlu0 %v621_v21  ;;  %v387_v20 = vld [vmem:[#allocation2 + $0x230] sm:$0xff] }
 0x11e   : > { %v515_v21 = vld [vmem:[#allocation3 + $0x230] sm:$0xff] }
 0x11f   : > { %v643_v24 = vmul.f32 %v515_v21, %v387_v20  ;;  %v403_v20 = vld [vmem:[#allocation2 + $0x2b0] sm:$0xff] }
 0x120   : > { %v531_v21 = vld [vmem:[#allocation3 + $0x2b0] sm:$0xff] }
 0x121   : > { %803 = vadd.xlane.f32.xlu1 %v624_v26  ;;  %801 = vadd.xlane.f32.xlu0 %v623_v27  ;;  %v518_v26 = vld [vmem:[#allocation3 + $0x248] sm:$0xff] }
 0x122   : > { %v646_v30 = vmul.f32 %v518_v26, %v390_v25  ;;  %v659_v25 = vmul.f32 %v531_v21, %v403_v20  ;;  %v406_v26 = vld [vmem:[#allocation2 + $0x2c8] sm:$0xff]  ;;  %v415_v20 = vld [vmem:[#allocation2 + $0x310] sm:$0xff] }
 0x123   : > { %v543_v21 = vld [vmem:[#allocation3 + $0x310] sm:$0xff] }
 0x125   : > { %807 = vadd.xlane.f32.xlu1 %v626_v32  ;;  %805 = vadd.xlane.f32.xlu0 %v625_v33  ;;  %v645_v32 = vmul.f32 %v517_v29, %v389_v28  ;;  %v392_v33 = vld [vmem:[#allocation2 + $0x258] sm:$0xff]  ;;  %v534_v28 = vld [vmem:[#allocation3 + $0x2c8] sm:$0xff] }
 0x129   : > { %811 = vadd.xlane.f32.xlu1 %v628_v38  ;;  %809 = vadd.xlane.f32.xlu0 %v627_v39  ;;  %v648_v38 = vmul.f32 %v520_v34, %v392_v33  ;;  %v662_v33 = vmul.f32 %v534_v28, %v406_v26  ;;  %v671_v26 = vmul.f32 %v543_v21, %v415_v20  ;;  %v418_v28 = vld [vmem:[#allocation2 + $0x328] sm:$0xff] }
 0x12a   : > { %v426_v21 = vld [vmem:[#allocation2 + $0x368] sm:$0xff] }
 0x12d   : > { %815 = vadd.xlane.f32.xlu1 %v630_v44  ;;  %813 = vadd.xlane.f32.xlu0 %v629_v45  ;;  %v393_v44 = vld [vmem:[#allocation2 + $0x260] sm:$0xff] }
 0x12e   : > { %v521_v45 = vld [vmem:[#allocation3 + $0x260] sm:$0xff] }
 0x12f   : > { %v649_v48 = vmul.f32 %v521_v45, %v393_v44 }
 0x131   : > { %819 = vadd.xlane.f32.xlu1 %v632_v50  ;;  %817 = vadd.xlane.f32.xlu0 %v631_v51  ;;  %v524_v50 = vld [vmem:[#allocation3 + $0x278] sm:$0xff] }
 0x132   : > { %v652_v54 = vmul.f32 %v524_v50, %v396_v49  ;;  %v538_v49 = vld [vmem:[#allocation3 + $0x2e8] sm:$0xff] }
 0x135   : > { %823 = vadd.xlane.f32.xlu1 %v634_v56  ;;  %821 = vadd.xlane.f32.xlu0 %v633_v57  ;;  %v651_v56 = vmul.f32 %v523_v53, %v395_v52  ;;  %v398_v57 = vld [vmem:[#allocation2 + $0x288] sm:$0xff]  ;;  %v409_v52 = vld [vmem:[#allocation2 + $0x2e0] sm:$0xff] }
 0x136   : > { %v537_v53 = vld [vmem:[#allocation3 + $0x2e0] sm:$0xff] }
 0x139   : > { %827 = vadd.xlane.f32.xlu1 %v636_v62  ;;  %825 = vadd.xlane.f32.xlu0 %v635_v63  ;;  %v654_v62 = vmul.f32 %v526_v58, %v398_v57  ;;  %v665_v57 = vmul.f32 %v537_v53, %v409_v52  ;;  %v412_v58 = vld [vmem:[#allocation2 + $0x2f8] sm:$0xff] }
 0x13a   : > { %v668_v1 = vmul.f32 %v540_v60, %v412_v58  ;;  %v550_v58 = vld [vmem:[#allocation3 + $0x348] sm:$0xff] }
 0x13d   : > { %831 = vadd.xlane.f32.xlu1 %v638_v4  ;;  %829 = vadd.xlane.f32.xlu0 %v637_v5  ;;  %v399_v4 = vld [vmem:[#allocation2 + $0x290] sm:$0xff] }
 0x13e   : > { %v527_v5 = vld [vmem:[#allocation3 + $0x290] sm:$0xff] }
 0x13f   : > { %v655_v8 = vmul.f32 %v527_v5, %v399_v4  ;;  %v414_v5 = vld [vmem:[#allocation2 + $0x308] sm:$0xff] }
 0x141   : > { %835 = vadd.xlane.f32.xlu1 %v640_v10  ;;  %833 = vadd.xlane.f32.xlu0 %v639_v11  ;;  %v530_v10 = vld [vmem:[#allocation3 + $0x2a8] sm:$0xff] }
 0x142   : > { %v658_v14 = vmul.f32 %v530_v10, %v402_v9  ;;  %v413_v9 = vld [vmem:[#allocation2 + $0x300] sm:$0xff] }
 0x143   : > { %v541_v10 = vld [vmem:[#allocation3 + $0x300] sm:$0xff] }
 0x145   : > { %839 = vadd.xlane.f32.xlu1 %v642_v16  ;;  %837 = vadd.xlane.f32.xlu0 %v641_v17  ;;  %v657_v16 = vmul.f32 %v529_v13, %v401_v12  ;;  %v404_v17 = vld [vmem:[#allocation2 + $0x2b8] sm:$0xff] }
 0x146   : > { %v5322_v23 = vpop.xlane.xlu1 %705  ;;  %v5324_v27 = vpop.xlane.xlu0 %701 }
 0x149   : > { %843 = vadd.xlane.f32.xlu1 %v644_v22  ;;  %841 = vadd.xlane.f32.xlu0 %v643_v24  ;;  %v660_v22 = vmul.f32 %v532_v18, %v404_v17  ;;  %v544_v17 = vld [vmem:[#allocation3 + $0x318] sm:$0xff] }
 0x14a   : > { %v5326_v31 = vpop.xlane.xlu1 %707  ;;  %v5328_v35 = vpop.xlane.xlu0 %703 }
 0x14d   : > { %847 = vadd.xlane.f32.xlu1 %v646_v30  ;;  %845 = vadd.xlane.f32.xlu0 %v645_v32  ;;  %v405_v30 = vld [vmem:[#allocation2 + $0x2c0] sm:$0xff] }
 0x14e   : > { %v5330_v39 = vpop.xlane.xlu1 %711  ;;  %v5332_v43 = vpop.xlane.xlu0 %709  ;;  %v533_v32 = vld [vmem:[#allocation3 + $0x2c0] sm:$0xff] }
 0x14f   : > { %v661_v36 = vmul.f32 %v533_v32, %v405_v30  ;;  %v546_v30 = vld [vmem:[#allocation3 + $0x328] sm:$0xff] }
 0x151   : > { %851 = vadd.xlane.f32.xlu1 %v648_v38  ;;  %849 = vadd.xlane.f32.xlu0 %v647_v40  ;;  %v536_v38 = vld [vmem:[#allocation3 + $0x2d8] sm:$0xff] }
 0x152   : > { %v5334_v47 = vpop.xlane.xlu1 %715  ;;  %v5336_v51 = vpop.xlane.xlu0 %713  ;;  %v664_v44 = vmul.f32 %v536_v38, %v408_v37  ;;  %v674_v37 = vmul.f32 %v546_v30, %v418_v28  ;;  %v425_v28 = vld [vmem:[#allocation2 + $0x360] sm:$0xff] }
 0x153   : > { %v553_v30 = vld [vmem:[#allocation3 + $0x360] sm:$0xff] }
 0x155   : > { %855 = vadd.xlane.f32.xlu1 %v650_v46  ;;  %853 = vadd.xlane.f32.xlu0 %v649_v48  ;;  %v663_v46 = vmul.f32 %v535_v42, %v407_v41  ;;  %v410_v48 = vld [vmem:[#allocation2 + $0x2e8] sm:$0xff]  ;;  %v420_v42 = vld [vmem:[#allocation2 + $0x338] sm:$0xff] }
 0x156   : > { %v5338_v55 = vpop.xlane.xlu1 %719  ;;  %v5340_v59 = vpop.xlane.xlu0 %717 }
 0x159   : > { %859 = vadd.xlane.f32.xlu1 %v652_v54  ;;  %857 = vadd.xlane.f32.xlu0 %v651_v56  ;;  %v666_v54 = vmul.f32 %v538_v49, %v410_v48  ;;  %v419_v48 = vld [vmem:[#allocation2 + $0x330] sm:$0xff] }
 0x15a   : > { %v5342_v63 = vpop.xlane.xlu1 %723  ;;  %v5344_v3 = vpop.xlane.xlu0 %721  ;;  %v547_v49 = vld [vmem:[#allocation3 + $0x330] sm:$0xff] }
 0x15d   : > { %863 = vadd.xlane.f32.xlu1 %v654_v62  ;;  %861 = vadd.xlane.f32.xlu0 %v653_v0  ;;  %v411_v62 = vld [vmem:[#allocation2 + $0x2f0] sm:$0xff] }
 0x15e   : > { %v5346_v7 = vpop.xlane.xlu1 %727  ;;  %v5348_v11 = vpop.xlane.xlu0 %725  ;;  %v539_v0 = vld [vmem:[#allocation3 + $0x2f0] sm:$0xff] }
 0x15f   : > { %v667_v4 = vmul.f32 %v539_v0, %v411_v62  ;;  %v421_v62 = vld [vmem:[#allocation2 + $0x340] sm:$0xff] }
 0x160   : > { %v549_v0 = vld [vmem:[#allocation3 + $0x340] sm:$0xff] }
 0x161   : > { %867 = vadd.xlane.f32.xlu1 %v656_v6  ;;  %865 = vadd.xlane.f32.xlu0 %v655_v8  ;;  %v542_v6 = vld [vmem:[#allocation3 + $0x308] sm:$0xff] }
 0x162   : > { %v5350_v15 = vpop.xlane.xlu1 %731  ;;  %v5352_v19 = vpop.xlane.xlu0 %729  ;;  %v670_v12 = vmul.f32 %v542_v6, %v414_v5  ;;  %v677_v5 = vmul.f32 %v549_v0, %v421_v62  ;;  %v424_v6 = vld [vmem:[#allocation2 + $0x358] sm:$0xff]  ;;  %v558_v62 = vld [vmem:[#allocation3 + $0x388] sm:$0xff] }
 0x163   : > { %7428 = vst [vmem:[#allocation30_spill] sm:$0xff] %v5350_v15  ;;  %7429 = vst [vmem:[#allocation31_spill] sm:$0xff] %v5352_v19 }
 0x165   : > { %871 = vadd.xlane.f32.xlu1 %v658_v14  ;;  %869 = vadd.xlane.f32.xlu0 %v657_v16  ;;  %v669_v14 = vmul.f32 %v541_v10, %v413_v9  ;;  %v416_v16 = vld [vmem:[#allocation2 + $0x318] sm:$0xff] }
 0x166   : > { %v5354_v24 = vpop.xlane.xlu1 %735  ;;  %v5356_v29 = vpop.xlane.xlu0 %733  ;;  %v552_v9 = vld [vmem:[#allocation3 + $0x358] sm:$0xff] }
 0x167   : > { %7430 = vst [vmem:[#allocation32_spill] sm:$0xff] %v5354_v24  ;;  %7431 = vst [vmem:[#allocation33_spill] sm:$0xff] %v5356_v29 }
 0x169   : > { %875 = vadd.xlane.f32.xlu1 %v660_v22  ;;  %873 = vadd.xlane.f32.xlu0 %v659_v25  ;;  %v672_v22 = vmul.f32 %v544_v17, %v416_v16  ;;  %v680_v16 = vmul.f32 %v552_v9, %v424_v6 }
 0x16a   : > { %v5358_v34 = vpop.xlane.xlu1 %739  ;;  %v5360_v40 = vpop.xlane.xlu0 %737 }
 0x16b   : > { %7432 = vst [vmem:[#allocation34_spill] sm:$0xff] %v5358_v34  ;;  %7433 = vst [vmem:[#allocation35_spill] sm:$0xff] %v5360_v40 }
 0x16d   : > { %879 = vadd.xlane.f32.xlu1 %v662_v33  ;;  %877 = vadd.xlane.f32.xlu0 %v661_v36  ;;  %v417_v33 = vld [vmem:[#allocation2 + $0x320] sm:$0xff] }
 0x16e   : > { %v5362_v45 = vpop.xlane.xlu1 %743  ;;  %v5364_v50 = vpop.xlane.xlu0 %741  ;;  %v545_v36 = vld [vmem:[#allocation3 + $0x320] sm:$0xff] }
 0x16f   : > { %7434 = vst [vmem:[#allocation36_spill] sm:$0xff] %v5362_v45  ;;  %7435 = vst [vmem:[#allocation37_spill] sm:$0xff] %v5364_v50  ;;  %v673_v41 = vmul.f32 %v545_v36, %v417_v33 }
 0x171   : > { %883 = vadd.xlane.f32.xlu1 %v664_v44  ;;  %881 = vadd.xlane.f32.xlu0 %v663_v46  ;;  %v548_v44 = vld [vmem:[#allocation3 + $0x338] sm:$0xff] }
 0x172   : > { %v5366_v56 = vpop.xlane.xlu1 %747  ;;  %v5368_v61 = vpop.xlane.xlu0 %745  ;;  %v676_v52 = vmul.f32 %v548_v44, %v420_v42  ;;  %v556_v42 = vld [vmem:[#allocation3 + $0x378] sm:$0xff] }
 0x173   : > { %7436 = vst [vmem:[#allocation38_spill] sm:$0xff] %v5366_v56  ;;  %7437 = vst [vmem:[#allocation39_spill] sm:$0xff] %v5368_v61 }
 0x175   : > { %887 = vadd.xlane.f32.xlu1 %v666_v54  ;;  %885 = vadd.xlane.f32.xlu0 %v665_v57  ;;  %v675_v54 = vmul.f32 %v547_v49, %v419_v48  ;;  %v422_v57 = vld [vmem:[#allocation2 + $0x348] sm:$0xff]  ;;  %v427_v48 = vld [vmem:[#allocation2 + $0x370] sm:$0xff] }
 0x176   : > { %v5370_v2 = vpop.xlane.xlu1 %751  ;;  %v5372_v8 = vpop.xlane.xlu0 %749  ;;  %v555_v49 = vld [vmem:[#allocation3 + $0x370] sm:$0xff] }
 0x177   : > { %7438 = vst [vmem:[#allocation40_spill] sm:$0xff] %v5370_v2  ;;  %7439 = vst [vmem:[#allocation41_spill] sm:$0xff] %v5372_v8 }
 0x179   : > { %891 = vadd.xlane.f32.xlu1 %v668_v1  ;;  %889 = vadd.xlane.f32.xlu0 %v667_v4  ;;  %v678_v1 = vmul.f32 %v550_v58, %v422_v57  ;;  %v683_v57 = vmul.f32 %v555_v49, %v427_v48  ;;  %v430_v58 = vld [vmem:[#allocation2 + $0x388] sm:$0xff]  ;;  %v433_v48 = vld [vmem:[#allocation2 + $0x3a0] sm:$0xff] }
 0x17a   : > { %v5374_v13 = vpop.xlane.xlu1 %755  ;;  %v5376_v18 = vpop.xlane.xlu0 %753  ;;  %v686_v6 = vmul.f32 %v558_v62, %v430_v58  ;;  %v561_v49 = vld [vmem:[#allocation3 + $0x3a0] sm:$0xff]  ;;  %v436_v62 = vld [vmem:[#allocation2 + $0x3b8] sm:$0xff] }
 0x17b   : > { %7440 = vst [vmem:[#allocation42_spill] sm:$0xff] %v5374_v13  ;;  %7441 = vst [vmem:[#allocation43_spill] sm:$0xff] %v5376_v18  ;;  %v689_v58 = vmul.f32 %v561_v49, %v433_v48 }
 0x17d   : > { %895 = vadd.xlane.f32.xlu1 %v670_v12  ;;  %893 = vadd.xlane.f32.xlu0 %v669_v14  ;;  %v423_v12 = vld [vmem:[#allocation2 + $0x350] sm:$0xff] }
 0x17e   : > { %v5378_v25 = vpop.xlane.xlu1 %759  ;;  %v5380_v32 = vpop.xlane.xlu0 %757  ;;  %v551_v14 = vld [vmem:[#allocation3 + $0x350] sm:$0xff] }
 0x17f   : > { %7442 = vst [vmem:[#allocation44_spill] sm:$0xff] %v5378_v25  ;;  %7443 = vst [vmem:[#allocation45_spill] sm:$0xff] %v5380_v32  ;;  %v679_v20 = vmul.f32 %v551_v14, %v423_v12  ;;  %v432_v14 = vld [vmem:[#allocation2 + $0x398] sm:$0xff] }
 0x181   : > { %899 = vadd.xlane.f32.xlu1 %v672_v22  ;;  %897 = vadd.xlane.f32.xlu0 %v671_v26  ;;  %v554_v22 = vld [vmem:[#allocation3 + $0x368] sm:$0xff] }
 0x182   : > { %v5382_v38 = vpop.xlane.xlu1 %763  ;;  %v5384_v46 = vpop.xlane.xlu0 %761  ;;  %v682_v33 = vmul.f32 %v554_v22, %v426_v21  ;;  %v431_v21 = vld [vmem:[#allocation2 + $0x390] sm:$0xff] }
 0x183   : > { %7444 = vst [vmem:[#allocation46_spill] sm:$0xff] %v5382_v38  ;;  %7445 = vst [vmem:[#allocation47_spill] sm:$0xff] %v5384_v46  ;;  %v559_v22 = vld [vmem:[#allocation3 + $0x390] sm:$0xff] }
 0x185   : > { %903 = vadd.xlane.f32.xlu1 %v674_v37  ;;  %901 = vadd.xlane.f32.xlu0 %v673_v41  ;;  %v681_v37 = vmul.f32 %v553_v30, %v425_v28  ;;  %v428_v41 = vld [vmem:[#allocation2 + $0x378] sm:$0xff] }
 0x186   : > { %v5386_v53 = vpop.xlane.xlu1 %767  ;;  %v5388_v60 = vpop.xlane.xlu0 %765 }
 0x187   : > { %7446 = vst [vmem:[#allocation48_spill] sm:$0xff] %v5386_v53  ;;  %7447 = vst [vmem:[#allocation49_spill] sm:$0xff] %v5388_v60 }
 0x189   : > { %907 = vadd.xlane.f32.xlu1 %v676_v52  ;;  %905 = vadd.xlane.f32.xlu0 %v675_v54  ;;  %v684_v52 = vmul.f32 %v556_v42, %v428_v41  ;;  %v562_v41 = vld [vmem:[#allocation3 + $0x3a8] sm:$0xff] }
 0x18a   : > { %v5390_v4 = vpop.xlane.xlu1 %771  ;;  %v5392_v10 = vpop.xlane.xlu0 %769 }
 0x18b   : > { %7448 = vst [vmem:[#allocation50_spill] sm:$0xff] %v5390_v4  ;;  %7449 = vst [vmem:[#allocation51_spill] sm:$0xff] %v5392_v10 }
 0x18d   : > { %911 = vadd.xlane.f32.xlu1 %v678_v1  ;;  %909 = vadd.xlane.f32.xlu0 %v677_v5  ;;  %v429_v1 = vld [vmem:[#allocation2 + $0x380] sm:$0xff] }
 0x18e   : > { %v5394_v17 = vpop.xlane.xlu1 %775  ;;  %v5396_v26 = vpop.xlane.xlu0 %773  ;;  %v557_v5 = vld [vmem:[#allocation3 + $0x380] sm:$0xff] }
 0x18f   : > { %7450 = vst [vmem:[#allocation52_spill] sm:$0xff] %v5394_v17  ;;  %7451 = vst [vmem:[#allocation53_spill] sm:$0xff] %v5396_v26  ;;  %v685_v12 = vmul.f32 %v557_v5, %v429_v1  ;;  %v564_v1 = vld [vmem:[#allocation3 + $0x3b8] sm:$0xff] }
 0x191   : > { %915 = vadd.xlane.f32.xlu1 %v680_v16  ;;  %913 = vadd.xlane.f32.xlu0 %v679_v20  ;;  %v560_v16 = vld [vmem:[#allocation3 + $0x398] sm:$0xff] }
 0x192   : > { %v5398_v36 = vpop.xlane.xlu1 %779  ;;  %v5400_v44 = vpop.xlane.xlu0 %777  ;;  %v688_v28 = vmul.f32 %v560_v16, %v432_v14  ;;  %v692_v14 = vmul.f32 %v564_v1, %v436_v62  ;;  %v567_v62 = vld [vmem:[#allocation3 + $0x3d0] sm:$0xff] }
 0x193   : > { %7452 = vst [vmem:[#allocation54_spill] sm:$0xff] %v5398_v36  ;;  %7453 = vst [vmem:[#allocation55_spill] sm:$0xff] %v5400_v44 }
 0x195   : > { %919 = vadd.xlane.f32.xlu1 %v682_v33  ;;  %917 = vadd.xlane.f32.xlu0 %v681_v37  ;;  %v687_v33 = vmul.f32 %v559_v22, %v431_v21  ;;  %v434_v37 = vld [vmem:[#allocation2 + $0x3a8] sm:$0xff] }
 0x196   : > { %v5402_v54 = vpop.xlane.xlu1 %783  ;;  %v5404_v0 = vpop.xlane.xlu0 %781  ;;  %v438_v22 = vld [vmem:[#allocation2 + $0x3c8] sm:$0xff] }
 0x197   : > { %7454 = vst [vmem:[#allocation56_spill] sm:$0xff] %v5402_v54  ;;  %7455 = vst [vmem:[#allocation57_spill] sm:$0xff] %v5404_v0 }
 0x199   : > { %923 = vadd.xlane.f32.xlu1 %v684_v52  ;;  %921 = vadd.xlane.f32.xlu0 %v683_v57  ;;  %v690_v52 = vmul.f32 %v562_v41, %v434_v37  ;;  %v565_v37 = vld [vmem:[#allocation3 + $0x3c0] sm:$0xff] }
 0x19a   : > { %v5406_v9 = vpop.xlane.xlu1 %787  ;;  %v5408_v20 = vpop.xlane.xlu0 %785 }
 0x19b   : > { %7456 = vst [vmem:[#allocation58_spill] sm:$0xff] %v5406_v9  ;;  %7457 = vst [vmem:[#allocation59_spill] sm:$0xff] %v5408_v20 }
 0x19d   : > { %927 = vadd.xlane.f32.xlu1 %v686_v6  ;;  %925 = vadd.xlane.f32.xlu0 %v685_v12  ;;  %v435_v6 = vld [vmem:[#allocation2 + $0x3b0] sm:$0xff] }
 0x19e   : > { %v5410_v30 = vpop.xlane.xlu1 %791  ;;  %v5412_v42 = vpop.xlane.xlu0 %789  ;;  %v563_v12 = vld [vmem:[#allocation3 + $0x3b0] sm:$0xff] }
 0x19f   : > { %7458 = vst [vmem:[#allocation60_spill] sm:$0xff] %v5410_v30  ;;  %7459 = vst [vmem:[#allocation61_spill] sm:$0xff] %v5412_v42  ;;  %v691_v21 = vmul.f32 %v563_v12, %v435_v6  ;;  %v566_v42 = vld [vmem:[#allocation3 + $0x3c8] sm:$0xff] }
 0x1a0   : > { %v694_v41 = vmul.f32 %v566_v42, %v438_v22  ;;  %v441_v42 = vld [vmem:[#allocation2 + $0x3e0] sm:$0xff] }
 0x1a1   : > { %931 = vadd.xlane.f32.xlu1 %v688_v28  ;;  %929 = vadd.xlane.f32.xlu0 %v687_v33  ;;  %v437_v33 = vld [vmem:[#allocation2 + $0x3c0] sm:$0xff] }
 0x1a2   : > { %v5414_v57 = vpop.xlane.xlu1 %795  ;;  %v5416_v5 = vpop.xlane.xlu0 %793  ;;  %v693_v49 = vmul.f32 %v565_v37, %v437_v33 }
 0x1a3   : > { %7460 = vst [vmem:[#allocation62_spill] sm:$0xff] %v5414_v57  ;;  %7461 = vst [vmem:[#allocation63_spill] sm:$0xff] %v5416_v5  ;;  %v440_v5 = vld [vmem:[#allocation2 + $0x3d8] sm:$0xff] }
 0x1a4   : > { %v568_v57 = vld [vmem:[#allocation3 + $0x3d8] sm:$0xff] }
 0x1a5   : > { %935 = vadd.xlane.f32.xlu1 %v690_v52  ;;  %933 = vadd.xlane.f32.xlu0 %v689_v58  ;;  %v439_v58 = vld [vmem:[#allocation2 + $0x3d0] sm:$0xff]  ;;  %v696_v1 = vmul.f32 %v568_v57, %v440_v5 }
 0x1a6   : > { %v5418_v16 = vpop.xlane.xlu1 %799  ;;  %v5420_v28 = vpop.xlane.xlu0 %797  ;;  %v695_v12 = vmul.f32 %v567_v62, %v439_v58  ;;  %v443_v57 = vld [vmem:[#allocation2 + $0x3f0] sm:$0xff] }
 0x1a7   : > { %7462 = vst [vmem:[#allocation64_spill] sm:$0xff] %v5418_v16  ;;  %7463 = vst [vmem:[#allocation65_spill] sm:$0xff] %v5420_v28  ;;  %v442_v28 = vld [vmem:[#allocation2 + $0x3e8] sm:$0xff]  ;;  %v571_v5 = vld [vmem:[#allocation3 + $0x3f0] sm:$0xff] }
 0x1a8   : > { %v570_v16 = vld [vmem:[#allocation3 + $0x3e8] sm:$0xff]  ;;  %v699_v62 = vmul.f32 %v571_v5, %v443_v57 }
 0x1a9   : > { %939 = vadd.xlane.f32.xlu1 %v692_v14  ;;  %937 = vadd.xlane.f32.xlu0 %v691_v21  ;;  %v569_v21 = vld [vmem:[#allocation3 + $0x3e0] sm:$0xff]  ;;  %v698_v22 = vmul.f32 %v570_v16, %v442_v28  ;;  %v7406_v28 = vlaneseq }
 0x1aa   : > { %v5422_v48 = vpop.xlane.xlu1 %803  ;;  %v5424_v52 = vpop.xlane.xlu0 %801  ;;  %v697_v37 = vmul.f32 %v569_v21, %v441_v42 }
 0x1ab   : > { %7464 = vst [vmem:[#allocation66_spill] sm:$0xff] %v5422_v48  ;;  %7465 = vst [vmem:[#allocation67_spill] sm:$0xff] %v5424_v52  ;;  %v444_v52 = vld [vmem:[#allocation2 + $0x3f8] sm:$0xff]  ;;  %v5445_v42 = vshrl.u32 %v7406_v28, 7 }
 0x1ac   : > { %v572_v48 = vld [vmem:[#allocation3 + $0x3f8] sm:$0xff] }
 0x1ad   : > { %943 = vadd.xlane.f32.xlu1 %v694_v41  ;;  %941 = vadd.xlane.f32.xlu0 %v693_v49  ;;  %v700_v49 = vmul.f32 %v572_v48, %v444_v52  ;;  %7475 = vst [vmem:[#allocation77_spill] sm:$0xff] %v5445_v42  ;;  %v5452_v21 = vsub.s32 0, %v5445_v42  ;;  %v5643_v44 = vsub.s32 5, %v5445_v42 }
 0x1ae   : > { %v5426_v6 = vpop.xlane.xlu1 %807  ;;  %v5428_v14 = vpop.xlane.xlu0 %805 }
 0x1af   : > { %7466 = vst [vmem:[#allocation68_spill] sm:$0xff] %v5426_v6  ;;  %7467 = vst [vmem:[#allocation69_spill] sm:$0xff] %v5428_v14 }
 0x1b1   : > { %947 = vadd.xlane.f32.xlu1 %v696_v1  ;;  %945 = vadd.xlane.f32.xlu0 %v695_v12 }
 0x1b2   : > { %v5430_v33 = vpop.xlane.xlu1 %811  ;;  %v5432_v41 = vpop.xlane.xlu0 %809 }
 0x1b3   : > { %7468 = vst [vmem:[#allocation70_spill] sm:$0xff] %v5430_v33  ;;  %7469 = vst [vmem:[#allocation71_spill] sm:$0xff] %v5432_v41 }
 0x1b5   : > { %951 = vadd.xlane.f32.xlu1 %v698_v22  ;;  %949 = vadd.xlane.f32.xlu0 %v697_v37  ;;  %v5458_v37 = vld [vmem:[%s225_s11] sm:$0xff]  ;;  %s7593_s11 = scalar_lea.vmem [#allocation13], %s5265_s10 }
 0x1b6   : > { %v5434_v58 = vpop.xlane.xlu1 %815  ;;  %v5436_v14 = vpop.xlane.xlu0 %813  ;;  %v968_v5 = vrot.slane %v5458_v37, %v5452_v21  ;;  %v1303_v17 = vrot.slane %v5458_v37, %v5643_v44 }
 0x1b7   : > { %7470 = vst [vmem:[#allocation72_spill] sm:$0xff] %v5434_v58  ;;  %7471 = vst [vmem:[#allocation73_spill] sm:$0xff] %v5436_v14 }
 0x1b9   : > { %955 = vadd.xlane.f32.xlu1 %v700_v49  ;;  %953 = vadd.xlane.f32.xlu0 %v699_v62 }
 0x1ba   : > { %v5438_v16 = vpop.xlane.xlu1 %819  ;;  %v5440_v1 = vpop.xlane.xlu0 %817 }
 0x1bb   : > { %7472 = vst [vmem:[#allocation74_spill] sm:$0xff] %v5438_v16  ;;  %7473 = vst [vmem:[#allocation75_spill] sm:$0xff] %v5440_v1 }
 0x1be   : > { %v5442_v12 = vpop.xlane.xlu1 %823  ;;  %v5447_v48 = vpop.xlane.xlu0 %821 }
 0x1bf   : > { %7474 = vst [vmem:[#allocation76_spill] sm:$0xff] %v5442_v12  ;;  %7476 = vst [vmem:[#allocation78_spill] sm:$0xff] %v5447_v48 }
 0x1c2   : > { %v5449_v52 = vpop.xlane.xlu1 %827  ;;  %v5454_v22 = vpop.xlane.xlu0 %825 }
 0x1c3   : > { %7477 = vst [vmem:[#allocation79_spill] sm:$0xff] %v5449_v52  ;;  %7478 = vst [vmem:[#allocation80_spill] sm:$0xff] %v5454_v22 }
 0x1c6   : > { %v5460_v57 = vpop.xlane.xlu1 %831  ;;  %v5464_v49 = vpop.xlane.xlu0 %829 }
 0x1c7   : > { %7479 = vst [vmem:[#allocation81_spill] sm:$0xff] %v5460_v57  ;;  %7480 = vst [vmem:[#allocation82_spill] sm:$0xff] %v5464_v49 }
 0x1ca   : > { %974 = vbcast.lane.b32.xlu1 %v968_v5, 264  ;;  %v5466_v62 = vpop.xlane.xlu1 %835  ;;  %v5468_v28 = vpop.xlane.xlu0 %833 }
 0x1cb   : > { %7481 = vst [vmem:[#allocation83_spill] sm:$0xff] %v5466_v62  ;;  %7482 = vst [vmem:[#allocation84_spill] sm:$0xff] %v5468_v28 }
 0x1ce   : > { %978 = vbcast.lane.b32.xlu1 %v968_v5, 272  ;;  %v5470_v52 = vpop.xlane.xlu1 %839  ;;  %v5472_v48 = vpop.xlane.xlu0 %837 }
 0x1cf   : > { %7483 = vst [vmem:[#allocation85_spill] sm:$0xff] %v5470_v52  ;;  %7484 = vst [vmem:[#allocation86_spill] sm:$0xff] %v5472_v48  ;;  %970 = vbcast.lane.b32.xlu0 %v968_v5, 256 }
 0x1d2   : > { %982 = vbcast.lane.b32.xlu1 %v968_v5, 280  ;;  %v5474_v22 = vpop.xlane.xlu1 %843  ;;  %v5476_v57 = vpop.xlane.xlu0 %841 }
 0x1d3   : > { %7485 = vst [vmem:[#allocation87_spill] sm:$0xff] %v5474_v22  ;;  %7486 = vst [vmem:[#allocation88_spill] sm:$0xff] %v5476_v57  ;;  %986 = vbcast.lane.b32.xlu0 %v968_v5, 288 }
 0x1d6   : > { %990 = vbcast.lane.b32.xlu1 %v968_v5, 296  ;;  %v5478_v12 = vpop.xlane.xlu1 %847  ;;  %v5480_v49 = vpop.xlane.xlu0 %845 }
 0x1d7   : > { %7487 = vst [vmem:[#allocation89_spill] sm:$0xff] %v5478_v12  ;;  %7488 = vst [vmem:[#allocation90_spill] sm:$0xff] %v5480_v49  ;;  %994 = vbcast.lane.b32.xlu0 %v968_v5, 304  ;;  %v5495_v49 = vsub.s32 1, %v5445_v42 }
 0x1da   : > { %998 = vbcast.lane.b32.xlu1 %v968_v5, 312  ;;  %v5482_v28 = vpop.xlane.xlu1 %851  ;;  %v5484_v62 = vpop.xlane.xlu0 %849 }
 0x1db   : > { %7489 = vst [vmem:[#allocation91_spill] sm:$0xff] %v5482_v28  ;;  %7490 = vst [vmem:[#allocation92_spill] sm:$0xff] %v5484_v62  ;;  %1002 = vbcast.lane.b32.xlu0 %v968_v5, 320 }
 0x1de   : > { %1006 = vbcast.lane.b32.xlu1 %v968_v5, 328  ;;  %v5486_v48 = vpop.xlane.xlu1 %855  ;;  %v5488_v52 = vpop.xlane.xlu0 %853 }
 0x1df   : > { %7491 = vst [vmem:[#allocation93_spill] sm:$0xff] %v5486_v48  ;;  %7492 = vst [vmem:[#allocation94_spill] sm:$0xff] %v5488_v52  ;;  %1010 = vbcast.lane.b32.xlu0 %v968_v5, 336  ;;  %v1035_v48 = vrot.slane %v5458_v37, %v5495_v49 }
 0x1e2   : > { %1014 = vbcast.lane.b32.xlu1 %v968_v5, 344  ;;  %v5490_v57 = vpop.xlane.xlu1 %859  ;;  %v5492_v22 = vpop.xlane.xlu0 %857 }
 0x1e3   : > { %7493 = vst [vmem:[#allocation95_spill] sm:$0xff] %v5490_v57  ;;  %7494 = vst [vmem:[#allocation96_spill] sm:$0xff] %v5492_v22  ;;  %1018 = vbcast.lane.b32.xlu0 %v968_v5, 352 }
 0x1e6   : > { %1022 = vbcast.lane.b32.xlu1 %v968_v5, 360  ;;  %v5497_v28 = vpop.xlane.xlu1 %863  ;;  %v5499_v62 = vpop.xlane.xlu0 %861 }
 0x1e7   : > { %7495 = vst [vmem:[#allocation97_spill] sm:$0xff] %v5497_v28  ;;  %7496 = vst [vmem:[#allocation98_spill] sm:$0xff] %v5499_v62  ;;  %1026 = vbcast.lane.b32.xlu0 %v968_v5, 368 }
 0x1ea   : > { %1030 = vbcast.lane.b32.xlu1 %v968_v5, 376  ;;  %v5503_v52 = vpop.xlane.xlu1 %867  ;;  %v5505_v12 = vpop.xlane.xlu0 %865 }
 0x1eb   : > { %7497 = vst [vmem:[#allocation99_spill] sm:$0xff] %v5503_v52  ;;  %7498 = vst [vmem:[#allocation100_spill] sm:$0xff] %v5505_v12  ;;  %1037 = vbcast.lane.b32.xlu0 %v1035_v48, 256 }
 0x1ee   : > { %1041 = vbcast.lane.b32.xlu1 %v1035_v48, 264  ;;  %v5507_v22 = vpop.xlane.xlu1 %871  ;;  %v5509_v57 = vpop.xlane.xlu0 %869 }
 0x1ef   : > { %7499 = vst [vmem:[#allocation101_spill] sm:$0xff] %v5507_v22  ;;  %7500 = vst [vmem:[#allocation102_spill] sm:$0xff] %v5509_v57  ;;  %1045 = vbcast.lane.b32.xlu0 %v1035_v48, 272 }
 0x1f2   : > { %1049 = vbcast.lane.b32.xlu1 %v1035_v48, 280  ;;  %v5511_v28 = vpop.xlane.xlu1 %875  ;;  %v5513_v62 = vpop.xlane.xlu0 %873 }
 0x1f3   : > { %7501 = vst [vmem:[#allocation103_spill] sm:$0xff] %v5511_v28  ;;  %7502 = vst [vmem:[#allocation104_spill] sm:$0xff] %v5513_v62  ;;  %1053 = vbcast.lane.b32.xlu0 %v1035_v48, 288 }
 0x1f6   : > { %1057 = vbcast.lane.b32.xlu1 %v1035_v48, 296  ;;  %v5515_v1 = vpop.xlane.xlu1 %879  ;;  %v5517_v5 = vpop.xlane.xlu0 %877 }
 0x1f7   : > { %7503 = vst [vmem:[#allocation105_spill] sm:$0xff] %v5515_v1  ;;  %7504 = vst [vmem:[#allocation106_spill] sm:$0xff] %v5517_v5  ;;  %1061 = vbcast.lane.b32.xlu0 %v1035_v48, 304  ;;  %v5532_v5 = vsub.s32 2, %v5445_v42 }
 0x1fa   : > { %1065 = vbcast.lane.b32.xlu1 %v1035_v48, 312  ;;  %v5519_v12 = vpop.xlane.xlu1 %883  ;;  %v5521_v52 = vpop.xlane.xlu0 %881 }
 0x1fb   : > { %7505 = vst [vmem:[#allocation107_spill] sm:$0xff] %v5519_v12  ;;  %7506 = vst [vmem:[#allocation108_spill] sm:$0xff] %v5521_v52  ;;  %1069 = vbcast.lane.b32.xlu0 %v1035_v48, 320 }
 0x1fe   : > { %1073 = vbcast.lane.b32.xlu1 %v1035_v48, 328  ;;  %v5523_v57 = vpop.xlane.xlu1 %887  ;;  %v5525_v22 = vpop.xlane.xlu0 %885 }
 0x1ff   : > { %7507 = vst [vmem:[#allocation109_spill] sm:$0xff] %v5523_v57  ;;  %7508 = vst [vmem:[#allocation110_spill] sm:$0xff] %v5525_v22  ;;  %1077 = vbcast.lane.b32.xlu0 %v1035_v48, 336  ;;  %v1102_v57 = vrot.slane %v5458_v37, %v5532_v5 }
 0x202   : > { %1081 = vbcast.lane.b32.xlu1 %v1035_v48, 344  ;;  %v5527_v62 = vpop.xlane.xlu1 %891  ;;  %v5529_v28 = vpop.xlane.xlu0 %889 }
 0x203   : > { %7509 = vst [vmem:[#allocation111_spill] sm:$0xff] %v5527_v62  ;;  %7510 = vst [vmem:[#allocation112_spill] sm:$0xff] %v5529_v28  ;;  %1085 = vbcast.lane.b32.xlu0 %v1035_v48, 352 }
 0x206   : > { %1089 = vbcast.lane.b32.xlu1 %v1035_v48, 360  ;;  %v5534_v12 = vpop.xlane.xlu1 %895  ;;  %v5536_v52 = vpop.xlane.xlu0 %893 }
 0x207   : > { %7511 = vst [vmem:[#allocation113_spill] sm:$0xff] %v5534_v12  ;;  %7512 = vst [vmem:[#allocation114_spill] sm:$0xff] %v5536_v52  ;;  %1093 = vbcast.lane.b32.xlu0 %v1035_v48, 368 }
 0x20a   : > { %1097 = vbcast.lane.b32.xlu1 %v1035_v48, 376  ;;  %v5540_v22 = vpop.xlane.xlu1 %899  ;;  %v5542_v1 = vpop.xlane.xlu0 %897 }
 0x20b   : > { %7513 = vst [vmem:[#allocation115_spill] sm:$0xff] %v5540_v22  ;;  %7514 = vst [vmem:[#allocation116_spill] sm:$0xff] %v5542_v1  ;;  %1104 = vbcast.lane.b32.xlu0 %v1102_v57, 256 }
 0x20e   : > { %1108 = vbcast.lane.b32.xlu1 %v1102_v57, 264  ;;  %v5544_v28 = vpop.xlane.xlu1 %903  ;;  %v5546_v62 = vpop.xlane.xlu0 %901 }
 0x20f   : > { %7515 = vst [vmem:[#allocation117_spill] sm:$0xff] %v5544_v28  ;;  %7516 = vst [vmem:[#allocation118_spill] sm:$0xff] %v5546_v62  ;;  %1112 = vbcast.lane.b32.xlu0 %v1102_v57, 272 }
 0x212   : > { %1116 = vbcast.lane.b32.xlu1 %v1102_v57, 280  ;;  %v5548_v12 = vpop.xlane.xlu1 %907  ;;  %v5550_v52 = vpop.xlane.xlu0 %905 }
 0x213   : > { %7517 = vst [vmem:[#allocation119_spill] sm:$0xff] %v5548_v12  ;;  %7518 = vst [vmem:[#allocation120_spill] sm:$0xff] %v5550_v52  ;;  %1120 = vbcast.lane.b32.xlu0 %v1102_v57, 288 }
 0x216   : > { %1124 = vbcast.lane.b32.xlu1 %v1102_v57, 296  ;;  %v5552_v16 = vpop.xlane.xlu1 %911  ;;  %v5554_v48 = vpop.xlane.xlu0 %909 }
 0x217   : > { %7519 = vst [vmem:[#allocation121_spill] sm:$0xff] %v5552_v16  ;;  %7520 = vst [vmem:[#allocation122_spill] sm:$0xff] %v5554_v48  ;;  %1128 = vbcast.lane.b32.xlu0 %v1102_v57, 304  ;;  %v5569_v48 = vsub.s32 3, %v5445_v42 }
 0x21a   : > { %1132 = vbcast.lane.b32.xlu1 %v1102_v57, 312  ;;  %v5556_v1 = vpop.xlane.xlu1 %915  ;;  %v5558_v22 = vpop.xlane.xlu0 %913 }
 0x21b   : > { %7521 = vst [vmem:[#allocation123_spill] sm:$0xff] %v5556_v1  ;;  %7522 = vst [vmem:[#allocation124_spill] sm:$0xff] %v5558_v22  ;;  %1136 = vbcast.lane.b32.xlu0 %v1102_v57, 320 }
 0x21e   : > { %1140 = vbcast.lane.b32.xlu1 %v1102_v57, 328  ;;  %v5560_v62 = vpop.xlane.xlu1 %919  ;;  %v5562_v28 = vpop.xlane.xlu0 %917 }
 0x21f   : > { %7523 = vst [vmem:[#allocation125_spill] sm:$0xff] %v5560_v62  ;;  %7524 = vst [vmem:[#allocation126_spill] sm:$0xff] %v5562_v28  ;;  %1144 = vbcast.lane.b32.xlu0 %v1102_v57, 336  ;;  %v1169_v62 = vrot.slane %v5458_v37, %v5569_v48 }
 0x222   : > { %1148 = vbcast.lane.b32.xlu1 %v1102_v57, 344  ;;  %v5564_v52 = vpop.xlane.xlu1 %923  ;;  %v5566_v12 = vpop.xlane.xlu0 %921 }
 0x223   : > { %7525 = vst [vmem:[#allocation127_spill] sm:$0xff] %v5564_v52  ;;  %7526 = vst [vmem:[#allocation128_spill] sm:$0xff] %v5566_v12  ;;  %1152 = vbcast.lane.b32.xlu0 %v1102_v57, 352 }
 0x226   : > { %1156 = vbcast.lane.b32.xlu1 %v1102_v57, 360  ;;  %v5571_v1 = vpop.xlane.xlu1 %927  ;;  %v5573_v22 = vpop.xlane.xlu0 %925 }
 0x227   : > { %7527 = vst [vmem:[#allocation129_spill] sm:$0xff] %v5571_v1  ;;  %7528 = vst [vmem:[#allocation130_spill] sm:$0xff] %v5573_v22  ;;  %1160 = vbcast.lane.b32.xlu0 %v1102_v57, 368 }
 0x22a   : > { %1164 = vbcast.lane.b32.xlu1 %v1102_v57, 376  ;;  %v5577_v28 = vpop.xlane.xlu1 %931  ;;  %v5579_v16 = vpop.xlane.xlu0 %929 }
 0x22b   : > { %7529 = vst [vmem:[#allocation131_spill] sm:$0xff] %v5577_v28  ;;  %7530 = vst [vmem:[#allocation132_spill] sm:$0xff] %v5579_v16  ;;  %1171 = vbcast.lane.b32.xlu0 %v1169_v62, 256 }
 0x22e   : > { %1175 = vbcast.lane.b32.xlu1 %v1169_v62, 264  ;;  %v5581_v52 = vpop.xlane.xlu1 %935  ;;  %v5583_v12 = vpop.xlane.xlu0 %933 }
 0x22f   : > { %7531 = vst [vmem:[#allocation133_spill] sm:$0xff] %v5581_v52  ;;  %7532 = vst [vmem:[#allocation134_spill] sm:$0xff] %v5583_v12  ;;  %1179 = vbcast.lane.b32.xlu0 %v1169_v62, 272 }
 0x232   : > { %1183 = vbcast.lane.b32.xlu1 %v1169_v62, 280  ;;  %v5585_v1 = vpop.xlane.xlu1 %939  ;;  %v5587_v22 = vpop.xlane.xlu0 %937 }
 0x233   : > { %7533 = vst [vmem:[#allocation135_spill] sm:$0xff] %v5585_v1  ;;  %7534 = vst [vmem:[#allocation136_spill] sm:$0xff] %v5587_v22  ;;  %1187 = vbcast.lane.b32.xlu0 %v1169_v62, 288 }
 0x236   : > { %1191 = vbcast.lane.b32.xlu1 %v1169_v62, 296  ;;  %v5589_v14 = vpop.xlane.xlu1 %943  ;;  %v5591_v57 = vpop.xlane.xlu0 %941 }
 0x237   : > { %7535 = vst [vmem:[#allocation137_spill] sm:$0xff] %v5589_v14  ;;  %7536 = vst [vmem:[#allocation138_spill] sm:$0xff] %v5591_v57  ;;  %1195 = vbcast.lane.b32.xlu0 %v1169_v62, 304  ;;  %v5606_v14 = vsub.s32 4, %v5445_v42 }
 0x23a   : > { %1199 = vbcast.lane.b32.xlu1 %v1169_v62, 312  ;;  %v5593_v28 = vpop.xlane.xlu1 %947  ;;  %v5595_v16 = vpop.xlane.xlu0 %945 }
 0x23b   : > { %7537 = vst [vmem:[#allocation139_spill] sm:$0xff] %v5593_v28  ;;  %7538 = vst [vmem:[#allocation140_spill] sm:$0xff] %v5595_v16  ;;  %1203 = vbcast.lane.b32.xlu0 %v1169_v62, 320 }
 0x23e   : > { %1207 = vbcast.lane.b32.xlu1 %v1169_v62, 328  ;;  %v5597_v52 = vpop.xlane.xlu1 %951  ;;  %v5599_v12 = vpop.xlane.xlu0 %949 }
 0x23f   : > { %7539 = vst [vmem:[#allocation141_spill] sm:$0xff] %v5597_v52  ;;  %7540 = vst [vmem:[#allocation142_spill] sm:$0xff] %v5599_v12  ;;  %1211 = vbcast.lane.b32.xlu0 %v1169_v62, 336  ;;  %v1236_v52 = vrot.slane %v5458_v37, %v5606_v14 }
 0x242   : > { %1215 = vbcast.lane.b32.xlu1 %v1169_v62, 344  ;;  %v5601_v1 = vpop.xlane.xlu1 %955  ;;  %v5603_v22 = vpop.xlane.xlu0 %953 }
 0x243   : > { %7541 = vst [vmem:[#allocation143_spill] sm:$0xff] %v5601_v1  ;;  %7542 = vst [vmem:[#allocation144_spill] sm:$0xff] %v5603_v22  ;;  %1219 = vbcast.lane.b32.xlu0 %v1169_v62, 352 }
 0x246   : > { %1223 = vbcast.lane.b32.xlu1 %v1169_v62, 360  ;;  %v5608_v28 = vpop.permute.xlu1 %974  ;;  %v5610_v16 = vpop.permute.xlu0 %970 }
 0x247   : > { %1227 = vbcast.lane.b32.xlu0 %v1169_v62, 368 }
 0x24a   : > { %1231 = vbcast.lane.b32.xlu1 %v1169_v62, 376  ;;  %v5614_v12 = vpop.permute.xlu1 %978  ;;  %v5616_v57 = vpop.permute.xlu0 %986 }
 0x24b   : > { %1238 = vbcast.lane.b32.xlu0 %v1236_v52, 256 }
 0x24e   : > { %1242 = vbcast.lane.b32.xlu1 %v1236_v52, 264  ;;  %v5618_v22 = vpop.permute.xlu1 %982  ;;  %v5620_v1 = vpop.permute.xlu0 %994 }
 0x24f   : > { %1246 = vbcast.lane.b32.xlu0 %v1236_v52, 272 }
 0x252   : > { %1250 = vbcast.lane.b32.xlu1 %v1236_v52, 280  ;;  %v5622_v58 = vpop.permute.xlu1 %990  ;;  %v5624_v41 = vpop.permute.xlu0 %1002 }
 0x253   : > { %1254 = vbcast.lane.b32.xlu0 %v1236_v52, 288 }
 0x256   : > { %1258 = vbcast.lane.b32.xlu1 %v1236_v52, 296  ;;  %v5626_v33 = vpop.permute.xlu1 %998  ;;  %v5628_v62 = vpop.permute.xlu0 %1010 }
 0x257   : > { %1262 = vbcast.lane.b32.xlu0 %v1236_v52, 304 }
 0x25a   : > { %1266 = vbcast.lane.b32.xlu1 %v1236_v52, 312  ;;  %v5630_v6 = vpop.permute.xlu1 %1006  ;;  %v5632_v30 = vpop.permute.xlu0 %1018 }
 0x25b   : > { %1270 = vbcast.lane.b32.xlu0 %v1236_v52, 320 }
 0x25e   : > { %1274 = vbcast.lane.b32.xlu1 %v1236_v52, 328  ;;  %v5634_v20 = vpop.permute.xlu1 %1014  ;;  %v5636_v9 = vpop.permute.xlu0 %1026 }
 0x25f   : > { %7543 = vst [vmem:[#allocation145_spill] sm:$0xff] %v5636_v9  ;;  %1278 = vbcast.lane.b32.xlu0 %v1236_v52, 336 }
 0x262   : > { %1282 = vbcast.lane.b32.xlu1 %v1236_v52, 344  ;;  %v5638_v0 = vpop.permute.xlu1 %1022  ;;  %v5640_v54 = vpop.permute.xlu0 %1037 }
 0x263   : > { %7544 = vst [vmem:[#allocation146_spill] sm:$0xff] %v5640_v54  ;;  %1286 = vbcast.lane.b32.xlu0 %v1236_v52, 352 }
 0x266   : > { %1290 = vbcast.lane.b32.xlu1 %v1236_v52, 360  ;;  %v5645_v36 = vpop.permute.xlu1 %1030  ;;  %v5647_v26 = vpop.permute.xlu0 %1045 }
 0x267   : > { %7545 = vst [vmem:[#allocation147_spill] sm:$0xff] %v5645_v36  ;;  %7546 = vst [vmem:[#allocation148_spill] sm:$0xff] %v5647_v26  ;;  %1294 = vbcast.lane.b32.xlu0 %v1236_v52, 368 }
 0x26a   : > { %1298 = vbcast.lane.b32.xlu1 %v1236_v52, 376  ;;  %v5651_v10 = vpop.permute.xlu1 %1041  ;;  %v5653_v4 = vpop.permute.xlu0 %1053 }
 0x26b   : > { %7547 = vst [vmem:[#allocation149_spill] sm:$0xff] %v5651_v10  ;;  %7548 = vst [vmem:[#allocation150_spill] sm:$0xff] %v5653_v4  ;;  %1305 = vbcast.lane.b32.xlu0 %v1303_v17, 256 }
 0x26e   : > { %1309 = vbcast.lane.b32.xlu1 %v1303_v17, 264  ;;  %v5655_v60 = vpop.permute.xlu1 %1049  ;;  %v5657_v53 = vpop.permute.xlu0 %1061 }
 0x26f   : > { %7549 = vst [vmem:[#allocation151_spill] sm:$0xff] %v5655_v60  ;;  %7550 = vst [vmem:[#allocation152_spill] sm:$0xff] %v5657_v53  ;;  %1313 = vbcast.lane.b32.xlu0 %v1303_v17, 272 }
 0x272   : > { %1317 = vbcast.lane.b32.xlu1 %v1303_v17, 280  ;;  %v5659_v46 = vpop.permute.xlu1 %1057  ;;  %v5661_v38 = vpop.permute.xlu0 %1069 }
 0x273   : > { %7551 = vst [vmem:[#allocation153_spill] sm:$0xff] %v5659_v46  ;;  %7552 = vst [vmem:[#allocation154_spill] sm:$0xff] %v5661_v38  ;;  %1321 = vbcast.lane.b32.xlu0 %v1303_v17, 288 }
 0x276   : > { %1325 = vbcast.lane.b32.xlu1 %v1303_v17, 296  ;;  %v5663_v32 = vpop.permute.xlu1 %1065  ;;  %v5665_v52 = vpop.permute.xlu0 %1077 }
 0x277   : > { %7553 = vst [vmem:[#allocation155_spill] sm:$0xff] %v5663_v32  ;;  %7554 = vst [vmem:[#allocation156_spill] sm:$0xff] %v5665_v52  ;;  %1329 = vbcast.lane.b32.xlu0 %v1303_v17, 304  ;;  %v5680_v52 = vsub.s32 6, %v5445_v42 }
 0x27a   : > { %1333 = vbcast.lane.b32.xlu1 %v1303_v17, 312  ;;  %v5667_v25 = vpop.permute.xlu1 %1073  ;;  %v5669_v18 = vpop.permute.xlu0 %1085 }
 0x27b   : > { %7555 = vst [vmem:[#allocation157_spill] sm:$0xff] %v5667_v25  ;;  %7556 = vst [vmem:[#allocation158_spill] sm:$0xff] %v5669_v18  ;;  %1337 = vbcast.lane.b32.xlu0 %v1303_v17, 320 }
 0x27e   : > { %1341 = vbcast.lane.b32.xlu1 %v1303_v17, 328  ;;  %v5671_v13 = vpop.permute.xlu1 %1081  ;;  %v5673_v8 = vpop.permute.xlu0 %1093 }
 0x27f   : > { %7557 = vst [vmem:[#allocation159_spill] sm:$0xff] %v5671_v13  ;;  %7558 = vst [vmem:[#allocation160_spill] sm:$0xff] %v5673_v8  ;;  %1345 = vbcast.lane.b32.xlu0 %v1303_v17, 336  ;;  %v1370_v13 = vrot.slane %v5458_v37, %v5680_v52 }
 0x282   : > { %1349 = vbcast.lane.b32.xlu1 %v1303_v17, 344  ;;  %v5675_v38 = vpop.permute.xlu1 %1089  ;;  %v5677_v2 = vpop.permute.xlu0 %1104 }
 0x283   : > { %7559 = vst [vmem:[#allocation161_spill] sm:$0xff] %v5675_v38  ;;  %7560 = vst [vmem:[#allocation162_spill] sm:$0xff] %v5677_v2  ;;  %1353 = vbcast.lane.b32.xlu0 %v1303_v17, 352 }
 0x286   : > { %1357 = vbcast.lane.b32.xlu1 %v1303_v17, 360  ;;  %v5682_v25 = vpop.permute.xlu1 %1097  ;;  %v5684_v18 = vpop.permute.xlu0 %1112 }
 0x287   : > { %7561 = vst [vmem:[#allocation163_spill] sm:$0xff] %v5682_v25  ;;  %7562 = vst [vmem:[#allocation164_spill] sm:$0xff] %v5684_v18  ;;  %1361 = vbcast.lane.b32.xlu0 %v1303_v17, 368 }
 0x28a   : > { %1365 = vbcast.lane.b32.xlu1 %v1303_v17, 376  ;;  %v5688_v8 = vpop.permute.xlu1 %1108  ;;  %v5690_v53 = vpop.permute.xlu0 %1120 }
 0x28b   : > { %7563 = vst [vmem:[#allocation165_spill] sm:$0xff] %v5688_v8  ;;  %7564 = vst [vmem:[#allocation166_spill] sm:$0xff] %v5690_v53  ;;  %1372 = vbcast.lane.b32.xlu0 %v1370_v13, 256 }
 0x28e   : > { %1376 = vbcast.lane.b32.xlu1 %v1370_v13, 264  ;;  %v5692_v2 = vpop.permute.xlu1 %1116  ;;  %v5694_v38 = vpop.permute.xlu0 %1128 }
 0x28f   : > { %7565 = vst [vmem:[#allocation167_spill] sm:$0xff] %v5692_v2  ;;  %7566 = vst [vmem:[#allocation168_spill] sm:$0xff] %v5694_v38  ;;  %1380 = vbcast.lane.b32.xlu0 %v1370_v13, 272 }
 0x292   : > { %1384 = vbcast.lane.b32.xlu1 %v1370_v13, 280  ;;  %v5696_v25 = vpop.permute.xlu1 %1124  ;;  %v5698_v18 = vpop.permute.xlu0 %1136 }
 0x293   : > { %7567 = vst [vmem:[#allocation169_spill] sm:$0xff] %v5696_v25  ;;  %7568 = vst [vmem:[#allocation170_spill] sm:$0xff] %v5698_v18  ;;  %1388 = vbcast.lane.b32.xlu0 %v1370_v13, 288 }
 0x296   : > { %1392 = vbcast.lane.b32.xlu1 %v1370_v13, 296  ;;  %v5700_v61 = vpop.permute.xlu1 %1132  ;;  %v5702_v17 = vpop.permute.xlu0 %1144 }
 0x297   : > { %7569 = vst [vmem:[#allocation171_spill] sm:$0xff] %v5700_v61  ;;  %7570 = vst [vmem:[#allocation172_spill] sm:$0xff] %v5702_v17  ;;  %1396 = vbcast.lane.b32.xlu0 %v1370_v13, 304  ;;  %v5717_v17 = vsub.s32 7, %v5445_v42 }
 0x29a   : > { %1400 = vbcast.lane.b32.xlu1 %v1370_v13, 312  ;;  %v5704_v53 = vpop.permute.xlu1 %1140  ;;  %v5706_v8 = vpop.permute.xlu0 %1152 }
 0x29b   : > { %7571 = vst [vmem:[#allocation173_spill] sm:$0xff] %v5704_v53  ;;  %7572 = vst [vmem:[#allocation174_spill] sm:$0xff] %v5706_v8  ;;  %1404 = vbcast.lane.b32.xlu0 %v1370_v13, 320 }
 0x29e   : > { %1408 = vbcast.lane.b32.xlu1 %v1370_v13, 328  ;;  %v5708_v38 = vpop.permute.xlu1 %1148  ;;  %v5710_v2 = vpop.permute.xlu0 %1160 }
 0x29f   : > { %7573 = vst [vmem:[#allocation175_spill] sm:$0xff] %v5708_v38  ;;  %7574 = vst [vmem:[#allocation176_spill] sm:$0xff] %v5710_v2  ;;  %1412 = vbcast.lane.b32.xlu0 %v1370_v13, 336  ;;  %v1437_v38 = vrot.slane %v5458_v37, %v5717_v17 }
 0x2a2   : > { %1416 = vbcast.lane.b32.xlu1 %v1370_v13, 344  ;;  %v5712_v18 = vpop.permute.xlu1 %1156  ;;  %v5714_v25 = vpop.permute.xlu0 %1171 }
 0x2a3   : > { %7575 = vst [vmem:[#allocation177_spill] sm:$0xff] %v5712_v18  ;;  %7576 = vst [vmem:[#allocation178_spill] sm:$0xff] %v5714_v25  ;;  %1420 = vbcast.lane.b32.xlu0 %v1370_v13, 352 }
 0x2a6   : > { %1424 = vbcast.lane.b32.xlu1 %v1370_v13, 360  ;;  %v5719_v53 = vpop.permute.xlu1 %1164  ;;  %v5721_v8 = vpop.permute.xlu0 %1179 }
 0x2a7   : > { %7577 = vst [vmem:[#allocation179_spill] sm:$0xff] %v5719_v53  ;;  %7578 = vst [vmem:[#allocation180_spill] sm:$0xff] %v5721_v8  ;;  %1428 = vbcast.lane.b32.xlu0 %v1370_v13, 368 }
 0x2aa   : > { %1432 = vbcast.lane.b32.xlu1 %v1370_v13, 376  ;;  %v5725_v2 = vpop.permute.xlu1 %1175  ;;  %v5727_v61 = vpop.permute.xlu0 %1187 }
 0x2ab   : > { %7579 = vst [vmem:[#allocation181_spill] sm:$0xff] %v5725_v2  ;;  %7580 = vst [vmem:[#allocation182_spill] sm:$0xff] %v5727_v61  ;;  %1439 = vbcast.lane.b32.xlu0 %v1437_v38, 256 }
 0x2ae   : > { %1443 = vbcast.lane.b32.xlu1 %v1437_v38, 264  ;;  %v5729_v25 = vpop.permute.xlu1 %1183  ;;  %v5731_v42 = vpop.permute.xlu0 %1195 }
 0x2af   : > { %7581 = vst [vmem:[#allocation183_spill] sm:$0xff] %v5729_v25  ;;  %7582 = vst [vmem:[#allocation184_spill] sm:$0xff] %v5731_v42  ;;  %1447 = vbcast.lane.b32.xlu0 %v1437_v38, 272 }
 0x2b2   : > { %1451 = vbcast.lane.b32.xlu1 %v1437_v38, 280  ;;  %v5733_v53 = vpop.permute.xlu1 %1191  ;;  %v5735_v8 = vpop.permute.xlu0 %1203 }
 0x2b3   : > { %7583 = vst [vmem:[#allocation185_spill] sm:$0xff] %v5733_v53  ;;  %7584 = vst [vmem:[#allocation186_spill] sm:$0xff] %v5735_v8  ;;  %1455 = vbcast.lane.b32.xlu0 %v1437_v38, 288 }
 0x2b6   : > { %1459 = vbcast.lane.b32.xlu1 %v1437_v38, 296  ;;  %v5737_v13 = vpop.permute.xlu1 %1199  ;;  %v5739_v37 = vpop.permute.xlu0 %1211 }
 0x2b7   : > { %7585 = vst [vmem:[#allocation187_spill] sm:$0xff] %v5737_v13  ;;  %7586 = vst [vmem:[#allocation188_spill] sm:$0xff] %v5739_v37  ;;  %1463 = vbcast.lane.b32.xlu0 %v1437_v38, 304  ;;  %v5755_v37 = vld [vmem:[%s7593_s11] sm:$0xff] }
 0x2b8   : > { %v2097_v54 = vrot.slane %v5755_v37, %v5643_v44 }
 0x2ba   : > { %1467 = vbcast.lane.b32.xlu1 %v1437_v38, 312  ;;  %v5741_v61 = vpop.permute.xlu1 %1207  ;;  %v5743_v25 = vpop.permute.xlu0 %1219 }
 0x2bb   : > { %7587 = vst [vmem:[#allocation189_spill] sm:$0xff] %v5741_v61  ;;  %7588 = vst [vmem:[#allocation190_spill] sm:$0xff] %v5743_v25  ;;  %1471 = vbcast.lane.b32.xlu0 %v1437_v38, 320 }
 0x2be   : > { %1475 = vbcast.lane.b32.xlu1 %v1437_v38, 328  ;;  %v5745_v42 = vpop.permute.xlu1 %1215  ;;  %v5747_v53 = vpop.permute.xlu0 %1227 }
 0x2bf   : > { %7589 = vst [vmem:[#allocation191_spill] sm:$0xff] %v5745_v42  ;;  %7590 = vst [vmem:[#allocation192_spill] sm:$0xff] %v5747_v53  ;;  %1479 = vbcast.lane.b32.xlu0 %v1437_v38, 336  ;;  %v1762_v42 = vrot.slane %v5755_v37, %v5452_v21 }
 0x2c2   : > { %1483 = vbcast.lane.b32.xlu1 %v1437_v38, 344  ;;  %v5749_v8 = vpop.permute.xlu1 %1223  ;;  %v5751_v2 = vpop.permute.xlu0 %1238 }
 0x2c3   : > { %7591 = vst [vmem:[#allocation193_spill] sm:$0xff] %v5749_v8  ;;  %7592 = vst [vmem:[#allocation194_spill] sm:$0xff] %v5751_v2  ;;  %1487 = vbcast.lane.b32.xlu0 %v1437_v38, 352 }
 0x2c6   : > { %1491 = vbcast.lane.b32.xlu1 %v1437_v38, 360  ;;  %v5757_v61 = vpop.permute.xlu1 %1231  ;;  %v5759_v25 = vpop.permute.xlu0 %1246 }
 0x2c7   : > { %7594 = vst [vmem:[#allocation195_spill] sm:$0xff] %v5757_v61  ;;  %7595 = vst [vmem:[#allocation196_spill] sm:$0xff] %v5759_v25  ;;  %1495 = vbcast.lane.b32.xlu0 %v1437_v38, 368 }
 0x2ca   : > { %1499 = vbcast.lane.b32.xlu1 %v1437_v38, 376  ;;  %v5763_v53 = vpop.permute.xlu1 %1242  ;;  %v5765_v13 = vpop.permute.xlu0 %1254 }
 0x2cb   : > { %7596 = vst [vmem:[#allocation197_spill] sm:$0xff] %v5763_v53  ;;  %7597 = vst [vmem:[#allocation198_spill] sm:$0xff] %v5765_v13  ;;  %1764 = vbcast.lane.b32.xlu0 %v1762_v42, 256 }
 0x2ce   : > { %1768 = vbcast.lane.b32.xlu1 %v1762_v42, 264  ;;  %v5767_v2 = vpop.permute.xlu1 %1250  ;;  %v5769_v8 = vpop.permute.xlu0 %1262 }
 0x2cf   : > { %7598 = vst [vmem:[#allocation199_spill] sm:$0xff] %v5767_v2  ;;  %7599 = vst [vmem:[#allocation200_spill] sm:$0xff] %v5769_v8  ;;  %1772 = vbcast.lane.b32.xlu0 %v1762_v42, 272 }
 0x2d2   : > { %1776 = vbcast.lane.b32.xlu1 %v1762_v42, 280  ;;  %v5771_v61 = vpop.permute.xlu1 %1258  ;;  %v5773_v25 = vpop.permute.xlu0 %1270 }
 0x2d3   : > { %7600 = vst [vmem:[#allocation201_spill] sm:$0xff] %v5771_v61  ;;  %7601 = vst [vmem:[#allocation202_spill] sm:$0xff] %v5773_v25  ;;  %1780 = vbcast.lane.b32.xlu0 %v1762_v42, 288 }
 0x2d6   : > { %1784 = vbcast.lane.b32.xlu1 %v1762_v42, 296  ;;  %v5775_v18 = vpop.permute.xlu1 %1266  ;;  %v5777_v38 = vpop.permute.xlu0 %1278 }
 0x2d7   : > { %7602 = vst [vmem:[#allocation203_spill] sm:$0xff] %v5775_v18  ;;  %7603 = vst [vmem:[#allocation204_spill] sm:$0xff] %v5777_v38  ;;  %1788 = vbcast.lane.b32.xlu0 %v1762_v42, 304 }
 0x2da   : > { %1792 = vbcast.lane.b32.xlu1 %v1762_v42, 312  ;;  %v5779_v13 = vpop.permute.xlu1 %1274  ;;  %v5781_v53 = vpop.permute.xlu0 %1286 }
 0x2db   : > { %7604 = vst [vmem:[#allocation205_spill] sm:$0xff] %v5779_v13  ;;  %7605 = vst [vmem:[#allocation206_spill] sm:$0xff] %v5781_v53  ;;  %1796 = vbcast.lane.b32.xlu0 %v1762_v42, 320  ;;  %v1829_v53 = vrot.slane %v5755_v37, %v5495_v49 }
 0x2de   : > { %1800 = vbcast.lane.b32.xlu1 %v1762_v42, 328  ;;  %v5783_v8 = vpop.permute.xlu1 %1282  ;;  %v5785_v2 = vpop.permute.xlu0 %1294 }
 0x2df   : > { %7606 = vst [vmem:[#allocation207_spill] sm:$0xff] %v5783_v8  ;;  %7607 = vst [vmem:[#allocation208_spill] sm:$0xff] %v5785_v2  ;;  %1804 = vbcast.lane.b32.xlu0 %v1762_v42, 336 }
 0x2e2   : > { %1808 = vbcast.lane.b32.xlu1 %v1762_v42, 344  ;;  %v5787_v25 = vpop.permute.xlu1 %1290  ;;  %v5789_v61 = vpop.permute.xlu0 %1305 }
 0x2e3   : > { %7608 = vst [vmem:[#allocation209_spill] sm:$0xff] %v5787_v25  ;;  %7609 = vst [vmem:[#allocation210_spill] sm:$0xff] %v5789_v61  ;;  %1812 = vbcast.lane.b32.xlu0 %v1762_v42, 352 }
 0x2e6   : > { %1816 = vbcast.lane.b32.xlu1 %v1762_v42, 360  ;;  %v5791_v38 = vpop.permute.xlu1 %1298  ;;  %v5793_v18 = vpop.permute.xlu0 %1313 }
 0x2e7   : > { %7610 = vst [vmem:[#allocation211_spill] sm:$0xff] %v5791_v38  ;;  %7611 = vst [vmem:[#allocation212_spill] sm:$0xff] %v5793_v18  ;;  %1820 = vbcast.lane.b32.xlu0 %v1762_v42, 368 }
 0x2ea   : > { %1824 = vbcast.lane.b32.xlu1 %v1762_v42, 376  ;;  %v5797_v8 = vpop.permute.xlu1 %1309  ;;  %v5799_v2 = vpop.permute.xlu0 %1321 }
 0x2eb   : > { %7612 = vst [vmem:[#allocation213_spill] sm:$0xff] %v5797_v8  ;;  %7613 = vst [vmem:[#allocation214_spill] sm:$0xff] %v5799_v2  ;;  %1831 = vbcast.lane.b32.xlu0 %v1829_v53, 256 }
 0x2ee   : > { %1835 = vbcast.lane.b32.xlu1 %v1829_v53, 264  ;;  %v5801_v25 = vpop.permute.xlu1 %1317  ;;  %v5803_v61 = vpop.permute.xlu0 %1329 }
 0x2ef   : > { %7614 = vst [vmem:[#allocation215_spill] sm:$0xff] %v5801_v25  ;;  %7615 = vst [vmem:[#allocation216_spill] sm:$0xff] %v5803_v61  ;;  %1839 = vbcast.lane.b32.xlu0 %v1829_v53, 272 }
 0x2f2   : > { %1843 = vbcast.lane.b32.xlu1 %v1829_v53, 280  ;;  %v5805_v38 = vpop.permute.xlu1 %1325  ;;  %v5807_v18 = vpop.permute.xlu0 %1337 }
 0x2f3   : > { %7616 = vst [vmem:[#allocation217_spill] sm:$0xff] %v5805_v38  ;;  %7617 = vst [vmem:[#allocation218_spill] sm:$0xff] %v5807_v18  ;;  %1847 = vbcast.lane.b32.xlu0 %v1829_v53, 288 }
 0x2f6   : > { %1851 = vbcast.lane.b32.xlu1 %v1829_v53, 296  ;;  %v5809_v13 = vpop.permute.xlu1 %1333  ;;  %v5811_v42 = vpop.permute.xlu0 %1345 }
 0x2f7   : > { %7618 = vst [vmem:[#allocation219_spill] sm:$0xff] %v5809_v13  ;;  %7619 = vst [vmem:[#allocation220_spill] sm:$0xff] %v5811_v42  ;;  %1855 = vbcast.lane.b32.xlu0 %v1829_v53, 304 }
 0x2fa   : > { %1859 = vbcast.lane.b32.xlu1 %v1829_v53, 312  ;;  %v5813_v2 = vpop.permute.xlu1 %1341  ;;  %v5815_v8 = vpop.permute.xlu0 %1353 }
 0x2fb   : > { %7620 = vst [vmem:[#allocation221_spill] sm:$0xff] %v5813_v2  ;;  %7621 = vst [vmem:[#allocation222_spill] sm:$0xff] %v5815_v8  ;;  %1863 = vbcast.lane.b32.xlu0 %v1829_v53, 320  ;;  %v1896_v8 = vrot.slane %v5755_v37, %v5532_v5 }
 0x2fe   : > { %1867 = vbcast.lane.b32.xlu1 %v1829_v53, 328  ;;  %v5817_v61 = vpop.permute.xlu1 %1349  ;;  %v5819_v25 = vpop.permute.xlu0 %1361 }
 0x2ff   : > { %7622 = vst [vmem:[#allocation223_spill] sm:$0xff] %v5817_v61  ;;  %7623 = vst [vmem:[#allocation224_spill] sm:$0xff] %v5819_v25  ;;  %1871 = vbcast.lane.b32.xlu0 %v1829_v53, 336 }
 0x302   : > { %1875 = vbcast.lane.b32.xlu1 %v1829_v53, 344  ;;  %v5821_v18 = vpop.permute.xlu1 %1357  ;;  %v5823_v38 = vpop.permute.xlu0 %1372 }
 0x303   : > { %7624 = vst [vmem:[#allocation225_spill] sm:$0xff] %v5821_v18  ;;  %7625 = vst [vmem:[#allocation226_spill] sm:$0xff] %v5823_v38  ;;  %1879 = vbcast.lane.b32.xlu0 %v1829_v53, 352 }
 0x306   : > { %1883 = vbcast.lane.b32.xlu1 %v1829_v53, 360  ;;  %v5825_v42 = vpop.permute.xlu1 %1365  ;;  %v5827_v13 = vpop.permute.xlu0 %1380 }
 0x307   : > { %7626 = vst [vmem:[#allocation227_spill] sm:$0xff] %v5825_v42  ;;  %7627 = vst [vmem:[#allocation228_spill] sm:$0xff] %v5827_v13  ;;  %1887 = vbcast.lane.b32.xlu0 %v1829_v53, 368 }
 0x30a   : > { %1891 = vbcast.lane.b32.xlu1 %v1829_v53, 376  ;;  %v5831_v61 = vpop.permute.xlu1 %1376  ;;  %v5833_v25 = vpop.permute.xlu0 %1388 }
 0x30b   : > { %7628 = vst [vmem:[#allocation229_spill] sm:$0xff] %v5831_v61  ;;  %7629 = vst [vmem:[#allocation230_spill] sm:$0xff] %v5833_v25  ;;  %1898 = vbcast.lane.b32.xlu0 %v1896_v8, 256 }
 0x30e   : > { %1902 = vbcast.lane.b32.xlu1 %v1896_v8, 264  ;;  %v5835_v18 = vpop.permute.xlu1 %1384  ;;  %v5837_v38 = vpop.permute.xlu0 %1396 }
 0x30f   : > { %7630 = vst [vmem:[#allocation231_spill] sm:$0xff] %v5835_v18  ;;  %7631 = vst [vmem:[#allocation232_spill] sm:$0xff] %v5837_v38  ;;  %1906 = vbcast.lane.b32.xlu0 %v1896_v8, 272 }
 0x312   : > { %1910 = vbcast.lane.b32.xlu1 %v1896_v8, 280  ;;  %v5839_v42 = vpop.permute.xlu1 %1392  ;;  %v5841_v13 = vpop.permute.xlu0 %1404 }
 0x313   : > { %7632 = vst [vmem:[#allocation233_spill] sm:$0xff] %v5839_v42  ;;  %7633 = vst [vmem:[#allocation234_spill] sm:$0xff] %v5841_v13  ;;  %1914 = vbcast.lane.b32.xlu0 %v1896_v8, 288 }
 0x316   : > { %1918 = vbcast.lane.b32.xlu1 %v1896_v8, 296  ;;  %v5843_v2 = vpop.permute.xlu1 %1400  ;;  %v5845_v53 = vpop.permute.xlu0 %1412 }
 0x317   : > { %7634 = vst [vmem:[#allocation235_spill] sm:$0xff] %v5843_v2  ;;  %7635 = vst [vmem:[#allocation236_spill] sm:$0xff] %v5845_v53  ;;  %1922 = vbcast.lane.b32.xlu0 %v1896_v8, 304 }
 0x31a   : > { %1926 = vbcast.lane.b32.xlu1 %v1896_v8, 312  ;;  %v5847_v25 = vpop.permute.xlu1 %1408  ;;  %v5849_v61 = vpop.permute.xlu0 %1420 }
 0x31b   : > { %7636 = vst [vmem:[#allocation237_spill] sm:$0xff] %v5847_v25  ;;  %7637 = vst [vmem:[#allocation238_spill] sm:$0xff] %v5849_v61  ;;  %1930 = vbcast.lane.b32.xlu0 %v1896_v8, 320  ;;  %v1963_v61 = vrot.slane %v5755_v37, %v5569_v48 }
 0x31e   : > { %1934 = vbcast.lane.b32.xlu1 %v1896_v8, 328  ;;  %v5851_v38 = vpop.permute.xlu1 %1416  ;;  %v5853_v18 = vpop.permute.xlu0 %1428 }
 0x31f   : > { %7638 = vst [vmem:[#allocation239_spill] sm:$0xff] %v5851_v38  ;;  %7639 = vst [vmem:[#allocation240_spill] sm:$0xff] %v5853_v18  ;;  %1938 = vbcast.lane.b32.xlu0 %v1896_v8, 336 }
 0x322   : > { %1942 = vbcast.lane.b32.xlu1 %v1896_v8, 344  ;;  %v5855_v13 = vpop.permute.xlu1 %1424  ;;  %v5857_v42 = vpop.permute.xlu0 %1439 }
 0x323   : > { %7640 = vst [vmem:[#allocation241_spill] sm:$0xff] %v5855_v13  ;;  %7641 = vst [vmem:[#allocation242_spill] sm:$0xff] %v5857_v42  ;;  %1946 = vbcast.lane.b32.xlu0 %v1896_v8, 352 }
 0x326   : > { %1950 = vbcast.lane.b32.xlu1 %v1896_v8, 360  ;;  %v5859_v53 = vpop.permute.xlu1 %1432  ;;  %v5861_v2 = vpop.permute.xlu0 %1447 }
 0x327   : > { %7642 = vst [vmem:[#allocation243_spill] sm:$0xff] %v5859_v53  ;;  %7643 = vst [vmem:[#allocation244_spill] sm:$0xff] %v5861_v2  ;;  %1954 = vbcast.lane.b32.xlu0 %v1896_v8, 368 }
 0x32a   : > { %1958 = vbcast.lane.b32.xlu1 %v1896_v8, 376  ;;  %v5865_v38 = vpop.permute.xlu1 %1443  ;;  %v5867_v18 = vpop.permute.xlu0 %1455 }
 0x32b   : > { %7644 = vst [vmem:[#allocation245_spill] sm:$0xff] %v5865_v38  ;;  %7645 = vst [vmem:[#allocation246_spill] sm:$0xff] %v5867_v18  ;;  %1965 = vbcast.lane.b32.xlu0 %v1963_v61, 256 }
 0x32e   : > { %1969 = vbcast.lane.b32.xlu1 %v1963_v61, 264  ;;  %v5869_v13 = vpop.permute.xlu1 %1451  ;;  %v5871_v42 = vpop.permute.xlu0 %1463 }
 0x32f   : > { %7646 = vst [vmem:[#allocation247_spill] sm:$0xff] %v5869_v13  ;;  %7647 = vst [vmem:[#allocation248_spill] sm:$0xff] %v5871_v42  ;;  %1973 = vbcast.lane.b32.xlu0 %v1963_v61, 272 }
 0x332   : > { %1977 = vbcast.lane.b32.xlu1 %v1963_v61, 280  ;;  %v5873_v53 = vpop.permute.xlu1 %1459  ;;  %v5875_v2 = vpop.permute.xlu0 %1471 }
 0x333   : > { %7648 = vst [vmem:[#allocation249_spill] sm:$0xff] %v5873_v53  ;;  %7649 = vst [vmem:[#allocation250_spill] sm:$0xff] %v5875_v2  ;;  %1981 = vbcast.lane.b32.xlu0 %v1963_v61, 288 }
 0x336   : > { %1985 = vbcast.lane.b32.xlu1 %v1963_v61, 296  ;;  %v5877_v25 = vpop.permute.xlu1 %1467  ;;  %v5879_v8 = vpop.permute.xlu0 %1479 }
 0x337   : > { %7650 = vst [vmem:[#allocation251_spill] sm:$0xff] %v5877_v25  ;;  %7651 = vst [vmem:[#allocation252_spill] sm:$0xff] %v5879_v8  ;;  %1989 = vbcast.lane.b32.xlu0 %v1963_v61, 304 }
 0x33a   : > { %1993 = vbcast.lane.b32.xlu1 %v1963_v61, 312  ;;  %v5881_v18 = vpop.permute.xlu1 %1475  ;;  %v5883_v38 = vpop.permute.xlu0 %1487 }
 0x33b   : > { %7652 = vst [vmem:[#allocation253_spill] sm:$0xff] %v5881_v18  ;;  %7653 = vst [vmem:[#allocation254_spill] sm:$0xff] %v5883_v38  ;;  %1997 = vbcast.lane.b32.xlu0 %v1963_v61, 320  ;;  %v2030_v38 = vrot.slane %v5755_v37, %v5606_v14 }
 0x33e   : > { %2001 = vbcast.lane.b32.xlu1 %v1963_v61, 328  ;;  %v5885_v42 = vpop.permute.xlu1 %1483  ;;  %v5887_v13 = vpop.permute.xlu0 %1495 }
 0x33f   : > { %7654 = vst [vmem:[#allocation255_spill] sm:$0xff] %v5885_v42  ;;  %7655 = vst [vmem:[#allocation256_spill] sm:$0xff] %v5887_v13  ;;  %2005 = vbcast.lane.b32.xlu0 %v1963_v61, 336 }
 0x342   : > { %2009 = vbcast.lane.b32.xlu1 %v1963_v61, 344  ;;  %v5889_v2 = vpop.permute.xlu1 %1491  ;;  %v5891_v53 = vpop.permute.xlu0 %1764 }
 0x343   : > { %7656 = vst [vmem:[#allocation257_spill] sm:$0xff] %v5889_v2  ;;  %2013 = vbcast.lane.b32.xlu0 %v1963_v61, 352 }
 0x346   : > { %2017 = vbcast.lane.b32.xlu1 %v1963_v61, 360  ;;  %v5893_v8 = vpop.permute.xlu1 %1499  ;;  %v5895_v25 = vpop.permute.xlu0 %1772 }
 0x347   : > { %7657 = vst [vmem:[#allocation258_spill] sm:$0xff] %v5893_v8  ;;  %2021 = vbcast.lane.b32.xlu0 %v1963_v61, 368 }
 0x34a   : > { %2025 = vbcast.lane.b32.xlu1 %v1963_v61, 376  ;;  %v5899_v42 = vpop.permute.xlu1 %1768  ;;  %v5901_v13 = vpop.permute.xlu0 %1780 }
 0x34b   : > { %2032 = vbcast.lane.b32.xlu0 %v2030_v38, 256 }
 0x34e   : > { %2036 = vbcast.lane.b32.xlu1 %v2030_v38, 264  ;;  %v5903_v2 = vpop.permute.xlu1 %1776  ;;  %v5905_v18 = vpop.permute.xlu0 %1788 }
 0x34f   : > { %2040 = vbcast.lane.b32.xlu0 %v2030_v38, 272 }
 0x352   : > { %2044 = vbcast.lane.b32.xlu1 %v2030_v38, 280  ;;  %v5907_v8 = vpop.permute.xlu1 %1784  ;;  %v5909_v32 = vpop.permute.xlu0 %1796 }
 0x353   : > { %2048 = vbcast.lane.b32.xlu0 %v2030_v38, 288 }
 0x356   : > { %2052 = vbcast.lane.b32.xlu1 %v2030_v38, 296  ;;  %v5911_v56 = vpop.permute.xlu1 %1792  ;;  %v5913_v61 = vpop.permute.xlu0 %1804 }
 0x357   : > { %2056 = vbcast.lane.b32.xlu0 %v2030_v38, 304 }
 0x35a   : > { %2060 = vbcast.lane.b32.xlu1 %v2030_v38, 312  ;;  %v5915_v4 = vpop.permute.xlu1 %1800  ;;  %v5917_v50 = vpop.permute.xlu0 %1812 }
 0x35b   : > { %7658 = vst [vmem:[#allocation259_spill] sm:$0xff] %v5917_v50  ;;  %2064 = vbcast.lane.b32.xlu0 %v2030_v38, 320 }
 0x35e   : > { %2068 = vbcast.lane.b32.xlu1 %v2030_v38, 328  ;;  %v5919_v46 = vpop.permute.xlu1 %1808  ;;  %v5921_v45 = vpop.permute.xlu0 %1820 }
 0x35f   : > { %7659 = vst [vmem:[#allocation260_spill] sm:$0xff] %v5921_v45  ;;  %2072 = vbcast.lane.b32.xlu0 %v2030_v38, 336 }
 0x362   : > { %2076 = vbcast.lane.b32.xlu1 %v2030_v38, 344  ;;  %v5923_v26 = vpop.permute.xlu1 %1816  ;;  %v5925_v40 = vpop.permute.xlu0 %1831 }
 0x363   : > { %7660 = vst [vmem:[#allocation261_spill] sm:$0xff] %v5925_v40  ;;  %2080 = vbcast.lane.b32.xlu0 %v2030_v38, 352 }
 0x366   : > { %2084 = vbcast.lane.b32.xlu1 %v2030_v38, 360  ;;  %v5927_v60 = vpop.permute.xlu1 %1824  ;;  %v5929_v34 = vpop.permute.xlu0 %1839 }
 0x367   : > { %7661 = vst [vmem:[#allocation262_spill] sm:$0xff] %v5927_v60  ;;  %7662 = vst [vmem:[#allocation263_spill] sm:$0xff] %v5929_v34  ;;  %2088 = vbcast.lane.b32.xlu0 %v2030_v38, 368 }
 0x36a   : > { %2092 = vbcast.lane.b32.xlu1 %v2030_v38, 376  ;;  %v5933_v29 = vpop.permute.xlu1 %1835  ;;  %v5935_v45 = vpop.permute.xlu0 %1847 }
 0x36b   : > { %7663 = vst [vmem:[#allocation264_spill] sm:$0xff] %v5933_v29  ;;  %7664 = vst [vmem:[#allocation265_spill] sm:$0xff] %v5935_v45  ;;  %2099 = vbcast.lane.b32.xlu0 %v2097_v54, 256 }
 0x36e   : > { %2103 = vbcast.lane.b32.xlu1 %v2097_v54, 264  ;;  %v5937_v10 = vpop.permute.xlu1 %1843  ;;  %v5939_v40 = vpop.permute.xlu0 %1855 }
 0x36f   : > { %7665 = vst [vmem:[#allocation266_spill] sm:$0xff] %v5937_v10  ;;  %7666 = vst [vmem:[#allocation267_spill] sm:$0xff] %v5939_v40  ;;  %2107 = vbcast.lane.b32.xlu0 %v2097_v54, 272 }
 0x372   : > { %2111 = vbcast.lane.b32.xlu1 %v2097_v54, 280  ;;  %v5941_v24 = vpop.permute.xlu1 %1851  ;;  %v5943_v34 = vpop.permute.xlu0 %1863 }
 0x373   : > { %7667 = vst [vmem:[#allocation268_spill] sm:$0xff] %v5941_v24  ;;  %7668 = vst [vmem:[#allocation269_spill] sm:$0xff] %v5943_v34  ;;  %2115 = vbcast.lane.b32.xlu0 %v2097_v54, 288 }
 0x376   : > { %2119 = vbcast.lane.b32.xlu1 %v2097_v54, 296  ;;  %v5945_v60 = vpop.permute.xlu1 %1859  ;;  %v5947_v38 = vpop.permute.xlu0 %1871 }
 0x377   : > { %7669 = vst [vmem:[#allocation270_spill] sm:$0xff] %v5945_v60  ;;  %7670 = vst [vmem:[#allocation271_spill] sm:$0xff] %v5947_v38  ;;  %2123 = vbcast.lane.b32.xlu0 %v2097_v54, 304 }
 0x37a   : > { %2127 = vbcast.lane.b32.xlu1 %v2097_v54, 312  ;;  %v5949_v45 = vpop.permute.xlu1 %1867  ;;  %v5951_v29 = vpop.permute.xlu0 %1879 }
 0x37b   : > { %7671 = vst [vmem:[#allocation272_spill] sm:$0xff] %v5949_v45  ;;  %7672 = vst [vmem:[#allocation273_spill] sm:$0xff] %v5951_v29  ;;  %2131 = vbcast.lane.b32.xlu0 %v2097_v54, 320  ;;  %v2164_v29 = vrot.slane %v5755_v37, %v5680_v52 }
 0x37e   : > { %2135 = vbcast.lane.b32.xlu1 %v2097_v54, 328  ;;  %v5953_v40 = vpop.permute.xlu1 %1875  ;;  %v5955_v10 = vpop.permute.xlu0 %1887 }
 0x37f   : > { %7673 = vst [vmem:[#allocation274_spill] sm:$0xff] %v5953_v40  ;;  %7674 = vst [vmem:[#allocation275_spill] sm:$0xff] %v5955_v10  ;;  %2139 = vbcast.lane.b32.xlu0 %v2097_v54, 336 }
 0x382   : > { %2143 = vbcast.lane.b32.xlu1 %v2097_v54, 344  ;;  %v5957_v34 = vpop.permute.xlu1 %1883  ;;  %v5959_v24 = vpop.permute.xlu0 %1898 }
 0x383   : > { %7675 = vst [vmem:[#allocation276_spill] sm:$0xff] %v5957_v34  ;;  %7676 = vst [vmem:[#allocation277_spill] sm:$0xff] %v5959_v24  ;;  %2147 = vbcast.lane.b32.xlu0 %v2097_v54, 352 }
 0x386   : > { %2151 = vbcast.lane.b32.xlu1 %v2097_v54, 360  ;;  %v5961_v38 = vpop.permute.xlu1 %1891  ;;  %v5963_v60 = vpop.permute.xlu0 %1906 }
 0x387   : > { %7677 = vst [vmem:[#allocation278_spill] sm:$0xff] %v5961_v38  ;;  %7678 = vst [vmem:[#allocation279_spill] sm:$0xff] %v5963_v60  ;;  %2155 = vbcast.lane.b32.xlu0 %v2097_v54, 368 }
 0x38a   : > { %2159 = vbcast.lane.b32.xlu1 %v2097_v54, 376  ;;  %v5967_v40 = vpop.permute.xlu1 %1902  ;;  %v5969_v10 = vpop.permute.xlu0 %1914 }
 0x38b   : > { %7679 = vst [vmem:[#allocation280_spill] sm:$0xff] %v5967_v40  ;;  %7680 = vst [vmem:[#allocation281_spill] sm:$0xff] %v5969_v10  ;;  %2166 = vbcast.lane.b32.xlu0 %v2164_v29, 256 }
 0x38e   : > { %2170 = vbcast.lane.b32.xlu1 %v2164_v29, 264  ;;  %v5971_v34 = vpop.permute.xlu1 %1910  ;;  %v5973_v24 = vpop.permute.xlu0 %1922 }
 0x38f   : > { %7681 = vst [vmem:[#allocation282_spill] sm:$0xff] %v5971_v34  ;;  %7682 = vst [vmem:[#allocation283_spill] sm:$0xff] %v5973_v24  ;;  %2174 = vbcast.lane.b32.xlu0 %v2164_v29, 272 }
 0x392   : > { %2178 = vbcast.lane.b32.xlu1 %v2164_v29, 280  ;;  %v5975_v38 = vpop.permute.xlu1 %1918  ;;  %v5977_v60 = vpop.permute.xlu0 %1930 }
 0x393   : > { %7683 = vst [vmem:[#allocation284_spill] sm:$0xff] %v5975_v38  ;;  %7684 = vst [vmem:[#allocation285_spill] sm:$0xff] %v5977_v60  ;;  %2182 = vbcast.lane.b32.xlu0 %v2164_v29, 288 }
 0x396   : > { %2186 = vbcast.lane.b32.xlu1 %v2164_v29, 296  ;;  %v5979_v45 = vpop.permute.xlu1 %1926  ;;  %v5981_v54 = vpop.permute.xlu0 %1938 }
 0x397   : > { %7685 = vst [vmem:[#allocation286_spill] sm:$0xff] %v5979_v45  ;;  %7686 = vst [vmem:[#allocation287_spill] sm:$0xff] %v5981_v54  ;;  %2190 = vbcast.lane.b32.xlu0 %v2164_v29, 304 }
 0x39a   : > { %2194 = vbcast.lane.b32.xlu1 %v2164_v29, 312  ;;  %v5983_v10 = vpop.permute.xlu1 %1934  ;;  %v5985_v40 = vpop.permute.xlu0 %1946 }
 0x39b   : > { %7687 = vst [vmem:[#allocation288_spill] sm:$0xff] %v5983_v10  ;;  %7688 = vst [vmem:[#allocation289_spill] sm:$0xff] %v5985_v40  ;;  %2198 = vbcast.lane.b32.xlu0 %v2164_v29, 320  ;;  %v2231_v40 = vrot.slane %v5755_v37, %v5717_v17 }
 0x39e   : > { %2202 = vbcast.lane.b32.xlu1 %v2164_v29, 328  ;;  %v5987_v24 = vpop.permute.xlu1 %1942  ;;  %v5989_v34 = vpop.permute.xlu0 %1954 }
 0x39f   : > { %7689 = vst [vmem:[#allocation290_spill] sm:$0xff] %v5987_v24  ;;  %7690 = vst [vmem:[#allocation291_spill] sm:$0xff] %v5989_v34  ;;  %2206 = vbcast.lane.b32.xlu0 %v2164_v29, 336 }
 0x3a2   : > { %2210 = vbcast.lane.b32.xlu1 %v2164_v29, 344  ;;  %v5991_v60 = vpop.permute.xlu1 %1950  ;;  %v5993_v45 = vpop.permute.xlu0 %1965 }
 0x3a3   : > { %7691 = vst [vmem:[#allocation292_spill] sm:$0xff] %v5991_v60  ;;  %7692 = vst [vmem:[#allocation293_spill] sm:$0xff] %v5993_v45  ;;  %2214 = vbcast.lane.b32.xlu0 %v2164_v29, 352 }
 0x3a6   : > { %2218 = vbcast.lane.b32.xlu1 %v2164_v29, 360  ;;  %v5995_v54 = vpop.permute.xlu1 %1958  ;;  %v5997_v10 = vpop.permute.xlu0 %1973 }
 0x3a7   : > { %7693 = vst [vmem:[#allocation294_spill] sm:$0xff] %v5995_v54  ;;  %7694 = vst [vmem:[#allocation295_spill] sm:$0xff] %v5997_v10  ;;  %2222 = vbcast.lane.b32.xlu0 %v2164_v29, 368  ;;  %v957_v54 = vld [vmem:[%s7699_s18] sm:$0xff] }
 0x3a8   : > { %4811 = vlog2.f32 %v957_v54 }
 0x3aa   : > { %2226 = vbcast.lane.b32.xlu1 %v2164_v29, 376  ;;  %v6001_v24 = vpop.permute.xlu1 %1969  ;;  %v6003_v34 = vpop.permute.xlu0 %1981 }
 0x3ab   : > { %7695 = vst [vmem:[#allocation296_spill] sm:$0xff] %v6001_v24  ;;  %7696 = vst [vmem:[#allocation297_spill] sm:$0xff] %v6003_v34  ;;  %2233 = vbcast.lane.b32.xlu0 %v2231_v40, 256 }
 0x3ae   : > { %2237 = vbcast.lane.b32.xlu1 %v2231_v40, 264  ;;  %v6005_v60 = vpop.permute.xlu1 %1977  ;;  %v6007_v45 = vpop.permute.xlu0 %1989 }
 0x3af   : > { %7697 = vst [vmem:[#allocation298_spill] sm:$0xff] %v6005_v60  ;;  %7698 = vst [vmem:[#allocation299_spill] sm:$0xff] %v6007_v45  ;;  %2241 = vbcast.lane.b32.xlu0 %v2231_v40, 272 }
 0x3b2   : > { %2245 = vbcast.lane.b32.xlu1 %v2231_v40, 280  ;;  %v6011_v10 = vpop.permute.xlu1 %1985  ;;  %v6013_v38 = vpop.permute.xlu0 %1997 }
 0x3b3   : > { %7700 = vst [vmem:[#allocation300_spill] sm:$0xff] %v6011_v10  ;;  %7701 = vst [vmem:[#allocation301_spill] sm:$0xff] %v6013_v38  ;;  %2249 = vbcast.lane.b32.xlu0 %v2231_v40, 288 }
 0x3b5   : > { %v4812_v38 = vpop.eup %4811 }
 0x3b6   : > { %2253 = vbcast.lane.b32.xlu1 %v2231_v40, 296  ;;  %v6015_v29 = vpop.permute.xlu1 %1993  ;;  %v6017_v37 = vpop.permute.xlu0 %2005 }
 0x3b7   : > { %7702 = vst [vmem:[#allocation302_spill] sm:$0xff] %v6015_v29  ;;  %7703 = vst [vmem:[#allocation303_spill] sm:$0xff] %v6017_v37  ;;  %2257 = vbcast.lane.b32.xlu0 %v2231_v40, 304  ;;  %v6031_v37 = vmul.f32 0.6931472, %v4812_v38 }
 0x3ba   : > { %2261 = vbcast.lane.b32.xlu1 %v2231_v40, 312  ;;  %v6019_v34 = vpop.permute.xlu1 %2001  ;;  %v6021_v45 = vpop.permute.xlu0 %2013 }
 0x3bb   : > { %7704 = vst [vmem:[#allocation304_spill] sm:$0xff] %v6019_v34  ;;  %7705 = vst [vmem:[#allocation305_spill] sm:$0xff] %v6021_v45  ;;  %2265 = vbcast.lane.b32.xlu0 %v2231_v40, 320 }
 0x3be   : > { %2269 = vbcast.lane.b32.xlu1 %v2231_v40, 328  ;;  %v6023_v60 = vpop.permute.xlu1 %2009  ;;  %v6025_v10 = vpop.permute.xlu0 %2021 }
 0x3bf   : > { %7706 = vst [vmem:[#allocation306_spill] sm:$0xff] %v6023_v60  ;;  %7707 = vst [vmem:[#allocation307_spill] sm:$0xff] %v6025_v10  ;;  %2273 = vbcast.lane.b32.xlu0 %v2231_v40, 336  ;;  %v2557_v60 = vrot.slane %v6031_v37, %v5452_v21 }
 0x3c2   : > { %2277 = vbcast.lane.b32.xlu1 %v2231_v40, 344  ;;  %v6027_v54 = vpop.permute.xlu1 %2017  ;;  %v6029_v29 = vpop.permute.xlu0 %2032 }
 0x3c3   : > { %7708 = vst [vmem:[#allocation308_spill] sm:$0xff] %v6027_v54  ;;  %7709 = vst [vmem:[#allocation309_spill] sm:$0xff] %v6029_v29  ;;  %2281 = vbcast.lane.b32.xlu0 %v2231_v40, 352 }
 0x3c6   : > { %2285 = vbcast.lane.b32.xlu1 %v2231_v40, 360  ;;  %v6033_v34 = vpop.permute.xlu1 %2025  ;;  %v6035_v45 = vpop.permute.xlu0 %2040 }
 0x3c7   : > { %7710 = vst [vmem:[#allocation310_spill] sm:$0xff] %v6033_v34  ;;  %7711 = vst [vmem:[#allocation311_spill] sm:$0xff] %v6035_v45  ;;  %2289 = vbcast.lane.b32.xlu0 %v2231_v40, 368 }
 0x3ca   : > { %2293 = vbcast.lane.b32.xlu1 %v2231_v40, 376  ;;  %v6039_v10 = vpop.permute.xlu1 %2036  ;;  %v6041_v24 = vpop.permute.xlu0 %2048 }
 0x3cb   : > { %7712 = vst [vmem:[#allocation312_spill] sm:$0xff] %v6039_v10  ;;  %7713 = vst [vmem:[#allocation313_spill] sm:$0xff] %v6041_v24  ;;  %2559 = vbcast.lane.b32.xlu0 %v2557_v60, 256 }
 0x3ce   : > { %2563 = vbcast.lane.b32.xlu1 %v2557_v60, 264  ;;  %v6043_v29 = vpop.permute.xlu1 %2044  ;;  %v6045_v38 = vpop.permute.xlu0 %2056 }
 0x3cf   : > { %7714 = vst [vmem:[#allocation314_spill] sm:$0xff] %v6043_v29  ;;  %7715 = vst [vmem:[#allocation315_spill] sm:$0xff] %v6045_v38  ;;  %2567 = vbcast.lane.b32.xlu0 %v2557_v60, 272 }
 0x3d2   : > { %2571 = vbcast.lane.b32.xlu1 %v2557_v60, 280  ;;  %v6047_v34 = vpop.permute.xlu1 %2052  ;;  %v6049_v45 = vpop.permute.xlu0 %2064 }
 0x3d3   : > { %7716 = vst [vmem:[#allocation316_spill] sm:$0xff] %v6047_v34  ;;  %7717 = vst [vmem:[#allocation317_spill] sm:$0xff] %v6049_v45  ;;  %2575 = vbcast.lane.b32.xlu0 %v2557_v60, 288 }
 0x3d6   : > { %2579 = vbcast.lane.b32.xlu1 %v2557_v60, 296  ;;  %v6051_v21 = vpop.permute.xlu1 %2060  ;;  %v6053_v40 = vpop.permute.xlu0 %2072 }
 0x3d7   : > { %7718 = vst [vmem:[#allocation318_spill] sm:$0xff] %v6051_v21  ;;  %7719 = vst [vmem:[#allocation319_spill] sm:$0xff] %v6053_v40  ;;  %2583 = vbcast.lane.b32.xlu0 %v2557_v60, 304 }
 0x3da   : > { %2587 = vbcast.lane.b32.xlu1 %v2557_v60, 312  ;;  %v6055_v24 = vpop.permute.xlu1 %2068  ;;  %v6057_v10 = vpop.permute.xlu0 %2080 }
 0x3db   : > { %7720 = vst [vmem:[#allocation320_spill] sm:$0xff] %v6055_v24  ;;  %7721 = vst [vmem:[#allocation321_spill] sm:$0xff] %v6057_v10  ;;  %2591 = vbcast.lane.b32.xlu0 %v2557_v60, 320  ;;  %v2624_v10 = vrot.slane %v6031_v37, %v5495_v49 }
 0x3de   : > { %2595 = vbcast.lane.b32.xlu1 %v2557_v60, 328  ;;  %v6059_v38 = vpop.permute.xlu1 %2076  ;;  %v6061_v29 = vpop.permute.xlu0 %2088 }
 0x3df   : > { %7722 = vst [vmem:[#allocation322_spill] sm:$0xff] %v6059_v38  ;;  %7723 = vst [vmem:[#allocation323_spill] sm:$0xff] %v6061_v29  ;;  %2599 = vbcast.lane.b32.xlu0 %v2557_v60, 336 }
 0x3e2   : > { %2603 = vbcast.lane.b32.xlu1 %v2557_v60, 344  ;;  %v6063_v45 = vpop.permute.xlu1 %2084  ;;  %v6065_v34 = vpop.permute.xlu0 %2099 }
 0x3e3   : > { %7724 = vst [vmem:[#allocation324_spill] sm:$0xff] %v6063_v45  ;;  %7725 = vst [vmem:[#allocation325_spill] sm:$0xff] %v6065_v34  ;;  %2607 = vbcast.lane.b32.xlu0 %v2557_v60, 352 }
 0x3e6   : > { %2611 = vbcast.lane.b32.xlu1 %v2557_v60, 360  ;;  %v6067_v40 = vpop.permute.xlu1 %2092  ;;  %v6069_v21 = vpop.permute.xlu0 %2107 }
 0x3e7   : > { %7726 = vst [vmem:[#allocation326_spill] sm:$0xff] %v6067_v40  ;;  %7727 = vst [vmem:[#allocation327_spill] sm:$0xff] %v6069_v21  ;;  %2615 = vbcast.lane.b32.xlu0 %v2557_v60, 368 }
 0x3ea   : > { %2619 = vbcast.lane.b32.xlu1 %v2557_v60, 376  ;;  %v6073_v38 = vpop.permute.xlu1 %2103  ;;  %v6075_v29 = vpop.permute.xlu0 %2115 }
 0x3eb   : > { %7728 = vst [vmem:[#allocation328_spill] sm:$0xff] %v6073_v38  ;;  %7729 = vst [vmem:[#allocation329_spill] sm:$0xff] %v6075_v29  ;;  %2626 = vbcast.lane.b32.xlu0 %v2624_v10, 256 }
 0x3ee   : > { %2630 = vbcast.lane.b32.xlu1 %v2624_v10, 264  ;;  %v6077_v45 = vpop.permute.xlu1 %2111  ;;  %v6079_v34 = vpop.permute.xlu0 %2123 }
 0x3ef   : > { %7730 = vst [vmem:[#allocation330_spill] sm:$0xff] %v6077_v45  ;;  %7731 = vst [vmem:[#allocation331_spill] sm:$0xff] %v6079_v34  ;;  %2634 = vbcast.lane.b32.xlu0 %v2624_v10, 272 }
 0x3f2   : > { %2638 = vbcast.lane.b32.xlu1 %v2624_v10, 280  ;;  %v6081_v40 = vpop.permute.xlu1 %2119  ;;  %v6083_v21 = vpop.permute.xlu0 %2131 }
 0x3f3   : > { %7732 = vst [vmem:[#allocation332_spill] sm:$0xff] %v6081_v40  ;;  %7733 = vst [vmem:[#allocation333_spill] sm:$0xff] %v6083_v21  ;;  %2642 = vbcast.lane.b32.xlu0 %v2624_v10, 288 }
 0x3f6   : > { %2646 = vbcast.lane.b32.xlu1 %v2624_v10, 296  ;;  %v6085_v49 = vpop.permute.xlu1 %2127  ;;  %v6087_v60 = vpop.permute.xlu0 %2139 }
 0x3f7   : > { %7734 = vst [vmem:[#allocation334_spill] sm:$0xff] %v6085_v49  ;;  %7735 = vst [vmem:[#allocation335_spill] sm:$0xff] %v6087_v60  ;;  %2650 = vbcast.lane.b32.xlu0 %v2624_v10, 304 }
 0x3fa   : > { %2654 = vbcast.lane.b32.xlu1 %v2624_v10, 312  ;;  %v6089_v29 = vpop.permute.xlu1 %2135  ;;  %v6091_v38 = vpop.permute.xlu0 %2147 }
 0x3fb   : > { %7736 = vst [vmem:[#allocation336_spill] sm:$0xff] %v6089_v29  ;;  %7737 = vst [vmem:[#allocation337_spill] sm:$0xff] %v6091_v38  ;;  %2658 = vbcast.lane.b32.xlu0 %v2624_v10, 320  ;;  %v2691_v38 = vrot.slane %v6031_v37, %v5532_v5 }
 0x3fe   : > { %2662 = vbcast.lane.b32.xlu1 %v2624_v10, 328  ;;  %v6093_v34 = vpop.permute.xlu1 %2143  ;;  %v6095_v45 = vpop.permute.xlu0 %2155 }
 0x3ff   : > { %7738 = vst [vmem:[#allocation338_spill] sm:$0xff] %v6093_v34  ;;  %7739 = vst [vmem:[#allocation339_spill] sm:$0xff] %v6095_v45  ;;  %2666 = vbcast.lane.b32.xlu0 %v2624_v10, 336 }
 0x402   : > { %2670 = vbcast.lane.b32.xlu1 %v2624_v10, 344  ;;  %v6097_v21 = vpop.permute.xlu1 %2151  ;;  %v6099_v40 = vpop.permute.xlu0 %2166 }
 0x403   : > { %7740 = vst [vmem:[#allocation340_spill] sm:$0xff] %v6097_v21  ;;  %7741 = vst [vmem:[#allocation341_spill] sm:$0xff] %v6099_v40  ;;  %2674 = vbcast.lane.b32.xlu0 %v2624_v10, 352 }
 0x406   : > { %2678 = vbcast.lane.b32.xlu1 %v2624_v10, 360  ;;  %v6101_v60 = vpop.permute.xlu1 %2159  ;;  %v6103_v49 = vpop.permute.xlu0 %2174 }
 0x407   : > { %7742 = vst [vmem:[#allocation342_spill] sm:$0xff] %v6101_v60  ;;  %7743 = vst [vmem:[#allocation343_spill] sm:$0xff] %v6103_v49  ;;  %2682 = vbcast.lane.b32.xlu0 %v2624_v10, 368 }
 0x40a   : > { %2686 = vbcast.lane.b32.xlu1 %v2624_v10, 376  ;;  %v6107_v34 = vpop.permute.xlu1 %2170  ;;  %v6109_v45 = vpop.permute.xlu0 %2182 }
 0x40b   : > { %7744 = vst [vmem:[#allocation344_spill] sm:$0xff] %v6107_v34  ;;  %7745 = vst [vmem:[#allocation345_spill] sm:$0xff] %v6109_v45  ;;  %2693 = vbcast.lane.b32.xlu0 %v2691_v38, 256 }
 0x40e   : > { %2697 = vbcast.lane.b32.xlu1 %v2691_v38, 264  ;;  %v6111_v21 = vpop.permute.xlu1 %2178  ;;  %v6113_v40 = vpop.permute.xlu0 %2190 }
 0x40f   : > { %7746 = vst [vmem:[#allocation346_spill] sm:$0xff] %v6111_v21  ;;  %7747 = vst [vmem:[#allocation347_spill] sm:$0xff] %v6113_v40  ;;  %2701 = vbcast.lane.b32.xlu0 %v2691_v38, 272 }
 0x412   : > { %2705 = vbcast.lane.b32.xlu1 %v2691_v38, 280  ;;  %v6115_v60 = vpop.permute.xlu1 %2186  ;;  %v6117_v49 = vpop.permute.xlu0 %2198 }
 0x413   : > { %7748 = vst [vmem:[#allocation348_spill] sm:$0xff] %v6115_v60  ;;  %7749 = vst [vmem:[#allocation349_spill] sm:$0xff] %v6117_v49  ;;  %2709 = vbcast.lane.b32.xlu0 %v2691_v38, 288 }
 0x416   : > { %2713 = vbcast.lane.b32.xlu1 %v2691_v38, 296  ;;  %v6119_v5 = vpop.permute.xlu1 %2194  ;;  %v6121_v10 = vpop.permute.xlu0 %2206 }
 0x417   : > { %7750 = vst [vmem:[#allocation350_spill] sm:$0xff] %v6119_v5  ;;  %7751 = vst [vmem:[#allocation351_spill] sm:$0xff] %v6121_v10  ;;  %2717 = vbcast.lane.b32.xlu0 %v2691_v38, 304 }
 0x41a   : > { %2721 = vbcast.lane.b32.xlu1 %v2691_v38, 312  ;;  %v6123_v45 = vpop.permute.xlu1 %2202  ;;  %v6125_v34 = vpop.permute.xlu0 %2214 }
 0x41b   : > { %7752 = vst [vmem:[#allocation352_spill] sm:$0xff] %v6123_v45  ;;  %7753 = vst [vmem:[#allocation353_spill] sm:$0xff] %v6125_v34  ;;  %2725 = vbcast.lane.b32.xlu0 %v2691_v38, 320  ;;  %v2758_v34 = vrot.slane %v6031_v37, %v5569_v48 }
 0x41e   : > { %2729 = vbcast.lane.b32.xlu1 %v2691_v38, 328  ;;  %v6127_v40 = vpop.permute.xlu1 %2210  ;;  %v6129_v21 = vpop.permute.xlu0 %2222 }
 0x41f   : > { %7754 = vst [vmem:[#allocation354_spill] sm:$0xff] %v6127_v40  ;;  %7755 = vst [vmem:[#allocation355_spill] sm:$0xff] %v6129_v21  ;;  %2733 = vbcast.lane.b32.xlu0 %v2691_v38, 336 }
 0x422   : > { %2737 = vbcast.lane.b32.xlu1 %v2691_v38, 344  ;;  %v6131_v49 = vpop.permute.xlu1 %2218  ;;  %v6133_v60 = vpop.permute.xlu0 %2233 }
 0x423   : > { %7756 = vst [vmem:[#allocation356_spill] sm:$0xff] %v6131_v49  ;;  %7757 = vst [vmem:[#allocation357_spill] sm:$0xff] %v6133_v60  ;;  %2741 = vbcast.lane.b32.xlu0 %v2691_v38, 352 }
 0x426   : > { %2745 = vbcast.lane.b32.xlu1 %v2691_v38, 360  ;;  %v6135_v10 = vpop.permute.xlu1 %2226  ;;  %v6137_v5 = vpop.permute.xlu0 %2241 }
 0x427   : > { %7758 = vst [vmem:[#allocation358_spill] sm:$0xff] %v6135_v10  ;;  %7759 = vst [vmem:[#allocation359_spill] sm:$0xff] %v6137_v5  ;;  %2749 = vbcast.lane.b32.xlu0 %v2691_v38, 368 }
 0x42a   : > { %2753 = vbcast.lane.b32.xlu1 %v2691_v38, 376  ;;  %v6141_v40 = vpop.permute.xlu1 %2237  ;;  %v6143_v21 = vpop.permute.xlu0 %2249 }
 0x42b   : > { %7760 = vst [vmem:[#allocation360_spill] sm:$0xff] %v6141_v40  ;;  %7761 = vst [vmem:[#allocation361_spill] sm:$0xff] %v6143_v21  ;;  %2760 = vbcast.lane.b32.xlu0 %v2758_v34, 256 }
 0x42e   : > { %2764 = vbcast.lane.b32.xlu1 %v2758_v34, 264  ;;  %v6145_v49 = vpop.permute.xlu1 %2245  ;;  %v6147_v60 = vpop.permute.xlu0 %2257 }
 0x42f   : > { %7762 = vst [vmem:[#allocation362_spill] sm:$0xff] %v6145_v49  ;;  %7763 = vst [vmem:[#allocation363_spill] sm:$0xff] %v6147_v60  ;;  %2768 = vbcast.lane.b32.xlu0 %v2758_v34, 272 }
 0x432   : > { %2772 = vbcast.lane.b32.xlu1 %v2758_v34, 280  ;;  %v6149_v10 = vpop.permute.xlu1 %2253  ;;  %v6151_v5 = vpop.permute.xlu0 %2265 }
 0x433   : > { %7764 = vst [vmem:[#allocation364_spill] sm:$0xff] %v6149_v10  ;;  %7765 = vst [vmem:[#allocation365_spill] sm:$0xff] %v6151_v5  ;;  %2776 = vbcast.lane.b32.xlu0 %v2758_v34, 288 }
 0x436   : > { %2780 = vbcast.lane.b32.xlu1 %v2758_v34, 296  ;;  %v6153_v48 = vpop.permute.xlu1 %2261  ;;  %v6155_v38 = vpop.permute.xlu0 %2273 }
 0x437   : > { %7766 = vst [vmem:[#allocation366_spill] sm:$0xff] %v6153_v48  ;;  %7767 = vst [vmem:[#allocation367_spill] sm:$0xff] %v6155_v38  ;;  %2784 = vbcast.lane.b32.xlu0 %v2758_v34, 304 }
 0x43a   : > { %2788 = vbcast.lane.b32.xlu1 %v2758_v34, 312  ;;  %v6157_v21 = vpop.permute.xlu1 %2269  ;;  %v6159_v40 = vpop.permute.xlu0 %2281 }
 0x43b   : > { %7768 = vst [vmem:[#allocation368_spill] sm:$0xff] %v6157_v21  ;;  %7769 = vst [vmem:[#allocation369_spill] sm:$0xff] %v6159_v40  ;;  %2792 = vbcast.lane.b32.xlu0 %v2758_v34, 320  ;;  %v2825_v40 = vrot.slane %v6031_v37, %v5606_v14  ;;  %v5061_v21 = vmov 0  }
 0x43c   : > { %4809 = vset.pattern.permute.xlu0 %v5061_v21  ;;  %4810 = vset.pattern.permute.xlu1 %v5061_v21 }
 0x43e   : > { %2796 = vbcast.lane.b32.xlu1 %v2758_v34, 328  ;;  %v6161_v60 = vpop.permute.xlu1 %2277  ;;  %v6163_v49 = vpop.permute.xlu0 %2289 }
 0x43f   : > { %7770 = vst [vmem:[#allocation370_spill] sm:$0xff] %v6161_v60  ;;  %7771 = vst [vmem:[#allocation371_spill] sm:$0xff] %v6163_v49  ;;  %2800 = vbcast.lane.b32.xlu0 %v2758_v34, 336 }
 0x442   : > { %2804 = vbcast.lane.b32.xlu1 %v2758_v34, 344  ;;  %v6165_v5 = vpop.permute.xlu1 %2285  ;;  %v6167_v10 = vpop.permute.xlu0 %2559 }
 0x443   : > { %7772 = vst [vmem:[#allocation372_spill] sm:$0xff] %v6165_v5  ;;  %2808 = vbcast.lane.b32.xlu0 %v2758_v34, 352 }
 0x446   : > { %2812 = vbcast.lane.b32.xlu1 %v2758_v34, 360  ;;  %v6169_v38 = vpop.permute.xlu1 %2293  ;;  %v6171_v48 = vpop.permute.xlu0 %2567 }
 0x447   : > { %7773 = vst [vmem:[#allocation373_spill] sm:$0xff] %v6169_v38  ;;  %2816 = vbcast.lane.b32.xlu0 %v2758_v34, 368 }
 0x44a   : > { %2820 = vbcast.lane.b32.xlu1 %v2758_v34, 376  ;;  %v6175_v49 = vpop.permute.xlu1 %2563  ;;  %v6177_v60 = vpop.permute.xlu0 %2575 }
 0x44b   : > { %2827 = vbcast.lane.b32.xlu0 %v2825_v40, 256 }
 0x44e   : > { %2831 = vbcast.lane.b32.xlu1 %v2825_v40, 264  ;;  %v6179_v5 = vpop.permute.xlu1 %2571  ;;  %v6181_v45 = vpop.permute.xlu0 %2583 }
 0x44f   : > { %2835 = vbcast.lane.b32.xlu0 %v2825_v40, 272 }
 0x452   : > { %2839 = vbcast.lane.b32.xlu1 %v2825_v40, 280  ;;  %v6183_v38 = vpop.permute.xlu1 %2579  ;;  %v6185_v29 = vpop.permute.xlu0 %2591 }
 0x453   : > { %2843 = vbcast.lane.b32.xlu0 %v2825_v40, 288 }
 0x456   : > { %2847 = vbcast.lane.b32.xlu1 %v2825_v40, 296  ;;  %v6187_v14 = vpop.permute.xlu1 %2587  ;;  %v6189_v34 = vpop.permute.xlu0 %2599 }
 0x457   : > { %7774 = vst [vmem:[#allocation374_spill] sm:$0xff] %v6189_v34  ;;  %2851 = vbcast.lane.b32.xlu0 %v2825_v40, 304 }
 0x45a   : > { %2855 = vbcast.lane.b32.xlu1 %v2825_v40, 312  ;;  %v6191_v21 = vpop.permute.xlu1 %2595  ;;  %v6193_v24 = vpop.permute.xlu0 %2607 }
 0x45b   : > { %7775 = vst [vmem:[#allocation375_spill] sm:$0xff] %v6193_v24  ;;  %2859 = vbcast.lane.b32.xlu0 %v2825_v40, 320  ;;  %v2892_v24 = vrot.slane %v6031_v37, %v5643_v44 }
 0x45e   : > { %2863 = vbcast.lane.b32.xlu1 %v2825_v40, 328  ;;  %v6195_v54 = vpop.permute.xlu1 %2603  ;;  %v6197_v9 = vpop.permute.xlu0 %2615 }
 0x45f   : > { %7776 = vst [vmem:[#allocation376_spill] sm:$0xff] %v6197_v9  ;;  %2867 = vbcast.lane.b32.xlu0 %v2825_v40, 336 }
 0x462   : > { %2871 = vbcast.lane.b32.xlu1 %v2825_v40, 344  ;;  %v6199_v19 = vpop.permute.xlu1 %2611  ;;  %v6201_v50 = vpop.permute.xlu0 %2626 }
 0x463   : > { %7777 = vst [vmem:[#allocation377_spill] sm:$0xff] %v6199_v19  ;;  %7778 = vst [vmem:[#allocation378_spill] sm:$0xff] %v6201_v50  ;;  %2875 = vbcast.lane.b32.xlu0 %v2825_v40, 352 }
 0x466   : > { %2879 = vbcast.lane.b32.xlu1 %v2825_v40, 360  ;;  %v6203_v36 = vpop.permute.xlu1 %2619  ;;  %v6205_v15 = vpop.permute.xlu0 %2634 }
 0x467   : > { %7779 = vst [vmem:[#allocation379_spill] sm:$0xff] %v6203_v36  ;;  %7780 = vst [vmem:[#allocation380_spill] sm:$0xff] %v6205_v15  ;;  %2883 = vbcast.lane.b32.xlu0 %v2825_v40, 368 }
 0x46a   : > { %2887 = vbcast.lane.b32.xlu1 %v2825_v40, 376  ;;  %v6209_v34 = vpop.permute.xlu1 %2630  ;;  %v6211_v9 = vpop.permute.xlu0 %2642 }
 0x46b   : > { %7781 = vst [vmem:[#allocation381_spill] sm:$0xff] %v6209_v34  ;;  %7782 = vst [vmem:[#allocation382_spill] sm:$0xff] %v6211_v9  ;;  %2894 = vbcast.lane.b32.xlu0 %v2892_v24, 256 }
 0x46e   : > { %2898 = vbcast.lane.b32.xlu1 %v2892_v24, 264  ;;  %v6213_v19 = vpop.permute.xlu1 %2638  ;;  %v6215_v50 = vpop.permute.xlu0 %2650 }
 0x46f   : > { %7783 = vst [vmem:[#allocation383_spill] sm:$0xff] %v6213_v19  ;;  %7784 = vst [vmem:[#allocation384_spill] sm:$0xff] %v6215_v50  ;;  %2902 = vbcast.lane.b32.xlu0 %v2892_v24, 272 }
 0x472   : > { %2906 = vbcast.lane.b32.xlu1 %v2892_v24, 280  ;;  %v6217_v36 = vpop.permute.xlu1 %2646  ;;  %v6219_v15 = vpop.permute.xlu0 %2658 }
 0x473   : > { %7785 = vst [vmem:[#allocation385_spill] sm:$0xff] %v6217_v36  ;;  %7786 = vst [vmem:[#allocation386_spill] sm:$0xff] %v6219_v15  ;;  %2910 = vbcast.lane.b32.xlu0 %v2892_v24, 288 }
 0x476   : > { %2914 = vbcast.lane.b32.xlu1 %v2892_v24, 296  ;;  %v6221_v44 = vpop.permute.xlu1 %2654  ;;  %v6223_v40 = vpop.permute.xlu0 %2666 }
 0x477   : > { %7787 = vst [vmem:[#allocation387_spill] sm:$0xff] %v6221_v44  ;;  %7788 = vst [vmem:[#allocation388_spill] sm:$0xff] %v6223_v40  ;;  %2918 = vbcast.lane.b32.xlu0 %v2892_v24, 304 }
 0x47a   : > { %2922 = vbcast.lane.b32.xlu1 %v2892_v24, 312  ;;  %v6225_v9 = vpop.permute.xlu1 %2662  ;;  %v6227_v34 = vpop.permute.xlu0 %2674 }
 0x47b   : > { %7789 = vst [vmem:[#allocation389_spill] sm:$0xff] %v6227_v34  ;;  %2926 = vbcast.lane.b32.xlu0 %v2892_v24, 320  ;;  %v2959_v34 = vrot.slane %v6031_v37, %v5680_v52 }
 0x47e   : > { %2930 = vbcast.lane.b32.xlu1 %v2892_v24, 328  ;;  %v6229_v50 = vpop.permute.xlu1 %2670  ;;  %v6231_v19 = vpop.permute.xlu0 %2682 }
 0x47f   : > { %7790 = vst [vmem:[#allocation390_spill] sm:$0xff] %v6229_v50  ;;  %7791 = vst [vmem:[#allocation391_spill] sm:$0xff] %v6231_v19  ;;  %2934 = vbcast.lane.b32.xlu0 %v2892_v24, 336 }
 0x482   : > { %2938 = vbcast.lane.b32.xlu1 %v2892_v24, 344  ;;  %v6233_v15 = vpop.permute.xlu1 %2678  ;;  %v6235_v36 = vpop.permute.xlu0 %2693 }
 0x483   : > { %7792 = vst [vmem:[#allocation392_spill] sm:$0xff] %v6233_v15  ;;  %7793 = vst [vmem:[#allocation393_spill] sm:$0xff] %v6235_v36  ;;  %2942 = vbcast.lane.b32.xlu0 %v2892_v24, 352 }
 0x486   : > { %2946 = vbcast.lane.b32.xlu1 %v2892_v24, 360  ;;  %v6237_v40 = vpop.permute.xlu1 %2686  ;;  %v6239_v44 = vpop.permute.xlu0 %2701 }
 0x487   : > { %7794 = vst [vmem:[#allocation394_spill] sm:$0xff] %v6237_v40  ;;  %7795 = vst [vmem:[#allocation395_spill] sm:$0xff] %v6239_v44  ;;  %2950 = vbcast.lane.b32.xlu0 %v2892_v24, 368 }
 0x48a   : > { %2954 = vbcast.lane.b32.xlu1 %v2892_v24, 376  ;;  %v6243_v50 = vpop.permute.xlu1 %2697  ;;  %v6245_v19 = vpop.permute.xlu0 %2709 }
 0x48b   : > { %7796 = vst [vmem:[#allocation396_spill] sm:$0xff] %v6243_v50  ;;  %7797 = vst [vmem:[#allocation397_spill] sm:$0xff] %v6245_v19  ;;  %2961 = vbcast.lane.b32.xlu0 %v2959_v34, 256 }
 0x48e   : > { %2965 = vbcast.lane.b32.xlu1 %v2959_v34, 264  ;;  %v6247_v15 = vpop.permute.xlu1 %2705  ;;  %v6249_v36 = vpop.permute.xlu0 %2717 }
 0x48f   : > { %7798 = vst [vmem:[#allocation398_spill] sm:$0xff] %v6247_v15  ;;  %7799 = vst [vmem:[#allocation399_spill] sm:$0xff] %v6249_v36  ;;  %2969 = vbcast.lane.b32.xlu0 %v2959_v34, 272 }
 0x492   : > { %2973 = vbcast.lane.b32.xlu1 %v2959_v34, 280  ;;  %v6251_v40 = vpop.permute.xlu1 %2713  ;;  %v6253_v44 = vpop.permute.xlu0 %2725 }
 0x493   : > { %7800 = vst [vmem:[#allocation400_spill] sm:$0xff] %v6251_v40  ;;  %7801 = vst [vmem:[#allocation401_spill] sm:$0xff] %v6253_v44  ;;  %2977 = vbcast.lane.b32.xlu0 %v2959_v34, 288 }
 0x496   : > { %2981 = vbcast.lane.b32.xlu1 %v2959_v34, 296  ;;  %v6255_v52 = vpop.permute.xlu1 %2721  ;;  %v6257_v24 = vpop.permute.xlu0 %2733 }
 0x497   : > { %7802 = vst [vmem:[#allocation402_spill] sm:$0xff] %v6255_v52  ;;  %7803 = vst [vmem:[#allocation403_spill] sm:$0xff] %v6257_v24  ;;  %2985 = vbcast.lane.b32.xlu0 %v2959_v34, 304 }
 0x49a   : > { %2989 = vbcast.lane.b32.xlu1 %v2959_v34, 312  ;;  %v6259_v19 = vpop.permute.xlu1 %2729  ;;  %v6261_v50 = vpop.permute.xlu0 %2741 }
 0x49b   : > { %7804 = vst [vmem:[#allocation404_spill] sm:$0xff] %v6261_v50  ;;  %2993 = vbcast.lane.b32.xlu0 %v2959_v34, 320  ;;  %v3026_v50 = vrot.slane %v6031_v37, %v5717_v17 }
 0x49e   : > { %2997 = vbcast.lane.b32.xlu1 %v2959_v34, 328  ;;  %v6263_v36 = vpop.permute.xlu1 %2737  ;;  %v6265_v15 = vpop.permute.xlu0 %2749 }
 0x49f   : > { %7805 = vst [vmem:[#allocation405_spill] sm:$0xff] %v6263_v36  ;;  %7806 = vst [vmem:[#allocation406_spill] sm:$0xff] %v6265_v15  ;;  %3001 = vbcast.lane.b32.xlu0 %v2959_v34, 336 }
 0x4a2   : > { %3005 = vbcast.lane.b32.xlu1 %v2959_v34, 344  ;;  %v6267_v44 = vpop.permute.xlu1 %2745  ;;  %v6269_v40 = vpop.permute.xlu0 %2760 }
 0x4a3   : > { %7807 = vst [vmem:[#allocation407_spill] sm:$0xff] %v6267_v44  ;;  %7808 = vst [vmem:[#allocation408_spill] sm:$0xff] %v6269_v40  ;;  %3009 = vbcast.lane.b32.xlu0 %v2959_v34, 352 }
 0x4a6   : > { %3013 = vbcast.lane.b32.xlu1 %v2959_v34, 360  ;;  %v6271_v24 = vpop.permute.xlu1 %2753  ;;  %v6273_v52 = vpop.permute.xlu0 %2768 }
 0x4a7   : > { %7809 = vst [vmem:[#allocation409_spill] sm:$0xff] %v6271_v24  ;;  %7810 = vst [vmem:[#allocation410_spill] sm:$0xff] %v6273_v52  ;;  %3017 = vbcast.lane.b32.xlu0 %v2959_v34, 368 }
 0x4aa   : > { %3021 = vbcast.lane.b32.xlu1 %v2959_v34, 376  ;;  %v6277_v36 = vpop.permute.xlu1 %2764  ;;  %v6279_v15 = vpop.permute.xlu0 %2776 }
 0x4ab   : > { %7811 = vst [vmem:[#allocation411_spill] sm:$0xff] %v6279_v15  ;;  %3028 = vbcast.lane.b32.xlu0 %v3026_v50, 256 }
 0x4ae   : > { %3032 = vbcast.lane.b32.xlu1 %v3026_v50, 264  ;;  %v6281_v44 = vpop.permute.xlu1 %2772  ;;  %v6283_v40 = vpop.permute.xlu0 %2784 }
 0x4af   : > { %7812 = vst [vmem:[#allocation412_spill] sm:$0xff] %v6281_v44  ;;  %7813 = vst [vmem:[#allocation413_spill] sm:$0xff] %v6283_v40  ;;  %3036 = vbcast.lane.b32.xlu0 %v3026_v50, 272 }
 0x4b2   : > { %3040 = vbcast.lane.b32.xlu1 %v3026_v50, 280  ;;  %v6285_v24 = vpop.permute.xlu1 %2780  ;;  %v6287_v52 = vpop.permute.xlu0 %2792 }
 0x4b3   : > { %7814 = vst [vmem:[#allocation414_spill] sm:$0xff] %v6285_v24  ;;  %7815 = vst [vmem:[#allocation415_spill] sm:$0xff] %v6287_v52  ;;  %3044 = vbcast.lane.b32.xlu0 %v3026_v50, 288 }
 0x4b6   : > { %3048 = vbcast.lane.b32.xlu1 %v3026_v50, 296  ;;  %v6289_v17 = vpop.permute.xlu1 %2788  ;;  %v6291_v37 = vpop.permute.xlu0 %2800 }
 0x4b7   : > { %7816 = vst [vmem:[#allocation416_spill] sm:$0xff] %v6289_v17  ;;  %7817 = vst [vmem:[#allocation417_spill] sm:$0xff] %v6291_v37  ;;  %3052 = vbcast.lane.b32.xlu0 %v3026_v50, 304  ;;  %v1629_v37 = vadd.f32 %v5610_v16, %v5324_v27 }
 0x4ba   : > { %3056 = vbcast.lane.b32.xlu1 %v3026_v50, 312  ;;  %v6293_v34 = vpop.permute.xlu1 %2796  ;;  %v6295_v15 = vpop.permute.xlu0 %2808 }
 0x4bb   : > { %7818 = vst [vmem:[#allocation418_spill] sm:$0xff] %v6293_v34  ;;  %7819 = vst [vmem:[#allocation419_spill] sm:$0xff] %v6295_v15  ;;  %3060 = vbcast.lane.b32.xlu0 %v3026_v50, 320 }
 0x4be   : > { %3064 = vbcast.lane.b32.xlu1 %v3026_v50, 328  ;;  %v6297_v40 = vpop.permute.xlu1 %2804  ;;  %v6299_v44 = vpop.permute.xlu0 %2816 }
 0x4bf   : > { %7820 = vst [vmem:[#allocation420_spill] sm:$0xff] %v6297_v40  ;;  %7821 = vst [vmem:[#allocation421_spill] sm:$0xff] %v6299_v44  ;;  %3068 = vbcast.lane.b32.xlu0 %v3026_v50, 336  ;;  %v1630_v40 = vadd.f32 %v5608_v28, %v5328_v35  ;;  %v2423_v44 = vadd.f32 %v5891_v53, %v1629_v37  ;;  %v7833_v37 = vld [vmem:[#allocation375_spill] sm:$0xff] }
 0x4c1   : > { %v3218_v17 = vsub.f32 %v2423_v44, %v6167_v10  ;;  %v7829_v44 = vld [vmem:[#allocation377_spill] sm:$0xff] }
 0x4c2   : > { %3072 = vbcast.lane.b32.xlu1 %v3026_v50, 344  ;;  %v6301_v52 = vpop.permute.xlu1 %2812  ;;  %v6303_v24 = vpop.permute.xlu0 %2827 }
 0x4c3   : > { %7822 = vst [vmem:[#allocation422_spill] sm:$0xff] %v6301_v52  ;;  %7823 = vst [vmem:[#allocation423_spill] sm:$0xff] %v6303_v24  ;;  %3076 = vbcast.lane.b32.xlu0 %v3026_v50, 352  ;;  %v1632_v52 = vadd.f32 %v5618_v22, %v5326_v31  ;;  %v2424_v24 = vadd.f32 %v5899_v42, %v1630_v40  ;;  %v1634_v31 = vadd.f32 %v5622_v58, %v5330_v39 }
 0x4c4   : > { %v1636_v39 = vadd.f32 %v5626_v33, %v5334_v47  ;;  %v1638_v47 = vadd.f32 %v5630_v6, %v5338_v55  ;;  %v1640_v55 = vadd.f32 %v5634_v20, %v5342_v63  ;;  %v1642_v63 = vadd.f32 %v5638_v0, %v5346_v7  ;;  %v7828_v0 = vld [vmem:[#allocation259_spill] sm:$0xff] }
 0x4c5   : > { %v2426_v35 = vadd.f32 %v5903_v2, %v1632_v52  ;;  %v3219_v28 = vsub.f32 %v2424_v24, %v6175_v49  ;;  %v2428_v2 = vadd.f32 %v5907_v8, %v1634_v31  ;;  %v7830_v24 = vld [vmem:[#allocation31_spill] sm:$0xff]  ;;  %v7835_v31 = vld [vmem:[#allocation149_spill] sm:$0xff] }
 0x4c6   : > { %3080 = vbcast.lane.b32.xlu1 %v3026_v50, 360  ;;  %v6307_v34 = vpop.permute.xlu1 %2820  ;;  %v6309_v15 = vpop.permute.xlu0 %2835 }
 0x4c7   : > { %7824 = vst [vmem:[#allocation424_spill] sm:$0xff] %v6309_v15  ;;  %3084 = vbcast.lane.b32.xlu0 %v3026_v50, 368  ;;  %v1631_v15 = vadd.f32 %v5614_v12, %v5322_v23  ;;  %v3221_v42 = vsub.f32 %v2426_v35, %v6179_v5  ;;  %v1633_v23 = vadd.f32 %v5616_v57, %v5332_v43 }
 0x4c8   : > { %v1635_v43 = vadd.f32 %v5620_v1, %v5336_v51  ;;  %v2430_v57 = vadd.f32 %v5911_v56, %v1636_v39  ;;  %v1637_v51 = vadd.f32 %v5624_v41, %v5340_v59  ;;  %v2432_v56 = vadd.f32 %v5915_v4, %v1638_v47 }
 0x4c9   : > { %v2425_v22 = vadd.f32 %v5895_v25, %v1631_v15  ;;  %v2427_v15 = vadd.f32 %v5901_v13, %v1633_v23  ;;  %v3223_v25 = vsub.f32 %v2428_v2, %v6183_v38  ;;  %v1639_v59 = vadd.f32 %v5628_v62, %v5344_v3  ;;  %v7825_v62 = vld [vmem:[#allocation374_spill] sm:$0xff]  ;;  %v7837_v2 = vld [vmem:[#allocation379_spill] sm:$0xff] }
 0x4ca   : > { %3088 = vbcast.lane.b32.xlu1 %v3026_v50, 376  ;;  %v6318_v27 = vpop.permute.xlu1 %2831  ;;  %v6320_v16 = vpop.permute.xlu0 %2843  ;;  %v2429_v33 = vadd.f32 %v5905_v18, %v1635_v43  ;;  %v3225_v13 = vsub.f32 %v2430_v57, %v6187_v14  ;;  %v2431_v18 = vadd.f32 %v5909_v32, %v1637_v51  ;;  %v3227_v6 = vsub.f32 %v2432_v56, %v6191_v21  ;;  %v7826_v14 = vld [vmem:[#allocation30_spill] sm:$0xff]  ;;  %v7827_v21 = vld [vmem:[#allocation147_spill] sm:$0xff] }
 0x4cb   : > { %3475 = vperm.xlu0 %4809, %v3218_v17   ;;  %v3220_v12 = vsub.f32 %v2425_v22, %v6171_v48  ;;  %v3222_v8 = vsub.f32 %v2427_v15, %v6177_v60  ;;  %v2434_v4 = vadd.f32 %v5919_v46, %v1640_v55  ;;  %v2433_v32 = vadd.f32 %v5913_v61, %v1639_v59  ;;  %v7831_v17 = vld [vmem:[#allocation145_spill] sm:$0xff]  ;;  %v7839_v43 = vld [vmem:[#allocation146_spill] sm:$0xff]  ;;  %v7843_v56 = vld [vmem:[#allocation151_spill] sm:$0xff] }
 0x4cc   : > { %v3224_v1 = vsub.f32 %v2429_v33, %v6181_v45  ;;  %v3226_v45 = vsub.f32 %v2431_v18, %v6185_v29  ;;  %v1641_v3 = vadd.f32 %v5632_v30, %v5348_v11  ;;  %v2436_v46 = vadd.f32 %v5923_v26, %v1642_v63  ;;  %v7832_v30 = vld [vmem:[#allocation262_spill] sm:$0xff]  ;;  %v7841_v33 = vld [vmem:[#allocation376_spill] sm:$0xff]  ;;  %v7844_v55 = vld [vmem:[#allocation261_spill] sm:$0xff] }
 0x4cd   : > { %v3229_v20 = vsub.f32 %v2434_v4, %v6195_v54  ;;  %v3228_v29 = vsub.f32 %v2433_v32, %v7825_v62  ;;  %v1644_v7 = vadd.f32 %v7827_v21, %v7826_v14  ;;  %v1643_v11 = vadd.f32 %v7831_v17, %v7830_v24  ;;  %v7842_v51 = vld [vmem:[#allocation34_spill] sm:$0xff]  ;;  %v7846_v63 = vld [vmem:[#allocation35_spill] sm:$0xff]  ;;  %v7847_v32 = vld [vmem:[#allocation148_spill] sm:$0xff] }
 0x4ce   : > { %v6330_v50 = vpop.permute.xlu1 %2839  ;;  %3478 = vperm.xlu1 %4810, %v3219_v28   ;;  %v6332_v53 = vpop.permute.xlu0 %2851  ;;  %v2435_v61 = vadd.f32 %v7828_v0, %v1641_v3  ;;  %v3231_v54 = vsub.f32 %v2436_v46, %v7829_v44  ;;  %v7834_v28 = vld [vmem:[#allocation32_spill] sm:$0xff]  ;;  %v7848_v3 = vld [vmem:[#allocation266_spill] sm:$0xff]  ;;  %v7851_v21 = vld [vmem:[#allocation153_spill] sm:$0xff] }
 0x4cf   : > { %3484 = vperm.xlu0 %4809, %v3221_v42   ;;  %v2438_v26 = vadd.f32 %v7832_v30, %v1644_v7  ;;  %v1646_v22 = vadd.f32 %v7835_v31, %v7834_v28  ;;  %v7836_v42 = vld [vmem:[#allocation260_spill] sm:$0xff]  ;;  %v7849_v62 = vld [vmem:[#allocation378_spill] sm:$0xff]  ;;  %v7852_v0 = vld [vmem:[#allocation263_spill] sm:$0xff] }
 0x4d0   : > { %v3230_v35 = vsub.f32 %v2435_v61, %v7833_v37  ;;  %v2437_v23 = vadd.f32 %v7836_v42, %v1643_v11  ;;  %v7850_v14 = vld [vmem:[#allocation36_spill] sm:$0xff]  ;;  %v7853_v44 = vld [vmem:[#allocation383_spill] sm:$0xff]  ;;  %v7854_v11 = vld [vmem:[#allocation37_spill] sm:$0xff] }
 0x4d1   : > { %v1650_v7 = vadd.f32 %v7851_v21, %v7850_v14  ;;  %v7855_v30 = vld [vmem:[#allocation150_spill] sm:$0xff]  ;;  %v7856_v37 = vld [vmem:[#allocation268_spill] sm:$0xff]  ;;  %v7859_v42 = vld [vmem:[#allocation155_spill] sm:$0xff] }
 0x4d2   : > { %v6342_v58 = vpop.permute.xlu1 %2847  ;;  %3481 = vperm.xlu1 %4810, %v3220_v12   ;;  %v6344_v49 = vpop.permute.xlu0 %2859  ;;  %v3233_v12 = vsub.f32 %v2438_v26, %v7837_v2  ;;  %v1649_v26 = vadd.f32 %v7855_v30, %v7854_v11  ;;  %v7857_v28 = vld [vmem:[#allocation380_spill] sm:$0xff]  ;;  %v7860_v2 = vld [vmem:[#allocation265_spill] sm:$0xff]  ;;  %v7871_v14 = vld [vmem:[#allocation154_spill] sm:$0xff] }
 0x4d3   : > { %3490 = vperm.xlu0 %4809, %v3223_v25   ;;  %v7838_v25 = vld [vmem:[#allocation33_spill] sm:$0xff]  ;;  %v7875_v11 = vld [vmem:[#allocation159_spill] sm:$0xff] }
 0x4d4   : > { %v1645_v57 = vadd.f32 %v7839_v43, %v7838_v25  ;;  %v7861_v25 = vld [vmem:[#allocation385_spill] sm:$0xff] }
 0x4d6   : > { %v6354_v5 = vpop.permute.xlu1 %2855  ;;  %3487 = vperm.xlu1 %4810, %v3222_v8   ;;  %v6356_v10 = vpop.permute.xlu0 %2867  ;;  %v7840_v8 = vld [vmem:[#allocation264_spill] sm:$0xff]  ;;  %v2439_v18 = vadd.f32 %v7844_v55, %v1645_v57 }
 0x4d7   : > { %3496 = vperm.xlu0 %4809, %v3225_v13   ;;  %v2440_v47 = vadd.f32 %v7840_v8, %v1646_v22  ;;  %v3232_v13 = vsub.f32 %v2437_v23, %v7841_v33  ;;  %v7858_v22 = vld [vmem:[#allocation38_spill] sm:$0xff]  ;;  %v7863_v33 = vld [vmem:[#allocation152_spill] sm:$0xff] }
 0x4d8   : > { %v1652_v23 = vadd.f32 %v7859_v42, %v7858_v22  ;;  %v7877_v22 = vld [vmem:[#allocation43_spill] sm:$0xff]  ;;  %v7878_v42 = vld [vmem:[#allocation156_spill] sm:$0xff] }
 0x4da   : > { %v6366_v60 = vpop.permute.xlu1 %2863  ;;  %3493 = vperm.xlu1 %4810, %v3224_v1   ;;  %v6368_v48 = vpop.permute.xlu0 %2875  ;;  %v1648_v1 = vadd.f32 %v7843_v56, %v7842_v51  ;;  %v7864_v51 = vld [vmem:[#allocation270_spill] sm:$0xff] }
 0x4db   : > { %3502 = vperm.xlu0 %4809, %v3227_v6   ;;  %v7845_v6 = vld [vmem:[#allocation381_spill] sm:$0xff]  ;;  %v2446_v56 = vadd.f32 %v7864_v51, %v1652_v23  ;;  %v1655_v23 = vadd.f32 %v7878_v42, %v7877_v22  ;;  %v7883_v51 = vld [vmem:[#allocation271_spill] sm:$0xff]  ;;  %v7895_v22 = vld [vmem:[#allocation278_spill] sm:$0xff] }
 0x4dc   : > { %v3235_v59 = vsub.f32 %v2440_v47, %v7845_v6  ;;  %v2442_v46 = vadd.f32 %v7848_v3, %v1648_v1  ;;  %v7862_v47 = vld [vmem:[#allocation39_spill] sm:$0xff]  ;;  %v7865_v1 = vld [vmem:[#allocation382_spill] sm:$0xff]  ;;  %v7867_v6 = vld [vmem:[#allocation157_spill] sm:$0xff] }
 0x4de   : > { %v6378_v41 = vpop.permute.xlu1 %2871  ;;  %3499 = vperm.xlu1 %4810, %v3226_v45   ;;  %v6380_v38 = vpop.permute.xlu0 %2883 }
 0x4df   : > { %3508 = vperm.xlu0 %4809, %v3229_v20   ;;  %v1647_v20 = vadd.f32 %v7847_v32, %v7846_v63  ;;  %v7868_v63 = vld [vmem:[#allocation267_spill] sm:$0xff] }
 0x4e1   : > { %v2441_v61 = vadd.f32 %v7852_v0, %v1647_v20  ;;  %v7869_v20 = vld [vmem:[#allocation387_spill] sm:$0xff] }
 0x4e2   : > { %v6390_v40 = vpop.permute.xlu1 %2879  ;;  %3505 = vperm.xlu1 %4810, %v3228_v29   ;;  %v6392_v52 = vpop.permute.xlu0 %2894  ;;  %v3234_v29 = vsub.f32 %v2439_v18, %v7849_v62  ;;  %v7866_v18 = vld [vmem:[#allocation40_spill] sm:$0xff]  ;;  %v3241_v3 = vsub.f32 %v2446_v56, %v7869_v20  ;;  %v2449_v56 = vadd.f32 %v7883_v51, %v1655_v23  ;;  %v7896_v23 = vld [vmem:[#allocation389_spill] sm:$0xff] }
 0x4e3   : > { %3514 = vperm.xlu0 %4809, %v3231_v54   ;;  %v3237_v54 = vsub.f32 %v2442_v46, %v7853_v44  ;;  %v3236_v31 = vsub.f32 %v2441_v61, %v7857_v28  ;;  %v7873_v61 = vld [vmem:[#allocation384_spill] sm:$0xff] }
 0x4e6   : > { %v6402_v39 = vpop.permute.xlu1 %2887  ;;  %3511 = vperm.xlu1 %4810, %v3230_v35   ;;  %v6404_v15 = vpop.permute.xlu0 %2902  ;;  %v2444_v35 = vadd.f32 %v7856_v37, %v1650_v7  ;;  %v7872_v7 = vld [vmem:[#allocation272_spill] sm:$0xff] }
 0x4e7   : > { %3520 = vperm.xlu0 %4809, %v3233_v12   ;;  %v2443_v12 = vadd.f32 %v7860_v2, %v1649_v26  ;;  %v7876_v26 = vld [vmem:[#allocation269_spill] sm:$0xff]  ;;  %v7879_v2 = vld [vmem:[#allocation274_spill] sm:$0xff] }
 0x4e8   : > { %v3239_v43 = vsub.f32 %v2444_v35, %v7861_v25  ;;  %v7880_v25 = vld [vmem:[#allocation386_spill] sm:$0xff] }
 0x4e9   : > { %v3238_v55 = vsub.f32 %v2443_v12, %v7865_v1  ;;  %v7884_v1 = vld [vmem:[#allocation390_spill] sm:$0xff] }
 0x4ea   : > { %v6414_v4 = vpop.permute.xlu1 %2898  ;;  %3517 = vperm.xlu1 %4810, %v3232_v13   ;;  %v6416_v45 = vpop.permute.xlu0 %2910  ;;  %v1651_v13 = vadd.f32 %v7863_v33, %v7862_v47  ;;  %v7881_v47 = vld [vmem:[#allocation44_spill] sm:$0xff]  ;;  %v7882_v33 = vld [vmem:[#allocation161_spill] sm:$0xff] }
 0x4eb   : > { %3526 = vperm.xlu0 %4809, %v3235_v59   ;;  %v1654_v59 = vadd.f32 %v7867_v6, %v7866_v18  ;;  %v7885_v6 = vld [vmem:[#allocation45_spill] sm:$0xff] }
 0x4ec   : > { %v2445_v32 = vadd.f32 %v7868_v63, %v1651_v13  ;;  %v1658_v13 = vadd.f32 %v7882_v33, %v7881_v47  ;;  %v7899_v47 = vld [vmem:[#allocation275_spill] sm:$0xff] }
 0x4ed   : > { %v2448_v0 = vadd.f32 %v7872_v7, %v1654_v59  ;;  %v7886_v59 = vld [vmem:[#allocation158_spill] sm:$0xff] }
 0x4ee   : > { %v6426_v24 = vpop.permute.xlu1 %2906  ;;  %3523 = vperm.xlu1 %4810, %v3234_v29   ;;  %v6428_v17 = vpop.permute.xlu0 %2918  ;;  %v7870_v29 = vld [vmem:[#allocation41_spill] sm:$0xff]  ;;  %v3240_v44 = vsub.f32 %v2445_v32, %v7873_v61  ;;  %v1657_v63 = vadd.f32 %v7886_v59, %v7885_v6  ;;  %v7887_v32 = vld [vmem:[#allocation276_spill] sm:$0xff]  ;;  %v7902_v6 = vld [vmem:[#allocation162_spill] sm:$0xff] }
 0x4ef   : > { %3532 = vperm.xlu0 %4809, %v3237_v54   ;;  %v1653_v21 = vadd.f32 %v7871_v14, %v7870_v29  ;;  %v7874_v54 = vld [vmem:[#allocation42_spill] sm:$0xff]  ;;  %v3243_v35 = vsub.f32 %v2448_v0, %v6225_v9  ;;  %v2452_v20 = vadd.f32 %v7887_v32, %v1658_v13  ;;  %v7891_v0 = vld [vmem:[#allocation273_spill] sm:$0xff] }
 0x4f0   : > { %v1656_v30 = vadd.f32 %v7875_v11, %v7874_v54  ;;  %v7889_v14 = vld [vmem:[#allocation46_spill] sm:$0xff]  ;;  %v2451_v61 = vadd.f32 %v7891_v0, %v1657_v63  ;;  %v7903_v63 = vld [vmem:[#allocation280_spill] sm:$0xff] }
 0x4f1   : > { %v2447_v37 = vadd.f32 %v7876_v26, %v1653_v21  ;;  %v7890_v21 = vld [vmem:[#allocation163_spill] sm:$0xff]  ;;  %v7900_v13 = vld [vmem:[#allocation394_spill] sm:$0xff] }
 0x4f2   : > { %v6438_v57 = vpop.permute.xlu1 %2914  ;;  %3529 = vperm.xlu1 %4810, %v3236_v31   ;;  %v6440_v8 = vpop.permute.xlu0 %2926  ;;  %v2450_v12 = vadd.f32 %v7879_v2, %v1656_v30  ;;  %v1660_v7 = vadd.f32 %v7890_v21, %v7889_v14  ;;  %v7893_v26 = vld [vmem:[#allocation47_spill] sm:$0xff]  ;;  %v3246_v2 = vsub.f32 %v2451_v61, %v7896_v23  ;;  %v7908_v61 = vld [vmem:[#allocation396_spill] sm:$0xff] }
 0x4f3   : > { %3538 = vperm.xlu0 %4809, %v3239_v43   ;;  %v3242_v43 = vsub.f32 %v2447_v37, %v7880_v25  ;;  %v7894_v37 = vld [vmem:[#allocation160_spill] sm:$0xff]  ;;  %v7898_v25 = vld [vmem:[#allocation165_spill] sm:$0xff]  ;;  %v7906_v14 = vld [vmem:[#allocation167_spill] sm:$0xff] }
 0x4f4   : > { %v3245_v9 = vsub.f32 %v2450_v12, %v7884_v1  ;;  %v2454_v42 = vadd.f32 %v7895_v22, %v1660_v7  ;;  %v7897_v12 = vld [vmem:[#allocation48_spill] sm:$0xff]  ;;  %v7907_v7 = vld [vmem:[#allocation277_spill] sm:$0xff] }
 0x4f6   : > { %v6450_v46 = vpop.permute.xlu1 %2922  ;;  %3535 = vperm.xlu1 %4810, %v3238_v55   ;;  %v6452_v62 = vpop.permute.xlu0 %2934  ;;  %v3249_v51 = vsub.f32 %v2454_v42, %v7900_v13  ;;  %v7911_v42 = vld [vmem:[#allocation282_spill] sm:$0xff] }
 0x4f7   : > { %3544 = vperm.xlu0 %4809, %v3241_v3   ;;  %v7888_v3 = vld [vmem:[#allocation388_spill] sm:$0xff] }
 0x4f8   : > { %v3244_v29 = vsub.f32 %v2449_v56, %v7888_v3 }
 0x4fa   : > { %v6462_v28 = vpop.permute.xlu1 %2930  ;;  %3541 = vperm.xlu1 %4810, %v3240_v44   ;;  %v6464_v31 = vpop.permute.xlu0 %2942  ;;  %v7892_v44 = vld [vmem:[#allocation392_spill] sm:$0xff] }
 0x4fb   : > { %3550 = vperm.xlu0 %4809, %v3243_v35   ;;  %v3247_v54 = vsub.f32 %v2452_v20, %v7892_v44  ;;  %v1659_v35 = vadd.f32 %v7894_v37, %v7893_v26  ;;  %v7904_v20 = vld [vmem:[#allocation391_spill] sm:$0xff] }
 0x4fc   : > { %v7909_v37 = vld [vmem:[#allocation51_spill] sm:$0xff] }
 0x4fd   : > { %v2453_v33 = vadd.f32 %v7899_v47, %v1659_v35  ;;  %v7910_v35 = vld [vmem:[#allocation164_spill] sm:$0xff] }
 0x4fe   : > { %v6474_v55 = vpop.permute.xlu1 %2938  ;;  %3547 = vperm.xlu1 %4810, %v3242_v43   ;;  %v6476_v18 = vpop.permute.xlu0 %2950  ;;  %v1662_v43 = vadd.f32 %v7898_v25, %v7897_v12  ;;  %v1663_v22 = vadd.f32 %v7910_v35, %v7909_v37  ;;  %v7913_v25 = vld [vmem:[#allocation52_spill] sm:$0xff] }
 0x4ff   : > { %3556 = vperm.xlu0 %4809, %v3245_v9   ;;  %v7901_v9 = vld [vmem:[#allocation49_spill] sm:$0xff]  ;;  %v3248_v3 = vsub.f32 %v2453_v33, %v7904_v20  ;;  %v7915_v33 = vld [vmem:[#allocation279_spill] sm:$0xff]  ;;  %v7924_v35 = vld [vmem:[#allocation400_spill] sm:$0xff] }
 0x500   : > { %v1661_v59 = vadd.f32 %v7902_v6, %v7901_v9  ;;  %v2456_v32 = vadd.f32 %v7903_v63, %v1662_v43  ;;  %v7914_v43 = vld [vmem:[#allocation169_spill] sm:$0xff]  ;;  %v2457_v13 = vadd.f32 %v7915_v33, %v1663_v22 }
 0x501   : > { %v1666_v47 = vadd.f32 %v7914_v43, %v7913_v25  ;;  %v7917_v63 = vld [vmem:[#allocation53_spill] sm:$0xff]  ;;  %v7927_v43 = vld [vmem:[#allocation286_spill] sm:$0xff] }
 0x502   : > { %v6486_v11 = vpop.permute.xlu1 %2946  ;;  %3553 = vperm.xlu1 %4810, %v3244_v29   ;;  %v6488_v30 = vpop.permute.xlu0 %2961  ;;  %v7905_v29 = vld [vmem:[#allocation50_spill] sm:$0xff]  ;;  %v2455_v0 = vadd.f32 %v7907_v7, %v1661_v59  ;;  %v3251_v44 = vsub.f32 %v2456_v32, %v7908_v61  ;;  %v7928_v33 = vld [vmem:[#allocation397_spill] sm:$0xff] }
 0x503   : > { %3562 = vperm.xlu0 %4809, %v3247_v54   ;;  %v1664_v21 = vadd.f32 %v7906_v14, %v7905_v29  ;;  %v7918_v32 = vld [vmem:[#allocation166_spill] sm:$0xff]  ;;  %v7920_v14 = vld [vmem:[#allocation395_spill] sm:$0xff] }
 0x504   : > { %v1665_v20 = vadd.f32 %v7918_v32, %v7917_v63  ;;  %v7921_v7 = vld [vmem:[#allocation54_spill] sm:$0xff]  ;;  %v7931_v32 = vld [vmem:[#allocation283_spill] sm:$0xff] }
 0x505   : > { %v2458_v23 = vadd.f32 %v7911_v42, %v1664_v21  ;;  %v3252_v21 = vsub.f32 %v2457_v13, %v7920_v14 }
 0x506   : > { %v6498_v56 = vpop.permute.xlu1 %2954  ;;  %3559 = vperm.xlu1 %4810, %v3246_v2   ;;  %v6500_v1 = vpop.permute.xlu0 %2969  ;;  %v7912_v2 = vld [vmem:[#allocation393_spill] sm:$0xff] }
 0x507   : > { %3568 = vperm.xlu0 %4809, %v3249_v51   ;;  %v3250_v12 = vsub.f32 %v2455_v0, %v7912_v2  ;;  %v7916_v51 = vld [vmem:[#allocation398_spill] sm:$0xff]  ;;  %v7922_v0 = vld [vmem:[#allocation171_spill] sm:$0xff] }
 0x508   : > { %v3253_v9 = vsub.f32 %v2458_v23, %v7916_v51  ;;  %v1668_v61 = vadd.f32 %v7922_v0, %v7921_v7  ;;  %v7925_v2 = vld [vmem:[#allocation55_spill] sm:$0xff]  ;;  %v7929_v51 = vld [vmem:[#allocation56_spill] sm:$0xff]  ;;  %v7934_v7 = vld [vmem:[#allocation57_spill] sm:$0xff] }
 0x509   : > { %v7935_v0 = vld [vmem:[#allocation170_spill] sm:$0xff] }
 0x50a   : > { %v6510_v54 = vpop.permute.xlu1 %2965  ;;  %3565 = vperm.xlu1 %4810, %v3248_v3   ;;  %v6512_v26 = vpop.permute.xlu0 %2977  ;;  %v7919_v3 = vld [vmem:[#allocation284_spill] sm:$0xff] }
 0x50b   : > { %3574 = vperm.xlu0 %4809, %v3251_v44   ;;  %v2460_v29 = vadd.f32 %v7919_v3, %v1666_v47  ;;  %v7923_v44 = vld [vmem:[#allocation281_spill] sm:$0xff]  ;;  %v2462_v47 = vadd.f32 %v7927_v43, %v1668_v61  ;;  %v7932_v3 = vld [vmem:[#allocation402_spill] sm:$0xff] }
 0x50c   : > { %v2459_v37 = vadd.f32 %v7923_v44, %v1665_v20  ;;  %v1669_v44 = vadd.f32 %v7935_v0, %v7934_v7  ;;  %v7944_v7 = vld [vmem:[#allocation290_spill] sm:$0xff]  ;;  %v7945_v0 = vld [vmem:[#allocation401_spill] sm:$0xff] }
 0x50d   : > { %v3255_v22 = vsub.f32 %v2460_v29, %v7924_v35  ;;  %v3257_v29 = vsub.f32 %v2462_v47, %v7932_v3  ;;  %v7936_v35 = vld [vmem:[#allocation288_spill] sm:$0xff] }
 0x50e   : > { %v6522_v6 = vpop.permute.xlu1 %2973  ;;  %3571 = vperm.xlu1 %4810, %v3250_v12   ;;  %v6524_v59 = vpop.permute.xlu0 %2985  ;;  %v7926_v12 = vld [vmem:[#allocation168_spill] sm:$0xff]  ;;  %v3254_v13 = vsub.f32 %v2459_v37, %v7928_v33  ;;  %v7940_v33 = vld [vmem:[#allocation285_spill] sm:$0xff] }
 0x50f   : > { %3580 = vperm.xlu0 %4809, %v3253_v9   ;;  %v1667_v25 = vadd.f32 %v7926_v12, %v7925_v2  ;;  %v7930_v9 = vld [vmem:[#allocation173_spill] sm:$0xff]  ;;  %v7937_v2 = vld [vmem:[#allocation399_spill] sm:$0xff] }
 0x510   : > { %v1670_v63 = vadd.f32 %v7930_v9, %v7929_v51  ;;  %v7939_v12 = vld [vmem:[#allocation175_spill] sm:$0xff] }
 0x511   : > { %v2461_v20 = vadd.f32 %v7931_v32, %v1667_v25  ;;  %v2463_v25 = vadd.f32 %v7940_v33, %v1669_v44  ;;  %v7942_v9 = vld [vmem:[#allocation59_spill] sm:$0xff]  ;;  %v7943_v32 = vld [vmem:[#allocation172_spill] sm:$0xff]  ;;  %v7952_v33 = vld [vmem:[#allocation61_spill] sm:$0xff] }
 0x512   : > { %v6534_v42 = vpop.permute.xlu1 %2981  ;;  %3577 = vperm.xlu1 %4810, %v3252_v21   ;;  %v6536_v23 = vpop.permute.xlu0 %2993  ;;  %v2464_v61 = vadd.f32 %v7936_v35, %v1670_v63  ;;  %v1671_v3 = vadd.f32 %v7943_v32, %v7942_v9  ;;  %v7947_v35 = vld [vmem:[#allocation177_spill] sm:$0xff]  ;;  %v7954_v32 = vld [vmem:[#allocation292_spill] sm:$0xff] }
 0x513   : > { %3586 = vperm.xlu0 %4809, %v3255_v22   ;;  %v3256_v37 = vsub.f32 %v2461_v20, %v7937_v2  ;;  %v7938_v22 = vld [vmem:[#allocation58_spill] sm:$0xff]  ;;  %v3258_v20 = vsub.f32 %v2463_v25, %v7945_v0  ;;  %v7957_v0 = vld [vmem:[#allocation179_spill] sm:$0xff] }
 0x514   : > { %v1672_v43 = vadd.f32 %v7939_v12, %v7938_v22  ;;  %v3259_v47 = vsub.f32 %v2464_v61, %v6259_v19  ;;  %v7948_v22 = vld [vmem:[#allocation287_spill] sm:$0xff]  ;;  %v7949_v12 = vld [vmem:[#allocation405_spill] sm:$0xff] }
 0x515   : > { %v2465_v44 = vadd.f32 %v7948_v22, %v1671_v3  ;;  %v7959_v22 = vld [vmem:[#allocation407_spill] sm:$0xff] }
 0x516   : > { %v6546_v14 = vpop.permute.xlu1 %2989  ;;  %3583 = vperm.xlu1 %4810, %v3254_v13   ;;  %v6548_v21 = vpop.permute.xlu0 %3001  ;;  %v2466_v63 = vadd.f32 %v7944_v7, %v1672_v43  ;;  %v7955_v7 = vld [vmem:[#allocation403_spill] sm:$0xff] }
 0x517   : > { %7933 = vst [vmem:[#allocation374_spill] sm:$0xff] %v6548_v21  ;;  %3592 = vperm.xlu0 %4809, %v3257_v29   ;;  %v7946_v29 = vld [vmem:[#allocation60_spill] sm:$0xff]  ;;  %v3260_v25 = vsub.f32 %v2465_v44, %v7955_v7  ;;  %v7967_v7 = vld [vmem:[#allocation181_spill] sm:$0xff]  ;;  %v7973_v21 = vld [vmem:[#allocation178_spill] sm:$0xff] }
 0x518   : > { %v1674_v2 = vadd.f32 %v7947_v35, %v7946_v29  ;;  %v3261_v19 = vsub.f32 %v2466_v63, %v7949_v12  ;;  %v7958_v35 = vld [vmem:[#allocation289_spill] sm:$0xff] }
 0x51a   : > { %v6558_v51 = vpop.permute.xlu1 %2997  ;;  %3589 = vperm.xlu1 %4810, %v3256_v37   ;;  %v6560_v13 = vpop.permute.xlu0 %3009  ;;  %v2468_v43 = vadd.f32 %v7954_v32, %v1674_v2  ;;  %v7965_v32 = vld [vmem:[#allocation404_spill] sm:$0xff] }
 0x51b   : > { %7941 = vst [vmem:[#allocation30_spill] sm:$0xff] %v6560_v13  ;;  %3598 = vperm.xlu0 %4809, %v3259_v47   ;;  %v7953_v13 = vld [vmem:[#allocation174_spill] sm:$0xff] }
 0x51c   : > { %v1673_v9 = vadd.f32 %v7953_v13, %v7952_v33  ;;  %v7956_v47 = vld [vmem:[#allocation62_spill] sm:$0xff]  ;;  %v3263_v63 = vsub.f32 %v2468_v43, %v7959_v22 }
 0x51d   : > { %v1676_v29 = vadd.f32 %v7957_v0, %v7956_v47  ;;  %v7964_v33 = vld [vmem:[#allocation294_spill] sm:$0xff]  ;;  %v7968_v0 = vld [vmem:[#allocation291_spill] sm:$0xff] }
 0x51e   : > { %v6570_v61 = vpop.permute.xlu1 %3005  ;;  %3595 = vperm.xlu1 %4810, %v3258_v20   ;;  %v6572_v37 = vpop.permute.xlu0 %3017  ;;  %v2467_v3 = vadd.f32 %v7958_v35, %v1673_v9  ;;  %v7969_v35 = vld [vmem:[#allocation409_spill] sm:$0xff] }
 0x51f   : > { %7950 = vst [vmem:[#allocation147_spill] sm:$0xff] %v6570_v61  ;;  %7951 = vst [vmem:[#allocation259_spill] sm:$0xff] %v6572_v37  ;;  %3604 = vperm.xlu0 %4809, %v3261_v19   ;;  %v7962_v37 = vld [vmem:[#allocation63_spill] sm:$0xff]  ;;  %v7963_v61 = vld [vmem:[#allocation176_spill] sm:$0xff]  ;;  %v2470_v2 = vadd.f32 %v7964_v33, %v1676_v29 }
 0x520   : > { %v1675_v13 = vadd.f32 %v7963_v61, %v7962_v37  ;;  %v3262_v44 = vsub.f32 %v2467_v3, %v7965_v32  ;;  %v7966_v19 = vld [vmem:[#allocation64_spill] sm:$0xff]  ;;  %v7975_v33 = vld [vmem:[#allocation406_spill] sm:$0xff]  ;;  %v7977_v32 = vld [vmem:[#allocation183_spill] sm:$0xff] }
 0x521   : > { %v1678_v47 = vadd.f32 %v7967_v7, %v7966_v19  ;;  %v3265_v43 = vsub.f32 %v2470_v2, %v7969_v35  ;;  %v7974_v37 = vld [vmem:[#allocation296_spill] sm:$0xff]  ;;  %v7978_v7 = vld [vmem:[#allocation293_spill] sm:$0xff]  ;;  %v7981_v35 = vld [vmem:[#allocation67_spill] sm:$0xff] }
 0x522   : > { %v6582_v12 = vpop.permute.xlu1 %3013  ;;  %3601 = vperm.xlu1 %4810, %v3260_v25   ;;  %v6584_v20 = vpop.permute.xlu0 %3028  ;;  %v2469_v9 = vadd.f32 %v7968_v0, %v1675_v13 }
 0x523   : > { %7960 = vst [vmem:[#allocation377_spill] sm:$0xff] %v6582_v12  ;;  %7961 = vst [vmem:[#allocation31_spill] sm:$0xff] %v6584_v20  ;;  %3610 = vperm.xlu0 %4809, %v3263_v63   ;;  %v7972_v12 = vld [vmem:[#allocation65_spill] sm:$0xff]  ;;  %v2472_v29 = vadd.f32 %v7974_v37, %v1678_v47  ;;  %v7976_v63 = vld [vmem:[#allocation66_spill] sm:$0xff] }
 0x524   : > { %v1677_v61 = vadd.f32 %v7973_v21, %v7972_v12  ;;  %v3264_v3 = vsub.f32 %v2469_v9, %v7975_v33  ;;  %v1680_v19 = vadd.f32 %v7977_v32, %v7976_v63  ;;  %v7983_v12 = vld [vmem:[#allocation298_spill] sm:$0xff]  ;;  %v7984_v37 = vld [vmem:[#allocation408_spill] sm:$0xff]  ;;  %v7986_v33 = vld [vmem:[#allocation185_spill] sm:$0xff] }
 0x525   : > { %v3267_v2 = vsub.f32 %v2472_v29, %v6277_v36  ;;  %v7987_v32 = vld [vmem:[#allocation295_spill] sm:$0xff] }
 0x526   : > { %v6594_v22 = vpop.permute.xlu1 %3021  ;;  %3607 = vperm.xlu1 %4810, %v3262_v44   ;;  %v6596_v25 = vpop.permute.xlu0 %3036  ;;  %v2471_v13 = vadd.f32 %v7978_v7, %v1677_v61  ;;  %v2474_v47 = vadd.f32 %v7983_v12, %v1680_v19  ;;  %v7988_v7 = vld [vmem:[#allocation412_spill] sm:$0xff]  ;;  %v7994_v12 = vld [vmem:[#allocation410_spill] sm:$0xff] }
 0x527   : > { %7970 = vst [vmem:[#allocation145_spill] sm:$0xff] %v6594_v22  ;;  %7971 = vst [vmem:[#allocation262_spill] sm:$0xff] %v6596_v25  ;;  %3616 = vperm.xlu0 %4809, %v3265_v43   ;;  %v7982_v22 = vld [vmem:[#allocation180_spill] sm:$0xff]  ;;  %v8022_v25 = vld [vmem:[#allocation306_spill] sm:$0xff] }
 0x528   : > { %v1679_v21 = vadd.f32 %v7982_v22, %v7981_v35  ;;  %v3266_v9 = vsub.f32 %v2471_v13, %v7984_v37  ;;  %v7985_v43 = vld [vmem:[#allocation68_spill] sm:$0xff]  ;;  %v3269_v36 = vsub.f32 %v2474_v47, %v7988_v7  ;;  %v7996_v37 = vld [vmem:[#allocation187_spill] sm:$0xff] }
 0x529   : > { %v1682_v63 = vadd.f32 %v7986_v33, %v7985_v43  ;;  %v7993_v35 = vld [vmem:[#allocation300_spill] sm:$0xff]  ;;  %v7997_v33 = vld [vmem:[#allocation297_spill] sm:$0xff] }
 0x52a   : > { %v6606_v0 = vpop.permute.xlu1 %3032  ;;  %3613 = vperm.xlu1 %4810, %v3264_v3   ;;  %v6608_v44 = vpop.permute.xlu0 %3044  ;;  %v2473_v61 = vadd.f32 %v7987_v32, %v1679_v21  ;;  %v7998_v32 = vld [vmem:[#allocation414_spill] sm:$0xff] }
 0x52b   : > { %7979 = vst [vmem:[#allocation375_spill] sm:$0xff] %v6606_v0  ;;  %7980 = vst [vmem:[#allocation32_spill] sm:$0xff] %v6608_v44  ;;  %3622 = vperm.xlu0 %4809, %v3267_v2   ;;  %v7991_v44 = vld [vmem:[#allocation69_spill] sm:$0xff]  ;;  %v7992_v0 = vld [vmem:[#allocation182_spill] sm:$0xff]  ;;  %v2476_v19 = vadd.f32 %v7993_v35, %v1682_v63 }
 0x52c   : > { %v1681_v22 = vadd.f32 %v7992_v0, %v7991_v44  ;;  %v3268_v13 = vsub.f32 %v2473_v61, %v7994_v12  ;;  %v7995_v2 = vld [vmem:[#allocation70_spill] sm:$0xff]  ;;  %v8004_v35 = vld [vmem:[#allocation411_spill] sm:$0xff]  ;;  %v8006_v12 = vld [vmem:[#allocation189_spill] sm:$0xff] }
 0x52d   : > { %v1684_v43 = vadd.f32 %v7996_v37, %v7995_v2  ;;  %v3271_v47 = vsub.f32 %v2476_v19, %v7998_v32  ;;  %v8003_v44 = vld [vmem:[#allocation302_spill] sm:$0xff]  ;;  %v8007_v37 = vld [vmem:[#allocation299_spill] sm:$0xff] }
 0x52e   : > { %v6618_v29 = vpop.permute.xlu1 %3040  ;;  %3619 = vperm.xlu1 %4810, %v3266_v9   ;;  %v6620_v3 = vpop.permute.xlu0 %3052  ;;  %v2475_v21 = vadd.f32 %v7997_v33, %v1681_v22  ;;  %v8008_v33 = vld [vmem:[#allocation416_spill] sm:$0xff] }
 0x52f   : > { %7989 = vst [vmem:[#allocation149_spill] sm:$0xff] %v6618_v29  ;;  %7990 = vst [vmem:[#allocation260_spill] sm:$0xff] %v6620_v3  ;;  %3628 = vperm.xlu0 %4809, %v3269_v36   ;;  %v8001_v3 = vld [vmem:[#allocation71_spill] sm:$0xff]  ;;  %v8002_v29 = vld [vmem:[#allocation184_spill] sm:$0xff]  ;;  %v2478_v63 = vadd.f32 %v8003_v44, %v1684_v43 }
 0x530   : > { %v1683_v0 = vadd.f32 %v8002_v29, %v8001_v3  ;;  %v3270_v61 = vsub.f32 %v2475_v21, %v8004_v35  ;;  %v8005_v36 = vld [vmem:[#allocation72_spill] sm:$0xff]  ;;  %v8014_v44 = vld [vmem:[#allocation413_spill] sm:$0xff]  ;;  %v8016_v35 = vld [vmem:[#allocation191_spill] sm:$0xff] }
 0x531   : > { %v1686_v2 = vadd.f32 %v8006_v12, %v8005_v36  ;;  %v3273_v19 = vsub.f32 %v2478_v63, %v8008_v33  ;;  %v8013_v3 = vld [vmem:[#allocation304_spill] sm:$0xff]  ;;  %v8017_v12 = vld [vmem:[#allocation301_spill] sm:$0xff] }
 0x532   : > { %v6630_v7 = vpop.permute.xlu1 %3048  ;;  %3625 = vperm.xlu1 %4810, %v3268_v13   ;;  %v6632_v9 = vpop.permute.xlu0 %3060  ;;  %v2477_v22 = vadd.f32 %v8007_v37, %v1683_v0  ;;  %v8018_v37 = vld [vmem:[#allocation418_spill] sm:$0xff] }
 0x533   : > { %7999 = vst [vmem:[#allocation379_spill] sm:$0xff] %v6630_v7  ;;  %8000 = vst [vmem:[#allocation33_spill] sm:$0xff] %v6632_v9  ;;  %3634 = vperm.xlu0 %4809, %v3271_v47   ;;  %v8011_v9 = vld [vmem:[#allocation73_spill] sm:$0xff]  ;;  %v8012_v7 = vld [vmem:[#allocation186_spill] sm:$0xff]  ;;  %v2480_v43 = vadd.f32 %v8013_v3, %v1686_v2 }
 0x534   : > { %v1685_v29 = vadd.f32 %v8012_v7, %v8011_v9  ;;  %v3272_v21 = vsub.f32 %v2477_v22, %v8014_v44  ;;  %v8015_v47 = vld [vmem:[#allocation74_spill] sm:$0xff]  ;;  %v8023_v9 = vld [vmem:[#allocation415_spill] sm:$0xff]  ;;  %v8026_v3 = vld [vmem:[#allocation193_spill] sm:$0xff] }
 0x535   : > { %v1688_v36 = vadd.f32 %v8016_v35, %v8015_v47  ;;  %v3275_v63 = vsub.f32 %v2480_v43, %v8018_v37  ;;  %v8027_v47 = vld [vmem:[#allocation303_spill] sm:$0xff]  ;;  %v8028_v35 = vld [vmem:[#allocation420_spill] sm:$0xff]  ;;  %v8031_v37 = vld [vmem:[#allocation190_spill] sm:$0xff] }
 0x536   : > { %v6642_v32 = vpop.permute.xlu1 %3056  ;;  %3631 = vperm.xlu1 %4810, %v3270_v61   ;;  %v6644_v13 = vpop.permute.xlu0 %3068  ;;  %v2479_v0 = vadd.f32 %v8017_v12, %v1685_v29  ;;  %v8020_v61 = vld [vmem:[#allocation75_spill] sm:$0xff] }
 0x537   : > { %8009 = vst [vmem:[#allocation146_spill] sm:$0xff] %v6642_v32  ;;  %8010 = vst [vmem:[#allocation264_spill] sm:$0xff] %v6644_v13  ;;  %3640 = vperm.xlu0 %4809, %v3273_v19   ;;  %v8021_v13 = vld [vmem:[#allocation188_spill] sm:$0xff]  ;;  %v2482_v7 = vadd.f32 %v8022_v25, %v1688_v36  ;;  %v8033_v36 = vld [vmem:[#allocation417_spill] sm:$0xff] }
 0x538   : > { %v1687_v32 = vadd.f32 %v8021_v13, %v8020_v61  ;;  %v3274_v2 = vsub.f32 %v2479_v0, %v8023_v9  ;;  %v8025_v19 = vld [vmem:[#allocation76_spill] sm:$0xff]  ;;  %v8035_v9 = vld [vmem:[#allocation195_spill] sm:$0xff] }
 0x539   : > { %v1690_v44 = vadd.f32 %v8026_v3, %v8025_v19  ;;  %v3277_v43 = vsub.f32 %v2482_v7, %v8028_v35  ;;  %v8032_v61 = vld [vmem:[#allocation308_spill] sm:$0xff]  ;;  %v8037_v3 = vld [vmem:[#allocation422_spill] sm:$0xff] }
 0x53a   : > { %v6654_v33 = vpop.permute.xlu1 %3064  ;;  %3637 = vperm.xlu1 %4810, %v3272_v21   ;;  %v6660_v22 = vpop.permute.xlu0 %3076  ;;  %v2481_v29 = vadd.f32 %v8027_v47, %v1687_v32  ;;  %v8030_v21 = vld [vmem:[#allocation78_spill] sm:$0xff]  ;;  %v8041_v35 = vld [vmem:[#allocation192_spill] sm:$0xff] }
 0x53b   : > { %8019 = vst [vmem:[#allocation376_spill] sm:$0xff] %v6654_v33  ;;  %3646 = vperm.xlu0 %4809, %v3275_v63   ;;  %8024 = vst [vmem:[#allocation34_spill] sm:$0xff] %v6660_v22  ;;  %v1689_v13 = vadd.f32 %v8031_v37, %v8030_v21  ;;  %v2484_v25 = vadd.f32 %v8032_v61, %v1690_v44  ;;  %v8034_v63 = vld [vmem:[#allocation79_spill] sm:$0xff]  ;;  %v8036_v33 = vld [vmem:[#allocation305_spill] sm:$0xff] }
 0x53c   : > { %v3276_v0 = vsub.f32 %v2481_v29, %v8033_v36  ;;  %v1692_v22 = vadd.f32 %v8035_v9, %v8034_v63  ;;  %v8042_v37 = vld [vmem:[#allocation310_spill] sm:$0xff]  ;;  %v8043_v61 = vld [vmem:[#allocation419_spill] sm:$0xff]  ;;  %v8045_v36 = vld [vmem:[#allocation197_spill] sm:$0xff] }
 0x53d   : > { %v2483_v19 = vadd.f32 %v8036_v33, %v1689_v13  ;;  %v3279_v32 = vsub.f32 %v2484_v25, %v8037_v3  ;;  %v8046_v9 = vld [vmem:[#allocation307_spill] sm:$0xff]  ;;  %v8048_v3 = vld [vmem:[#allocation82_spill] sm:$0xff] }
 0x53e   : > { %v6666_v12 = vpop.permute.xlu1 %3072  ;;  %3643 = vperm.xlu1 %4810, %v3274_v2   ;;  %v6678_v7 = vpop.permute.xlu0 %3084  ;;  %v8040_v2 = vld [vmem:[#allocation80_spill] sm:$0xff]  ;;  %v2486_v44 = vadd.f32 %v8042_v37, %v1692_v22  ;;  %v8051_v37 = vld [vmem:[#allocation421_spill] sm:$0xff] }
 0x53f   : > { %8029 = vst [vmem:[#allocation151_spill] sm:$0xff] %v6666_v12  ;;  %3652 = vperm.xlu0 %4809, %v3277_v43   ;;  %8039 = vst [vmem:[#allocation381_spill] sm:$0xff] %v6678_v7  ;;  %v1691_v21 = vadd.f32 %v8041_v35, %v8040_v2  ;;  %v3278_v29 = vsub.f32 %v2483_v19, %v8043_v61  ;;  %v8044_v43 = vld [vmem:[#allocation81_spill] sm:$0xff]  ;;  %v8049_v7 = vld [vmem:[#allocation194_spill] sm:$0xff] }
 0x540   : > { %v1694_v63 = vadd.f32 %v8045_v36, %v8044_v43  ;;  %v3281_v13 = vsub.f32 %v2486_v44, %v6307_v34  ;;  %v1693_v2 = vadd.f32 %v8049_v7, %v8048_v3  ;;  %v8050_v35 = vld [vmem:[#allocation312_spill] sm:$0xff]  ;;  %v8053_v61 = vld [vmem:[#allocation199_spill] sm:$0xff]  ;;  %v8054_v36 = vld [vmem:[#allocation309_spill] sm:$0xff] }
 0x541   : > { %v2485_v33 = vadd.f32 %v8046_v9, %v1691_v21  ;;  %v8055_v9 = vld [vmem:[#allocation84_spill] sm:$0xff]  ;;  %v8057_v3 = vld [vmem:[#allocation314_spill] sm:$0xff] }
 0x542   : > { %v6676_v47 = vpop.permute.xlu1 %3080  ;;  %3649 = vperm.xlu1 %4810, %v3276_v0   ;;  %v2488_v22 = vadd.f32 %v8050_v35, %v1694_v63  ;;  %v2487_v21 = vadd.f32 %v8054_v36, %v1693_v2  ;;  %v8058_v35 = vld [vmem:[#allocation423_spill] sm:$0xff]  ;;  %v8062_v36 = vld [vmem:[#allocation86_spill] sm:$0xff]  ;;  %v8070_v12 = vld [vmem:[#allocation200_spill] sm:$0xff] }
 0x543   : > { %8038 = vst [vmem:[#allocation261_spill] sm:$0xff] %v6676_v47  ;;  %3658 = vperm.xlu0 %4809, %v3279_v32   ;;  %v3280_v19 = vsub.f32 %v2485_v33, %v8051_v37  ;;  %v8052_v32 = vld [vmem:[#allocation83_spill] sm:$0xff]  ;;  %v8060_v37 = vld [vmem:[#allocation201_spill] sm:$0xff]  ;;  %v8063_v47 = vld [vmem:[#allocation198_spill] sm:$0xff] }
 0x544   : > { %v1696_v43 = vadd.f32 %v8053_v61, %v8052_v32  ;;  %v3283_v34 = vsub.f32 %v2488_v22, %v6318_v27  ;;  %v3282_v33 = vsub.f32 %v2487_v21, %v8058_v35  ;;  %v8061_v61 = vld [vmem:[#allocation311_spill] sm:$0xff] }
 0x545   : > { %v8067_v35 = vld [vmem:[#allocation203_spill] sm:$0xff] }
 0x546   : > { %v6688_v25 = vpop.permute.xlu1 %3088  ;;  %3655 = vperm.xlu1 %4810, %v3278_v29   ;;  %v6690_v0 = vpop.permute.xlu0 %3475  ;;  %v2490_v63 = vadd.f32 %v8057_v3, %v1696_v43  ;;  %v8065_v3 = vld [vmem:[#allocation424_spill] sm:$0xff] }
 0x547   : > { %8047 = vst [vmem:[#allocation35_spill] sm:$0xff] %v6688_v25  ;;  %3664 = vperm.xlu0 %4809, %v3281_v13   ;;  %v8056_v25 = vld [vmem:[#allocation196_spill] sm:$0xff]  ;;  %v8059_v13 = vld [vmem:[#allocation85_spill] sm:$0xff] }
 0x548   : > { %v1695_v7 = vadd.f32 %v8056_v25, %v8055_v9  ;;  %v1698_v32 = vadd.f32 %v8060_v37, %v8059_v13  ;;  %v3285_v27 = vsub.f32 %v2490_v63, %v6330_v50  ;;  %v1697_v25 = vadd.f32 %v8063_v47, %v8062_v36  ;;  %v8064_v9 = vld [vmem:[#allocation316_spill] sm:$0xff]  ;;  %v8068_v37 = vld [vmem:[#allocation313_spill] sm:$0xff]  ;;  %v8071_v36 = vld [vmem:[#allocation318_spill] sm:$0xff] }
 0x54a   : > { %v6700_v44 = vpop.permute.xlu1 %3478  ;;  %3661 = vperm.xlu1 %4810, %v3280_v19   ;;  %v6702_v29 = vpop.permute.xlu0 %3484  ;;  %v2489_v2 = vadd.f32 %v8061_v61, %v1695_v7  ;;  %v2492_v43 = vadd.f32 %v8064_v9, %v1698_v32  ;;  %v2491_v7 = vadd.f32 %v8068_v37, %v1697_v25  ;;  %v8069_v61 = vld [vmem:[#allocation88_spill] sm:$0xff]  ;;  %v8073_v9 = vld [vmem:[#allocation205_spill] sm:$0xff]  ;;  %v8076_v37 = vld [vmem:[#allocation202_spill] sm:$0xff] }
 0x54b   : > { %3670 = vperm.xlu0 %4809, %v3283_v34   ;;  %v8066_v34 = vld [vmem:[#allocation87_spill] sm:$0xff]  ;;  %v1699_v47 = vadd.f32 %v8070_v12, %v8069_v61  ;;  %v8077_v61 = vld [vmem:[#allocation320_spill] sm:$0xff] }
 0x54c   : > { %v3284_v21 = vsub.f32 %v2489_v2, %v8065_v3  ;;  %v1700_v13 = vadd.f32 %v8067_v35, %v8066_v34  ;;  %v3287_v50 = vsub.f32 %v2492_v43, %v6342_v58  ;;  %v3286_v2 = vsub.f32 %v2491_v7, %v6320_v16  ;;  %v8074_v34 = vld [vmem:[#allocation315_spill] sm:$0xff]  ;;  %v8075_v35 = vld [vmem:[#allocation90_spill] sm:$0xff] }
 0x54d   : > { %v2493_v25 = vadd.f32 %v8074_v34, %v1699_v47  ;;  %v1701_v12 = vadd.f32 %v8076_v37, %v8075_v35  ;;  %v8078_v7 = vld [vmem:[#allocation91_spill] sm:$0xff]  ;;  %v8083_v34 = vld [vmem:[#allocation204_spill] sm:$0xff]  ;;  %v8084_v37 = vld [vmem:[#allocation322_spill] sm:$0xff] }
 0x54e   : > { %v6712_v22 = vpop.permute.xlu1 %3481  ;;  %3667 = vperm.xlu1 %4810, %v3282_v33   ;;  %v6714_v19 = vpop.permute.xlu0 %3490  ;;  %v2494_v32 = vadd.f32 %v8071_v36, %v1700_v13 }
 0x54f   : > { %3676 = vperm.xlu0 %4809, %v3285_v27   ;;  %v8072_v27 = vld [vmem:[#allocation89_spill] sm:$0xff]  ;;  %v3288_v16 = vsub.f32 %v2493_v25, %v6332_v53 }
 0x550   : > { %v1702_v3 = vadd.f32 %v8073_v9, %v8072_v27  ;;  %v3289_v58 = vsub.f32 %v2494_v32, %v6354_v5  ;;  %v8080_v27 = vld [vmem:[#allocation317_spill] sm:$0xff]  ;;  %v8082_v9 = vld [vmem:[#allocation92_spill] sm:$0xff] }
 0x551   : > { %v2495_v47 = vadd.f32 %v8080_v27, %v1701_v12  ;;  %v1703_v35 = vadd.f32 %v8083_v34, %v8082_v9  ;;  %v8085_v25 = vld [vmem:[#allocation93_spill] sm:$0xff]  ;;  %v8090_v27 = vld [vmem:[#allocation206_spill] sm:$0xff]  ;;  %v8091_v34 = vld [vmem:[#allocation324_spill] sm:$0xff] }
 0x552   : > { %v6724_v63 = vpop.permute.xlu1 %3487  ;;  %3673 = vperm.xlu1 %4810, %v3284_v21   ;;  %v6726_v33 = vpop.permute.xlu0 %3496  ;;  %v2496_v13 = vadd.f32 %v8077_v61, %v1702_v3 }
 0x553   : > { %3682 = vperm.xlu0 %4809, %v3287_v50   ;;  %v8079_v50 = vld [vmem:[#allocation207_spill] sm:$0xff]  ;;  %v3290_v53 = vsub.f32 %v2495_v47, %v6344_v49 }
 0x554   : > { %v1704_v36 = vadd.f32 %v8079_v50, %v8078_v7  ;;  %v3291_v5 = vsub.f32 %v2496_v13, %v6366_v60  ;;  %v8087_v7 = vld [vmem:[#allocation319_spill] sm:$0xff]  ;;  %v8089_v50 = vld [vmem:[#allocation94_spill] sm:$0xff] }
 0x555   : > { %v2497_v12 = vadd.f32 %v8087_v7, %v1703_v35  ;;  %v1705_v9 = vadd.f32 %v8090_v27, %v8089_v50  ;;  %v8092_v47 = vld [vmem:[#allocation95_spill] sm:$0xff]  ;;  %v8098_v7 = vld [vmem:[#allocation208_spill] sm:$0xff]  ;;  %v8099_v27 = vld [vmem:[#allocation326_spill] sm:$0xff] }
 0x556   : > { %v6736_v43 = vpop.permute.xlu1 %3493  ;;  %3679 = vperm.xlu1 %4810, %v3286_v2   ;;  %v6738_v21 = vpop.permute.xlu0 %3502  ;;  %v2498_v3 = vadd.f32 %v8084_v37, %v1704_v36 }
 0x557   : > { %3688 = vperm.xlu0 %4809, %v3289_v58   ;;  %v8086_v58 = vld [vmem:[#allocation209_spill] sm:$0xff]  ;;  %v3292_v49 = vsub.f32 %v2497_v12, %v6356_v10 }
 0x558   : > { %v1706_v61 = vadd.f32 %v8086_v58, %v8085_v25  ;;  %v3293_v60 = vsub.f32 %v2498_v3, %v6378_v41  ;;  %v8094_v25 = vld [vmem:[#allocation321_spill] sm:$0xff]  ;;  %v8097_v58 = vld [vmem:[#allocation96_spill] sm:$0xff] }
 0x559   : > { %v2499_v35 = vadd.f32 %v8094_v25, %v1705_v9  ;;  %v1707_v50 = vadd.f32 %v8098_v7, %v8097_v58  ;;  %v8100_v12 = vld [vmem:[#allocation97_spill] sm:$0xff]  ;;  %v8105_v58 = vld [vmem:[#allocation98_spill] sm:$0xff] }
 0x55a   : > { %v6748_v32 = vpop.permute.xlu1 %3499  ;;  %3685 = vperm.xlu1 %4810, %v3288_v16   ;;  %v6750_v2 = vpop.permute.xlu0 %3508  ;;  %v2500_v36 = vadd.f32 %v8091_v34, %v1706_v61  ;;  %v8106_v7 = vld [vmem:[#allocation210_spill] sm:$0xff] }
 0x55b   : > { %8081 = vst [vmem:[#allocation148_spill] sm:$0xff] %v6750_v2  ;;  %3694 = vperm.xlu0 %4809, %v3291_v5   ;;  %v8093_v5 = vld [vmem:[#allocation211_spill] sm:$0xff]  ;;  %v3294_v10 = vsub.f32 %v2499_v35, %v6368_v48 }
 0x55c   : > { %v1708_v37 = vadd.f32 %v8093_v5, %v8092_v47  ;;  %v3295_v41 = vsub.f32 %v2500_v36, %v6390_v40  ;;  %v8102_v47 = vld [vmem:[#allocation323_spill] sm:$0xff]  ;;  %v8103_v36 = vlaneseq }
 0x55d   : > { %v2501_v9 = vadd.f32 %v8102_v47, %v1707_v50 }
 0x55e   : > { %v6760_v13 = vpop.permute.xlu1 %3505  ;;  %3691 = vperm.xlu1 %4810, %v3290_v53   ;;  %v6762_v16 = vpop.permute.xlu0 %3514  ;;  %v2502_v61 = vadd.f32 %v8099_v27, %v1708_v37  ;;  %v6785_v5 = vand.u32 127, %v8103_v36  ;;  %v1709_v37 = vadd.f32 %v8106_v7, %v8105_v58  ;;  %v8107_v27 = vld [vmem:[#allocation328_spill] sm:$0xff]  ;;  %v8111_v36 = vld [vmem:[#allocation77_spill] sm:$0xff] }
 0x55f   : > { %8088 = vst [vmem:[#allocation266_spill] sm:$0xff] %v6762_v16  ;;  %3700 = vperm.xlu0 %4809, %v3293_v60   ;;  %v8101_v60 = vld [vmem:[#allocation213_spill] sm:$0xff]  ;;  %v3296_v35 = vsub.f32 %v2501_v9, %v6380_v38  ;;  %v8113_v38 = vld [vmem:[#allocation212_spill] sm:$0xff] }
 0x560   : > { %v1710_v34 = vadd.f32 %v8101_v60, %v8100_v12  ;;  %v3297_v40 = vsub.f32 %v2502_v61, %v6402_v39  ;;  %v3871_v50 = vadd.s32 4294967280, %v6785_v5  ;;  %v8108_v39 = vld [vmem:[#allocation99_spill] sm:$0xff]  ;;  %v8110_v60 = vld [vmem:[#allocation325_spill] sm:$0xff] }
 0x561   : > { %v8109_v61 = vld [vmem:[#allocation215_spill] sm:$0xff]  ;;  %v2503_v47 = vadd.f32 %v8110_v60, %v1709_v37 }
 0x562   : > { %v6772_v3 = vpop.permute.xlu1 %3511  ;;  %3697 = vperm.xlu1 %4810, %v3292_v49   ;;  %v6774_v53 = vpop.permute.xlu0 %3520  ;;  %v2504_v48 = vadd.f32 %v8107_v27, %v1710_v34  ;;  %v1712_v12 = vadd.f32 %v8109_v61, %v8108_v39  ;;  %v8112_v34 = vld [vmem:[#allocation100_spill] sm:$0xff]  ;;  %v8114_v27 = vld [vmem:[#allocation330_spill] sm:$0xff]  ;;  %v8116_v61 = vld [vmem:[#allocation217_spill] sm:$0xff] }
 0x563   : > { %8095 = vst [vmem:[#allocation378_spill] sm:$0xff] %v6772_v3  ;;  %8096 = vst [vmem:[#allocation36_spill] sm:$0xff] %v6774_v53  ;;  %3706 = vperm.xlu0 %4809, %v3295_v41   ;;  %v3864_v41 = vadd.s32 4294967288, %v6785_v5  ;;  %v6801_v53 = vsub.s32 %v6785_v5, %v8111_v36  ;;  %v1711_v9 = vadd.f32 %v8113_v38, %v8112_v34  ;;  %v3885_v34 = vadd.s32 4294967264, %v6785_v5  ;;  %v8117_v38 = vld [vmem:[#allocation102_spill] sm:$0xff] }
 0x564   : > { %v2506_v16 = vadd.f32 %v8114_v27, %v1712_v12  ;;  %v3298_v39 = vsub.f32 %v2503_v47, %v6392_v52  ;;  %v8119_v12 = vld [vmem:[#allocation327_spill] sm:$0xff] }
 0x565   : > { %v6809_v37 = vsub.s32 %v3864_v41, %v8111_v36  ;;  %v2505_v27 = vadd.f32 %v8119_v12, %v1711_v9  ;;  %v8124_v12 = vld [vmem:[#allocation216_spill] sm:$0xff] }
 0x566   : > { %v6787_v49 = vpop.permute.xlu1 %3517  ;;  %3703 = vperm.xlu1 %4810, %v3294_v10   ;;  %v3527_v25 = vpop.permute.xlu0 %3526  ;;  %v3299_v10 = vsub.f32 %v2504_v48, %v6414_v4  ;;  %v8115_v48 = vld [vmem:[#allocation101_spill] sm:$0xff]  ;;  %v3301_v52 = vsub.f32 %v2506_v16, %v6426_v24  ;;  %v8121_v16 = vld [vmem:[#allocation103_spill] sm:$0xff] }
 0x567   : > { %8104 = vst [vmem:[#allocation153_spill] sm:$0xff] %v6787_v49  ;;  %3712 = vperm.xlu0 %4809, %v3297_v40   ;;  %v3878_v40 = vadd.s32 4294967272, %v6785_v5  ;;  %v1714_v60 = vadd.f32 %v8116_v61, %v8115_v48  ;;  %v8118_v49 = vld [vmem:[#allocation214_spill] sm:$0xff]  ;;  %v3976_v41 = vrot.slane %v3527_v25, %v6809_v37  ;;  %v3300_v3 = vsub.f32 %v2505_v27, %v6404_v15  ;;  %v8122_v25 = vld [vmem:[#allocation219_spill] sm:$0xff]  ;;  %v8125_v15 = vld [vmem:[#allocation329_spill] sm:$0xff] }
 0x568   : > { %v1713_v2 = vadd.f32 %v8118_v49, %v8117_v38  ;;  %v3892_v49 = vadd.s32 4294967256, %v6785_v5  ;;  %v1716_v9 = vadd.f32 %v8122_v25, %v8121_v16  ;;  %v8123_v38 = vld [vmem:[#allocation104_spill] sm:$0xff] }
 0x569   : > { %v6825_v48 = vsub.s32 %v3878_v40, %v8111_v36  ;;  %v3899_v40 = vadd.s32 4294967248, %v6785_v5 }
 0x56a   : > { %v3524_v58 = vpop.permute.xlu1 %3523  ;;  %3709 = vperm.xlu1 %4810, %v3296_v35   ;;  %v3533_v7 = vpop.permute.xlu0 %3532  ;;  %v6815_v35 = vsub.s32 %v3871_v50, %v8111_v36  ;;  %v2507_v27 = vadd.f32 %v8125_v15, %v1713_v2  ;;  %v8127_v2 = vld [vmem:[#allocation105_spill] sm:$0xff]  ;;  %v8130_v15 = vld [vmem:[#allocation218_spill] sm:$0xff] }
 0x56b   : > { %v3972_v4 = vrot.slane %v3524_v58, %v6801_v53  ;;  %3718 = vperm.xlu0 %4809, %v3299_v10   ;;  %v8120_v10 = vld [vmem:[#allocation332_spill] sm:$0xff] }
 0x56c   : > { %v2508_v58 = vadd.f32 %v8120_v10, %v1714_v60 }
 0x56d   : > { %v3977_v24 = vsel %vm3869_vm0, %v3976_v41, %v3972_v4  ;;  %v3986_v4 = vrot.slane %v3533_v7, %v6825_v48  ;;  %v8126_v41 = vld [vmem:[#allocation334_spill] sm:$0xff]  ;;  %v8128_v7 = vld [vmem:[#allocation221_spill] sm:$0xff] }
 0x56e   : > { %v3530_v47 = vpop.permute.xlu1 %3529  ;;  %3715 = vperm.xlu1 %4810, %v3298_v39   ;;  %v3539_v61 = vpop.permute.xlu0 %3538  ;;  %v6834_v39 = vsub.s32 %v3885_v34, %v8111_v36  ;;  %v3303_v10 = vsub.f32 %v2508_v58, %v6438_v57  ;;  %v2510_v16 = vadd.f32 %v8126_v41, %v1716_v9  ;;  %v3906_v34 = vadd.s32 4294967240, %v6785_v5 }
 0x56f   : > { %v3981_v50 = vrot.slane %v3530_v47, %v6815_v35  ;;  %3724 = vperm.xlu0 %4809, %v3301_v52   ;;  %v1715_v47 = vadd.f32 %v8124_v12, %v8123_v38  ;;  %v6854_v58 = vsub.s32 %v3899_v40, %v8111_v36  ;;  %v3913_v9 = vadd.s32 4294967232, %v6785_v5  ;;  %v8129_v12 = vld [vmem:[#allocation106_spill] sm:$0xff] }
 0x570   : > { %v6865_v40 = vsub.s32 %v3906_v34, %v8111_v36  ;;  %v3927_v34 = vadd.s32 4294967216, %v6785_v5 }
 0x571   : > { %v3982_v60 = vsel %vm3876_vm1, %v3981_v50, %v3977_v24  ;;  %v3302_v50 = vsub.f32 %v2507_v27, %v6416_v45  ;;  %v6848_v24 = vsub.s32 %v3892_v49, %v8111_v36  ;;  %v1717_v45 = vadd.f32 %v8130_v15, %v8129_v12  ;;  %v8131_v27 = vld [vmem:[#allocation331_spill] sm:$0xff]  ;;  %v8135_v12 = vld [vmem:[#allocation108_spill] sm:$0xff] }
 0x572   : > { %v3536_v52 = vpop.permute.xlu1 %3535  ;;  %3721 = vperm.xlu1 %4810, %v3300_v3   ;;  %v3545_v20 = vpop.permute.xlu0 %3544  ;;  %v3987_v57 = vsel %vm3883_vm2, %v3986_v4, %v3982_v60  ;;  %v1718_v3 = vadd.f32 %v8128_v7, %v8127_v2  ;;  %v2509_v49 = vadd.f32 %v8131_v27, %v1715_v47  ;;  %v8132_v4 = vld [vmem:[#allocation336_spill] sm:$0xff]  ;;  %v3920_v47 = vadd.s32 4294967224, %v6785_v5 }
 0x573   : > { %v3991_v25 = vrot.slane %v3536_v52, %v6834_v39  ;;  %3730 = vperm.xlu0 %4809, %v3303_v10   ;;  %v3305_v52 = vsub.f32 %v2510_v16, %v6450_v46  ;;  %v3996_v60 = vrot.slane %v3539_v61, %v6848_v24  ;;  %v8133_v61 = vld [vmem:[#allocation107_spill] sm:$0xff]  ;;  %v6874_v7 = vsub.s32 %v3913_v9, %v8111_v36  ;;  %v8136_v15 = vld [vmem:[#allocation220_spill] sm:$0xff] }
 0x574   : > { %v2512_v41 = vadd.f32 %v8132_v4, %v1718_v3  ;;  %v8134_v16 = vld [vmem:[#allocation223_spill] sm:$0xff]  ;;  %v1719_v27 = vadd.f32 %v8136_v15, %v8135_v12  ;;  %v3934_v9 = vadd.s32 4294967208, %v6785_v5  ;;  %v8141_v15 = vld [vmem:[#allocation110_spill] sm:$0xff] }
 0x575   : > { %v3992_v38 = vsel %vm3890_vm3, %v3991_v25, %v3987_v57  ;;  %v3304_v57 = vsub.f32 %v2509_v49, %v6428_v17  ;;  %v8137_v17 = vld [vmem:[#allocation333_spill] sm:$0xff] }
 0x576   : > { %v3542_v10 = vpop.permute.xlu1 %3541  ;;  %3727 = vperm.xlu1 %4810, %v3302_v50   ;;  %v3551_v25 = vpop.permute.xlu0 %3550  ;;  %v3997_v46 = vsel %vm3897_vm4, %v3996_v60, %v3992_v38  ;;  %v1720_v50 = vadd.f32 %v8134_v16, %v8133_v61  ;;  %v2511_v49 = vadd.f32 %v8137_v17, %v1717_v45  ;;  %v4006_v38 = vrot.slane %v3545_v20, %v6865_v40  ;;  %v8138_v60 = vld [vmem:[#allocation338_spill] sm:$0xff]  ;;  %v8139_v20 = vld [vmem:[#allocation109_spill] sm:$0xff] }
 0x577   : > { %v4001_v2 = vrot.slane %v3542_v10, %v6854_v58  ;;  %3736 = vperm.xlu0 %4809, %v3305_v52   ;;  %v3307_v10 = vsub.f32 %v2512_v41, %v6462_v28  ;;  %v8140_v45 = vld [vmem:[#allocation225_spill] sm:$0xff]  ;;  %v8142_v17 = vld [vmem:[#allocation222_spill] sm:$0xff] }
 0x578   : > { %v2514_v4 = vadd.f32 %v8138_v60, %v1720_v50  ;;  %v1722_v41 = vadd.f32 %v8140_v45, %v8139_v20  ;;  %v3941_v50 = vadd.s32 4294967200, %v6785_v5 }
 0x579   : > { %v4002_v3 = vsel %vm3904_vm5, %v4001_v2, %v3997_v46  ;;  %v3306_v2 = vsub.f32 %v2511_v49, %v6440_v8  ;;  %v6888_v46 = vsub.s32 %v3920_v47, %v8111_v36  ;;  %v1721_v8 = vadd.f32 %v8142_v17, %v8141_v15  ;;  %v8143_v49 = vld [vmem:[#allocation335_spill] sm:$0xff]  ;;  %v8147_v15 = vld [vmem:[#allocation337_spill] sm:$0xff] }
 0x57a   : > { %v3548_v52 = vpop.permute.xlu1 %3547  ;;  %3733 = vperm.xlu1 %4810, %v3304_v57   ;;  %v3557_v16 = vpop.permute.xlu0 %3556  ;;  %v4007_v28 = vsel %vm3911_vm6, %v4006_v38, %v4002_v3  ;;  %v6894_v57 = vsub.s32 %v3927_v34, %v8111_v36  ;;  %v2513_v47 = vadd.f32 %v8143_v49, %v1719_v27  ;;  %v8144_v38 = vld [vmem:[#allocation340_spill] sm:$0xff]  ;;  %v6905_v34 = vsub.s32 %v3934_v9, %v8111_v36 }
 0x57b   : > { %v4011_v61 = vrot.slane %v3548_v52, %v6874_v7  ;;  %3742 = vperm.xlu0 %4809, %v3307_v10   ;;  %v3309_v52 = vsub.f32 %v2514_v4, %v6474_v55  ;;  %v4016_v3 = vrot.slane %v3551_v25, %v6888_v46  ;;  %v2516_v60 = vadd.f32 %v8144_v38, %v1722_v41  ;;  %v8145_v25 = vld [vmem:[#allocation111_spill] sm:$0xff]  ;;  %v8150_v38 = vld [vmem:[#allocation342_spill] sm:$0xff] }
 0x57c   : > { %v3948_v27 = vadd.s32 4294967192, %v6785_v5  ;;  %v8146_v4 = vld [vmem:[#allocation227_spill] sm:$0xff]  ;;  %v6914_v45 = vsub.s32 %v3941_v50, %v8111_v36  ;;  %v3955_v9 = vadd.s32 4294967184, %v6785_v5  ;;  %v2515_v17 = vadd.f32 %v8147_v15, %v1721_v8 }
 0x57d   : > { %v4012_v12 = vsel %vm3918_vm7, %v4011_v61, %v4007_v28  ;;  %v3308_v28 = vsub.f32 %v2513_v47, %v6452_v62  ;;  %v3311_v62 = vsub.f32 %v2516_v60, %v6486_v11  ;;  %v3962_v49 = vadd.s32 4294967176, %v6785_v5  ;;  %v8151_v5 = vld [vmem:[#allocation113_spill] sm:$0xff] }
 0x57e   : > { %v3554_v10 = vpop.permute.xlu1 %3553  ;;  %3739 = vperm.xlu1 %4810, %v3306_v2   ;;  %v3563_v61 = vpop.permute.xlu0 %3562  ;;  %v4017_v55 = vsel %vm3925_vm8, %v4016_v3, %v4012_v12  ;;  %v1724_v2 = vadd.f32 %v8146_v4, %v8145_v25  ;;  %v4026_v47 = vrot.slane %v3557_v16, %v6905_v34  ;;  %v8149_v3 = vld [vmem:[#allocation224_spill] sm:$0xff]  ;;  %v6928_v8 = vsub.s32 %v3948_v27, %v8111_v36  ;;  %v8152_v16 = vld [vmem:[#allocation229_spill] sm:$0xff] }
 0x57f   : > { %v4021_v20 = vrot.slane %v3554_v10, %v6894_v57  ;;  %3748 = vperm.xlu0 %4809, %v3309_v52   ;;  %v8148_v52 = vld [vmem:[#allocation112_spill] sm:$0xff]  ;;  %v1726_v60 = vadd.f32 %v8152_v16, %v8151_v5 }
 0x580   : > { %v1723_v10 = vadd.f32 %v8149_v3, %v8148_v52  ;;  %v2518_v50 = vadd.f32 %v8150_v38, %v1724_v2  ;;  %v8153_v2 = vld [vmem:[#allocation339_spill] sm:$0xff]  ;;  %v4036_v27 = vrot.slane %v3563_v61, %v6928_v8  ;;  %v8156_v52 = vld [vmem:[#allocation344_spill] sm:$0xff] }
 0x581   : > { %v4022_v41 = vsel %vm3932_vm9, %v4021_v20, %v4017_v55  ;;  %v3310_v20 = vsub.f32 %v2515_v17, %v6464_v31  ;;  %v6940_v31 = vsub.s32 %v3962_v49, %v8111_v36  ;;  %v2520_v3 = vadd.f32 %v8156_v52, %v1726_v60  ;;  %v8157_v61 = vld [vmem:[#allocation115_spill] sm:$0xff] }
 0x582   : > { %v3560_v12 = vpop.permute.xlu1 %3559  ;;  %3745 = vperm.xlu1 %4810, %v3308_v28   ;;  %v3569_v4 = vpop.permute.xlu0 %3568  ;;  %v4027_v11 = vsel %vm3939_vm10, %v4026_v47, %v4022_v41  ;;  %v6934_v28 = vsub.s32 %v3955_v9, %v8111_v36  ;;  %v2517_v15 = vadd.f32 %v8153_v2, %v1723_v10  ;;  %v8154_v41 = vld [vmem:[#allocation114_spill] sm:$0xff]  ;;  %v8158_v49 = vld [vmem:[#allocation231_spill] sm:$0xff] }
 0x583   : > { %v4031_v25 = vrot.slane %v3560_v12, %v6914_v45  ;;  %3754 = vperm.xlu0 %4809, %v3311_v62   ;;  %v3313_v12 = vsub.f32 %v2518_v50, %v6498_v56  ;;  %v8155_v62 = vld [vmem:[#allocation226_spill] sm:$0xff]  ;;  %v4046_v56 = vrot.slane %v3569_v4, %v6940_v31  ;;  %v1728_v50 = vadd.f32 %v8158_v49, %v8157_v61 }
 0x584   : > { %v1725_v47 = vadd.f32 %v8155_v62, %v8154_v41  ;;  %v3312_v10 = vsub.f32 %v2517_v15, %v6476_v18  ;;  %v3315_v16 = vsub.f32 %v2520_v3, %v6510_v54  ;;  %v3875_v18 = vrot.slane %v6712_v22, %v6815_v35  ;;  %v8162_v54 = vld [vmem:[#allocation346_spill] sm:$0xff]  ;;  %v8163_v62 = vld [vmem:[#allocation117_spill] sm:$0xff] }
 0x585   : > { %v4032_v55 = vsel %vm7409_vm11, %v4031_v25, %v4027_v11  ;;  %v3868_v25 = vrot.slane %v6700_v44, %v6809_v37  ;;  %v8159_v11 = vld [vmem:[#allocation341_spill] sm:$0xff]  ;;  %v2522_v41 = vadd.f32 %v8162_v54, %v1728_v50  ;;  %v8167_v49 = vld [vmem:[#allocation230_spill] sm:$0xff]  ;;  %v3903_v54 = vrot.slane %v6736_v43, %v6854_v58 }
 0x586   : > { %v3566_v17 = vpop.permute.xlu1 %3565  ;;  %3751 = vperm.xlu1 %4810, %v3310_v20   ;;  %v3575_v38 = vpop.permute.xlu0 %3574  ;;  %v4037_v36 = vsel %vm3953_vm12, %v4036_v27, %v4032_v55  ;;  %v2519_v5 = vadd.f32 %v8159_v11, %v1725_v47  ;;  %v3863_v55 = vrot.slane %v6690_v0, %v6801_v53  ;;  %v8161_v27 = vld [vmem:[#allocation228_spill] sm:$0xff]  ;;  %v8164_v47 = vld [vmem:[#allocation233_spill] sm:$0xff] }
 0x587   : > { %v4041_v9 = vrot.slane %v3566_v17, %v6934_v28  ;;  %3760 = vperm.xlu0 %4809, %v3313_v12   ;;  %v4055_v44 = vrot.slane %v3575_v38, %v6809_v37  ;;  %v8160_v12 = vld [vmem:[#allocation116_spill] sm:$0xff]  ;;  %v1730_v52 = vadd.f32 %v8164_v47, %v8163_v62  ;;  %v3896_v47 = vrot.slane %v6714_v19, %v6848_v24  ;;  %v8175_v43 = vld [vmem:[#allocation121_spill] sm:$0xff] }
 0x588   : > { %v1727_v17 = vadd.f32 %v8161_v27, %v8160_v12  ;;  %v3314_v22 = vsub.f32 %v2519_v5, %v6488_v30  ;;  %v3870_v3 = vsel %vm3869_vm0, %v3868_v25, %v3863_v55  ;;  %v8166_v30 = vld [vmem:[#allocation118_spill] sm:$0xff]  ;;  %v8168_v5 = vld [vmem:[#allocation348_spill] sm:$0xff] }
 0x589   : > { %v4042_v20 = vsel %vm3960_vm13, %v4041_v9, %v4037_v36  ;;  %v8165_v9 = vld [vmem:[#allocation343_spill] sm:$0xff]  ;;  %v3889_v36 = vrot.slane %v6724_v63, %v6834_v39  ;;  %v1729_v50 = vadd.f32 %v8167_v49, %v8166_v30 }
 0x58a   : > { %v6960_v4 = vsel %vm3967_vm14, %v4046_v56, %v4042_v20  ;;  %v3572_v60 = vpop.permute.xlu1 %3571  ;;  %3757 = vperm.xlu1 %4810, %v3312_v10   ;;  %v3581_v15 = vpop.permute.xlu0 %3580  ;;  %v2521_v38 = vadd.f32 %v8165_v9, %v1727_v17  ;;  %v3317_v10 = vsub.f32 %v2522_v41, %v6522_v6  ;;  %v3877_v56 = vsel %vm3876_vm1, %v3875_v18, %v3870_v3  ;;  %v8170_v63 = vld [vmem:[#allocation235_spill] sm:$0xff]  ;;  %v8172_v41 = vld [vmem:[#allocation120_spill] sm:$0xff] }
 0x58b   : > { %v4051_v2 = vrot.slane %v3572_v60, %v6801_v53  ;;  %3766 = vperm.xlu0 %4809, %v3315_v16   ;;  %v3882_v20 = vrot.slane %v6702_v29, %v6825_v48  ;;  %v2524_v16 = vadd.f32 %v8168_v5, %v1730_v52  ;;  %v4065_v18 = vrot.slane %v3581_v15, %v6825_v48  ;;  %v8169_v60 = vld [vmem:[#allocation119_spill] sm:$0xff]  ;;  %v8179_v5 = vld [vmem:[#allocation234_spill] sm:$0xff] }
 0x58c   : > { %v3316_v6 = vsub.f32 %v2521_v38, %v6500_v1  ;;  %v1732_v55 = vadd.f32 %v8170_v63, %v8169_v60  ;;  %v8180_v63 = vld [vmem:[#allocation352_spill] sm:$0xff] }
 0x58d   : > { %v4056_v0 = vsel %vm3869_vm0, %v4055_v44, %v4051_v2  ;;  %v8171_v44 = vld [vmem:[#allocation345_spill] sm:$0xff]  ;;  %v3884_v12 = vsel %vm3883_vm2, %v3882_v20, %v3877_v56  ;;  %v3319_v29 = vsub.f32 %v2524_v16, %v6534_v42  ;;  %v3917_v20 = vrot.slane %v6748_v32, %v6874_v7  ;;  %v8181_v32 = vld [vmem:[#allocation130_spill] sm:$0xff] }
 0x58e   : > { %v3578_v61 = vpop.permute.xlu1 %3577  ;;  %3763 = vperm.xlu1 %4810, %v3314_v22   ;;  %v3587_v11 = vpop.permute.xlu0 %3586  ;;  %v2523_v2 = vadd.f32 %v8171_v44, %v1729_v50  ;;  %v3891_v17 = vsel %vm3890_vm3, %v3889_v36, %v3884_v12  ;;  %v8173_v22 = vld [vmem:[#allocation232_spill] sm:$0xff]  ;;  %v8177_v36 = vld [vmem:[#allocation347_spill] sm:$0xff] }
 0x58f   : > { %v4060_v25 = vrot.slane %v3578_v61, %v6815_v35  ;;  %3772 = vperm.xlu0 %4809, %v3317_v10   ;;  %v1731_v62 = vadd.f32 %v8173_v22, %v8172_v41  ;;  %v4075_v38 = vrot.slane %v3587_v11, %v6848_v24  ;;  %v8176_v10 = vld [vmem:[#allocation237_spill] sm:$0xff]  ;;  %v3898_v30 = vsel %vm3897_vm4, %v3896_v47, %v3891_v17  ;;  %v8178_v11 = vld [vmem:[#allocation122_spill] sm:$0xff]  ;;  %v8184_v22 = vld [vmem:[#allocation124_spill] sm:$0xff] }
 0x590   : > { %v3318_v9 = vsub.f32 %v2523_v2, %v6512_v26  ;;  %v1734_v56 = vadd.f32 %v8176_v10, %v8175_v43  ;;  %v3905_v50 = vsel %vm3904_vm5, %v3903_v54, %v3898_v30  ;;  %v1733_v16 = vadd.f32 %v8179_v5, %v8178_v11  ;;  %v8182_v2 = vld [vmem:[#allocation242_spill] sm:$0xff]  ;;  %v8188_v43 = vld [vmem:[#allocation244_spill] sm:$0xff]  ;;  %v8193_v11 = vld [vmem:[#allocation245_spill] sm:$0xff] }
 0x591   : > { %v4061_v27 = vsel %vm3876_vm1, %v4060_v25, %v4056_v0  ;;  %v8174_v0 = vld [vmem:[#allocation350_spill] sm:$0xff]  ;;  %v2525_v61 = vadd.f32 %v8177_v36, %v1731_v62  ;;  %v1741_v12 = vadd.f32 %v8182_v2, %v8181_v32  ;;  %v8185_v62 = vld [vmem:[#allocation236_spill] sm:$0xff] }
 0x592   : > { %v3584_v1 = vpop.permute.xlu1 %3583  ;;  %v4066_v15 = vsel %vm3883_vm2, %v4065_v18, %v4061_v27  ;;  %3769 = vperm.xlu1 %4810, %v3316_v6   ;;  %v3593_v3 = vpop.permute.xlu0 %3592  ;;  %v2526_v42 = vadd.f32 %v8174_v0, %v1732_v55  ;;  %v3910_v6 = vrot.slane %v6726_v33, %v6865_v40  ;;  %v8183_v27 = vld [vmem:[#allocation349_spill] sm:$0xff]  ;;  %v1735_v47 = vadd.f32 %v8185_v62, %v8184_v22  ;;  %v8197_v2 = vld [vmem:[#allocation134_spill] sm:$0xff] }
 0x593   : > { %v4070_v52 = vrot.slane %v3584_v1, %v6834_v39  ;;  %3778 = vperm.xlu0 %4809, %v3319_v29   ;;  %v3320_v55 = vsub.f32 %v2525_v61, %v6524_v59  ;;  %v4085_v44 = vrot.slane %v3593_v3, %v6865_v40  ;;  %v2527_v29 = vadd.f32 %v8183_v27, %v1733_v16  ;;  %v8194_v16 = vld [vmem:[#allocation148_spill] sm:$0xff] }
 0x594   : > { %v3321_v19 = vsub.f32 %v2526_v42, %v6546_v14  ;;  %v2528_v14 = vadd.f32 %v8180_v63, %v1734_v56  ;;  %v3912_v17 = vsel %vm3911_vm6, %v3910_v6, %v3905_v50  ;;  %v8186_v42 = vld [vmem:[#allocation357_spill] sm:$0xff]  ;;  %v8189_v56 = vld [vmem:[#allocation351_spill] sm:$0xff]  ;;  %v8191_v50 = vld [vmem:[#allocation378_spill] sm:$0xff]  ;;  %v3938_v6 = vrot.slane %v8194_v16, %v6905_v34 }
 0x595   : > { %v4071_v49 = vsel %vm3890_vm3, %v4070_v52, %v4066_v15  ;;  %v3919_v1 = vsel %vm3918_vm7, %v3917_v20, %v3912_v17  ;;  %v3931_v15 = vrot.slane %v6760_v13, %v6894_v57  ;;  %v3924_v52 = vrot.slane %v6738_v21, %v6888_v46  ;;  %v8187_v13 = vld [vmem:[#allocation132_spill] sm:$0xff]  ;;  %v8190_v21 = vld [vmem:[#allocation31_spill] sm:$0xff]  ;;  %v8211_v16 = vld [vmem:[#allocation133_spill] sm:$0xff] }
 0x596   : > { %v3590_v26 = vpop.permute.xlu1 %3589  ;;  %v4076_v25 = vsel %vm3897_vm4, %v4075_v38, %v4071_v49  ;;  %3775 = vperm.xlu1 %4810, %v3318_v9   ;;  %v3599_v60 = vpop.permute.xlu0 %3598  ;;  %v3323_v33 = vsub.f32 %v2528_v14, %v6558_v51  ;;  %v2535_v51 = vadd.f32 %v8186_v42, %v1741_v12  ;;  %v3322_v9 = vsub.f32 %v2527_v29, %v6536_v23  ;;  %v8195_v63 = vld [vmem:[#allocation359_spill] sm:$0xff]  ;;  %v8198_v12 = vld [vmem:[#allocation246_spill] sm:$0xff]  ;;  %v8199_v29 = vld [vmem:[#allocation360_spill] sm:$0xff] }
 0x597   : > { %v4080_v18 = vrot.slane %v3590_v26, %v6854_v58  ;;  %3784 = vperm.xlu0 %4809, %v3321_v19   ;;  %v4095_v38 = vrot.slane %v3599_v60, %v6888_v46  ;;  %v1743_v10 = vadd.f32 %v8188_v43, %v8187_v13  ;;  %v2529_v36 = vadd.f32 %v8189_v56, %v1735_v47  ;;  %v8205_v13 = vld [vmem:[#allocation361_spill] sm:$0xff] }
 0x598   : > { %v3926_v61 = vsel %vm3925_vm8, %v3924_v52, %v3919_v1  ;;  %v3330_v49 = vsub.f32 %v2535_v51, %v8190_v21  ;;  %v3945_v20 = vrot.slane %v8191_v50, %v6914_v45  ;;  %v1745_v27 = vadd.f32 %v8198_v12, %v8197_v2  ;;  %v8200_v1 = vld [vmem:[#allocation262_spill] sm:$0xff]  ;;  %v8203_v51 = vld [vmem:[#allocation131_spill] sm:$0xff]  ;;  %v8215_v2 = vld [vmem:[#allocation149_spill] sm:$0xff] }
 0x599   : > { %v4081_v54 = vsel %vm3904_vm5, %v4080_v18, %v4076_v25  ;;  %v3933_v19 = vsel %vm3932_vm9, %v3931_v15, %v3926_v61  ;;  %v8192_v25 = vld [vmem:[#allocation129_spill] sm:$0xff]  ;;  %v2537_v14 = vadd.f32 %v8195_v63, %v1743_v10  ;;  %v8202_v52 = vld [vmem:[#allocation266_spill] sm:$0xff]  ;;  %v8206_v10 = vld [vmem:[#allocation375_spill] sm:$0xff] }
 0x59a   : > { %v3596_v59 = vpop.permute.xlu1 %3595  ;;  %v4086_v41 = vsel %vm3911_vm6, %v4085_v44, %v4081_v54  ;;  %3781 = vperm.xlu1 %4810, %v3320_v55   ;;  %v3605_v0 = vpop.permute.xlu0 %3604  ;;  %v1742_v5 = vadd.f32 %v8193_v11, %v8192_v25  ;;  %v8196_v55 = vld [vmem:[#allocation374_spill] sm:$0xff]  ;;  %v3940_v54 = vsel %vm3939_vm10, %v3938_v6, %v3933_v19  ;;  %v2539_v43 = vadd.f32 %v8205_v13, %v1745_v27  ;;  %v8207_v61 = vld [vmem:[#allocation136_spill] sm:$0xff]  ;;  %v8212_v6 = vld [vmem:[#allocation249_spill] sm:$0xff] }
 0x59b   : > { %v4090_v3 = vrot.slane %v3596_v59, %v6874_v7  ;;  %3790 = vperm.xlu0 %4809, %v3323_v33   ;;  %v3324_v44 = vsub.f32 %v2529_v36, %v8196_v55  ;;  %v4105_v32 = vrot.slane %v3605_v0, %v6905_v34  ;;  %v3332_v15 = vsub.f32 %v2537_v14, %v8200_v1  ;;  %v8209_v50 = vld [vmem:[#allocation362_spill] sm:$0xff] }
 0x59c   : > { %v2536_v17 = vadd.f32 %v8199_v29, %v1742_v5  ;;  %v3947_v59 = vsel %vm7409_vm11, %v3945_v20, %v3940_v54  ;;  %v8216_v29 = vld [vmem:[#allocation138_spill] sm:$0xff] }
 0x59d   : > { %v4091_v30 = vsel %vm3918_vm7, %v4090_v3, %v4086_v41  ;;  %v8201_v41 = vld [vmem:[#allocation153_spill] sm:$0xff]  ;;  %v3952_v3 = vrot.slane %v8202_v52, %v6928_v8 }
 0x59e   : > { %v3602_v23 = vpop.permute.xlu1 %3601  ;;  %v4096_v26 = vsel %vm3925_vm8, %v4095_v38, %v4091_v30  ;;  %3787 = vperm.xlu1 %4810, %v3322_v9   ;;  %v3611_v60 = vpop.permute.xlu0 %3610  ;;  %v3959_v22 = vrot.slane %v8201_v41, %v6934_v28  ;;  %v8204_v9 = vld [vmem:[#allocation247_spill] sm:$0xff]  ;;  %v3331_v56 = vsub.f32 %v2536_v17, %v8206_v10  ;;  %v8208_v30 = vld [vmem:[#allocation248_spill] sm:$0xff]  ;;  %v8217_v17 = vld [vmem:[#allocation250_spill] sm:$0xff] }
 0x59f   : > { %v4100_v18 = vrot.slane %v3602_v23, %v6894_v57  ;;  %3811 = vperm.xlu0 %4809, %v3330_v49   ;;  %v1744_v38 = vadd.f32 %v8204_v9, %v8203_v51  ;;  %v4115_v36 = vrot.slane %v3611_v60, %v6928_v8  ;;  %v1747_v21 = vadd.f32 %v8208_v30, %v8207_v61  ;;  %v8210_v23 = vld [vmem:[#allocation32_spill] sm:$0xff]  ;;  %v8220_v9 = vld [vmem:[#allocation135_spill] sm:$0xff] }
 0x5a0   : > { %v3954_v49 = vsel %vm3953_vm12, %v3952_v3, %v3947_v59  ;;  %v8213_v60 = vld [vmem:[#allocation36_spill] sm:$0xff]  ;;  %v1749_v54 = vadd.f32 %v8217_v17, %v8216_v29  ;;  %v8224_v61 = vld [vmem:[#allocation123_spill] sm:$0xff] }
 0x5a1   : > { %v4101_v33 = vsel %vm3932_vm9, %v4100_v18, %v4096_v26  ;;  %v2538_v20 = vadd.f32 %v8209_v50, %v1744_v38  ;;  %v3334_v26 = vsub.f32 %v2539_v43, %v8210_v23  ;;  %v3961_v25 = vsel %vm3960_vm13, %v3959_v22, %v3954_v49  ;;  %v8219_v41 = vld [vmem:[#allocation260_spill] sm:$0xff]  ;;  %v8221_v38 = vld [vmem:[#allocation251_spill] sm:$0xff]  ;;  %v8222_v43 = vld [vmem:[#allocation365_spill] sm:$0xff] }
 0x5a2   : > { %v3608_v62 = vpop.permute.xlu1 %3607  ;;  %v4106_v47 = vsel %vm3939_vm10, %v4105_v32, %v4101_v33  ;;  %3793 = vperm.xlu1 %4810, %v3324_v44   ;;  %v3617_v42 = vpop.permute.xlu0 %3616  ;;  %v1746_v18 = vadd.f32 %v8212_v6, %v8211_v16  ;;  %v3966_v63 = vrot.slane %v8213_v60, %v6940_v31  ;;  %v8214_v44 = vld [vmem:[#allocation363_spill] sm:$0xff]  ;;  %v1748_v13 = vadd.f32 %v8221_v38, %v8220_v9  ;;  %v8226_v49 = vld [vmem:[#allocation366_spill] sm:$0xff]  ;;  %v8227_v50 = vld [vmem:[#allocation33_spill] sm:$0xff] }
 0x5a3   : > { %v4110_v0 = vrot.slane %v3608_v62, %v6914_v45  ;;  %3817 = vperm.xlu0 %4809, %v3332_v15   ;;  %v2541_v32 = vadd.f32 %v8214_v44, %v1747_v21  ;;  %v3333_v12 = vsub.f32 %v2538_v20, %v8215_v2  ;;  %v4125_v27 = vrot.slane %v3617_v42, %v6940_v31  ;;  %v8218_v15 = vld [vmem:[#allocation364_spill] sm:$0xff]  ;;  %v8225_v30 = vld [vmem:[#allocation239_spill] sm:$0xff]  ;;  %v8230_v6 = vld [vmem:[#allocation354_spill] sm:$0xff] }
 0x5a4   : > { %v3968_v33 = vsel %vm3967_vm14, %v3966_v63, %v3961_v25  ;;  %v2540_v59 = vadd.f32 %v8218_v15, %v1746_v18  ;;  %v2543_v10 = vadd.f32 %v8222_v43, %v1749_v54  ;;  %v1736_v21 = vadd.f32 %v8225_v30, %v8224_v61  ;;  %v8231_v60 = vld [vmem:[#allocation146_spill] sm:$0xff]  ;;  %v8235_v29 = vld [vmem:[#allocation147_spill] sm:$0xff]  ;;  %v8240_v9 = vld [vmem:[#allocation125_spill] sm:$0xff] }
 0x5a5   : > { %v4111_v19 = vsel %vm7409_vm11, %v4110_v0, %v4106_v47  ;;  %vm4524_vm11 = vcmask 1042434   ;;  %v3336_v22 = vsub.f32 %v2541_v32, %v8219_v41  ;;  %v4523_v62 = vsel %vm4522_vm15, %v6960_v4, %v3968_v33  ;;  %v8232_v44 = vld [vmem:[#allocation126_spill] sm:$0xff]  ;;  %v8237_v41 = vld [vmem:[#allocation252_spill] sm:$0xff]  ;;  %v8241_v38 = vld [vmem:[#allocation241_spill] sm:$0xff] }
 0x5a6   : > { %v3614_v11 = vpop.permute.xlu1 %3613  ;;  %v4116_v5 = vsel %vm3953_vm12, %v4115_v36, %v4111_v19  ;;  %3814 = vperm.xlu1 %4810, %v3331_v56   ;;  %v3623_v55 = vpop.permute.xlu0 %3622  ;;  %v8223_v56 = vld [vmem:[#allocation379_spill] sm:$0xff]  ;;  %v2542_v19 = vadd.f32 %v8226_v49, %v1748_v13  ;;  %v3338_v20 = vsub.f32 %v2543_v10, %v8227_v50  ;;  %v2530_v18 = vadd.f32 %v8230_v6, %v1736_v21  ;;  %v8233_v32 = vld [vmem:[#allocation238_spill] sm:$0xff]  ;;  %v8249_v6 = vld [vmem:[#allocation240_spill] sm:$0xff] }
 0x5a7   : > { %v4120_v14 = vrot.slane %v3614_v11, %v6934_v28  ;;  %3823 = vperm.xlu0 %4809, %v3334_v26   ;;  %v4134_v0 = vrot.slane %v3623_v55, %v6809_v37  ;;  %v3335_v36 = vsub.f32 %v2540_v59, %v8223_v56  ;;  %v8228_v11 = vld [vmem:[#allocation137_spill] sm:$0xff]  ;;  %v1737_v2 = vadd.f32 %v8233_v32, %v8232_v44  ;;  %v8236_v59 = vld [vmem:[#allocation140_spill] sm:$0xff]  ;;  %v8242_v43 = vld [vmem:[#allocation367_spill] sm:$0xff] }
 0x5a8   : > { %v3337_v63 = vsub.f32 %v2542_v19, %v8231_v60  ;;  %v3325_v17 = vsub.f32 %v2530_v18, %v8235_v29  ;;  %v1738_v13 = vadd.f32 %v8241_v38, %v8240_v9  ;;  %v8243_v56 = vld [vmem:[#allocation30_spill] sm:$0xff]  ;;  %v8244_v49 = vld [vmem:[#allocation139_spill] sm:$0xff]  ;;  %vm4526_vm15 = vcmask 1043459  }
 0x5a9   : > { %v4121_v1 = vsel %vm3960_vm13, %v4120_v14, %v4116_v5  ;;  %v8229_v5 = vld [vmem:[#allocation253_spill] sm:$0xff]  ;;  %v8245_v19 = vld [vmem:[#allocation255_spill] sm:$0xff]  ;;  %v8250_v60 = vld [vmem:[#allocation370_spill] sm:$0xff] }
 0x5aa   : > { %v4126_v47 = vsel %vm3967_vm14, %v4125_v27, %v4121_v1  ;;  %v3620_v52 = vpop.permute.xlu1 %3619  ;;  %3820 = vperm.xlu1 %4810, %v3333_v12   ;;  %v3629_v51 = vpop.permute.xlu0 %3628  ;;  %v1750_v16 = vadd.f32 %v8229_v5, %v8228_v11  ;;  %v8234_v12 = vld [vmem:[#allocation368_spill] sm:$0xff]  ;;  %v1752_v50 = vadd.f32 %v8245_v19, %v8244_v49  ;;  %v8253_v29 = vld [vmem:[#allocation254_spill] sm:$0xff] }
 0x5ab   : > { %v7101_v3 = vsel %vm4524_vm11, %v4126_v47, %v4523_v62  ;;  %v4130_v42 = vrot.slane %v3620_v52, %v6801_v53  ;;  %3829 = vperm.xlu0 %4809, %v3336_v22   ;;  %v4144_v14 = vrot.slane %v3629_v51, %v6825_v48  ;;  %v1751_v22 = vadd.f32 %v8237_v41, %v8236_v59  ;;  %v8238_v62 = vld [vmem:[#allocation353_spill] sm:$0xff]  ;;  %v8239_v52 = vld [vmem:[#allocation376_spill] sm:$0xff] }
 0x5ac   : > { %v2544_v27 = vadd.f32 %v8234_v12, %v1750_v16  ;;  %v2531_v47 = vadd.f32 %v8238_v62, %v1737_v2  ;;  %v8248_v16 = vld [vmem:[#allocation128_spill] sm:$0xff]  ;;  %v8257_v62 = vld [vmem:[#allocation243_spill] sm:$0xff]  ;;  %vm8272_vm11 = vcmask 851712  }
 0x5ad   : > { %v4135_v4 = vsel %vm3869_vm0, %v4134_v0, %v4130_v42  ;;  %v2545_v10 = vadd.f32 %v8242_v43, %v1751_v22  ;;  %v1739_v18 = vadd.f32 %v8249_v6, %v8248_v16  ;;  %v8256_v22 = vld [vmem:[#allocation127_spill] sm:$0xff] }
 0x5ae   : > { %v3626_v23 = vpop.permute.xlu1 %3625  ;;  %3826 = vperm.xlu1 %4810, %v3335_v36   ;;  %v3635_v25 = vpop.permute.xlu0 %3634  ;;  %v3339_v0 = vsub.f32 %v2544_v27, %v8239_v52  ;;  %v3326_v36 = vsub.f32 %v2531_v47, %v8243_v56  ;;  %v8252_v27 = vld [vmem:[#allocation142_spill] sm:$0xff]  ;;  %v1740_v47 = vadd.f32 %v8257_v62, %v8256_v22  ;;  %v8258_v52 = vld [vmem:[#allocation369_spill] sm:$0xff] }
 0x5af   : > { %v4139_v26 = vrot.slane %v3626_v23, %v6815_v35  ;;  %3835 = vperm.xlu0 %4809, %v3338_v20   ;;  %v4154_v42 = vrot.slane %v3635_v25, %v6848_v24  ;;  %v8246_v20 = vld [vmem:[#allocation356_spill] sm:$0xff]  ;;  %v8261_v56 = vld [vmem:[#allocation257_spill] sm:$0xff] }
 0x5b0   : > { %v2532_v23 = vadd.f32 %v8246_v20, %v1738_v13  ;;  %v8265_v20 = vld [vmem:[#allocation258_spill] sm:$0xff]  ;;  %v8275_v62 = vld [vmem:[#allocation381_spill] sm:$0xff] }
 0x5b1   : > { %v4140_v55 = vsel %vm3876_vm1, %v4139_v26, %v4135_v4  ;;  %v8247_v26 = vld [vmem:[#allocation264_spill] sm:$0xff] }
 0x5b2   : > { %v3632_v54 = vpop.permute.xlu1 %3631  ;;  %v4145_v33 = vsel %vm3883_vm2, %v4144_v14, %v4140_v55  ;;  %3832 = vperm.xlu1 %4810, %v3337_v63   ;;  %v3641_v15 = vpop.permute.xlu0 %3640  ;;  %v3340_v25 = vsub.f32 %v2545_v10, %v8247_v26  ;;  %v2546_v63 = vadd.f32 %v8250_v60, %v1752_v50  ;;  %v8251_v14 = vld [vmem:[#allocation377_spill] sm:$0xff]  ;;  %v8264_v50 = vld [vmem:[#allocation143_spill] sm:$0xff]  ;;  %v8266_v26 = vld [vmem:[#allocation372_spill] sm:$0xff] }
 0x5b3   : > { %v4149_v1 = vrot.slane %v3632_v54, %v6834_v39  ;;  %3796 = vperm.xlu0 %4809, %v3325_v17   ;;  %v4164_v11 = vrot.slane %v3641_v15, %v6865_v40  ;;  %v3327_v55 = vsub.f32 %v2532_v23, %v8251_v14  ;;  %v1753_v17 = vadd.f32 %v8253_v29, %v8252_v27  ;;  %v8254_v54 = vld [vmem:[#allocation355_spill] sm:$0xff]  ;;  %v8260_v10 = vld [vmem:[#allocation141_spill] sm:$0xff]  ;;  %v8269_v14 = vld [vmem:[#allocation256_spill] sm:$0xff] }
 0x5b4   : > { %v1756_v23 = vadd.f32 %v8265_v20, %v8264_v50 }
 0x5b5   : > { %v4150_v51 = vsel %vm3890_vm3, %v4149_v1, %v4145_v33  ;;  %v2533_v33 = vadd.f32 %v8254_v54, %v1739_v18  ;;  %v8255_v1 = vld [vmem:[#allocation151_spill] sm:$0xff] }
 0x5b6   : > { %v3638_v4 = vpop.permute.xlu1 %3637  ;;  %v4155_v61 = vsel %vm3897_vm4, %v4154_v42, %v4150_v51  ;;  %3838 = vperm.xlu1 %4810, %v3339_v0   ;;  %v3647_v21 = vpop.permute.xlu0 %3646  ;;  %v3341_v15 = vsub.f32 %v2546_v63, %v8255_v1  ;;  %v2547_v0 = vadd.f32 %v8258_v52, %v1753_v17  ;;  %v8259_v42 = vld [vmem:[#allocation259_spill] sm:$0xff]  ;;  %v8268_v63 = vld [vmem:[#allocation144_spill] sm:$0xff] }
 0x5b7   : > { %v4159_v30 = vrot.slane %v3638_v4, %v6854_v58  ;;  %3799 = vperm.xlu0 %4809, %v3326_v36   ;;  %v4174_v59 = vrot.slane %v3647_v21, %v6888_v46  ;;  %v3328_v51 = vsub.f32 %v2533_v33, %v8259_v42  ;;  %v1754_v36 = vadd.f32 %v8261_v56, %v8260_v10  ;;  %v8262_v4 = vld [vmem:[#allocation358_spill] sm:$0xff]  ;;  %v8273_v17 = vld [vmem:[#allocation371_spill] sm:$0xff] }
 0x5b8   : > { %v8274_v33 = vld [vmem:[#allocation35_spill] sm:$0xff] }
 0x5b9   : > { %v4160_v5 = vsel %vm3904_vm5, %v4159_v30, %v4155_v61  ;;  %v2534_v61 = vadd.f32 %v8262_v4, %v1740_v47  ;;  %v8263_v30 = vld [vmem:[#allocation34_spill] sm:$0xff] }
 0x5ba   : > { %v3644_v44 = vpop.permute.xlu1 %3643  ;;  %v4165_v32 = vsel %vm3911_vm6, %v4164_v11, %v4160_v5  ;;  %3841 = vperm.xlu1 %4810, %v3340_v25   ;;  %v3653_v12 = vpop.permute.xlu0 %3652  ;;  %v3342_v21 = vsub.f32 %v2547_v0, %v8263_v30  ;;  %v2548_v25 = vadd.f32 %v8266_v26, %v1754_v36  ;;  %v8267_v11 = vld [vmem:[#allocation145_spill] sm:$0xff] }
 0x5bb   : > { %v4169_v2 = vrot.slane %v3644_v44, %v6874_v7  ;;  %3802 = vperm.xlu0 %4809, %v3327_v55   ;;  %v4184_v49 = vrot.slane %v3653_v12, %v6905_v34  ;;  %v3329_v5 = vsub.f32 %v2534_v61, %v8267_v11  ;;  %v1755_v55 = vadd.f32 %v8269_v14, %v8268_v63  ;;  %v8270_v44 = vld [vmem:[#allocation373_spill] sm:$0xff] }
 0x5bd   : > { %v4170_v41 = vsel %vm3918_vm7, %v4169_v2, %v4165_v32  ;;  %v2550_v32 = vadd.f32 %v8270_v44, %v1756_v23  ;;  %v8271_v2 = vld [vmem:[#allocation261_spill] sm:$0xff]  ;;  %v2549_v54 = vadd.f32 %v8273_v17, %v1755_v55 }
 0x5be   : > { %v3650_v9 = vpop.permute.xlu1 %3649  ;;  %v4175_v38 = vsel %vm3925_vm8, %v4174_v59, %v4170_v41  ;;  %3844 = vperm.xlu1 %4810, %v3341_v15   ;;  %v3659_v43 = vpop.permute.xlu0 %3658  ;;  %v3343_v12 = vsub.f32 %v2548_v25, %v8271_v2 }
 0x5bf   : > { %v4179_v13 = vrot.slane %v3650_v9, %v6894_v57  ;;  %3805 = vperm.xlu0 %4809, %v3328_v51   ;;  %v4194_v27 = vrot.slane %v3659_v43, %v6928_v8  ;;  %v3345_v1 = vsub.f32 %v2550_v32, %v8274_v33  ;;  %v3344_v47 = vsub.f32 %v2549_v54, %v8275_v62 }
 0x5c1   : > { %v4180_v19 = vsel %vm3932_vm9, %v4179_v13, %v4175_v38 }
 0x5c2   : > { %v3656_v16 = vpop.permute.xlu1 %3655  ;;  %v4185_v6 = vsel %vm3939_vm10, %v4184_v49, %v4180_v19  ;;  %3847 = vperm.xlu1 %4810, %v3342_v21   ;;  %v3665_v60 = vpop.permute.xlu0 %3664 }
 0x5c3   : > { %v4189_v18 = vrot.slane %v3656_v16, %v6914_v45  ;;  %3808 = vperm.xlu0 %4809, %v3329_v5   ;;  %v4204_v52 = vrot.slane %v3665_v60, %v6940_v31 }
 0x5c5   : > { %v4190_v29 = vsel %vm8272_vm11, %v4189_v18, %v4185_v6 }
 0x5c6   : > { %v3662_v15 = vpop.permute.xlu1 %3661  ;;  %v4195_v59 = vsel %vm3953_vm12, %v4194_v27, %v4190_v29  ;;  %3850 = vperm.xlu1 %4810, %v3343_v12   ;;  %v3671_v22 = vpop.permute.xlu0 %3670 }
 0x5c7   : > { %v4199_v41 = vrot.slane %v3662_v15, %v6934_v28  ;;  %3856 = vperm.xlu0 %4809, %v3345_v1   ;;  %v4213_v38 = vrot.slane %v3671_v22, %v6809_v37 }
 0x5c9   : > { %v4200_v0 = vsel %vm3960_vm13, %v4199_v41, %v4195_v59 }
 0x5ca   : > { %v4205_v42 = vsel %vm3967_vm14, %v4204_v52, %v4200_v0  ;;  %v3668_v51 = vpop.permute.xlu1 %3667  ;;  %3853 = vperm.xlu1 %4810, %v3344_v47   ;;  %v3677_v43 = vpop.permute.xlu0 %3676 }
 0x5cb   : > { %v4527_v9 = vsel %vm4526_vm15, %v4205_v42, %v7101_v3  ;;  %v4209_v13 = vrot.slane %v3668_v51, %v6801_v53  ;;  %v4223_v61 = vrot.slane %v3677_v43, %v6825_v48  ;;  %vm4528_vm15 = vcmask 1044484  }
 0x5cd   : > { %v4214_v10 = vsel %vm3869_vm0, %v4213_v38, %v4209_v13 }
 0x5ce   : > { %v3674_v56 = vpop.permute.xlu1 %3673  ;;  %v3683_v4 = vpop.permute.xlu0 %3682 }
 0x5cf   : > { %v4218_v36 = vrot.slane %v3674_v56, %v6815_v35  ;;  %v4233_v50 = vrot.slane %v3683_v4, %v6848_v24 }
 0x5d1   : > { %v4219_v30 = vsel %vm3876_vm1, %v4218_v36, %v4214_v10 }
 0x5d2   : > { %v3680_v21 = vpop.permute.xlu1 %3679  ;;  %v4224_v49 = vsel %vm3883_vm2, %v4223_v61, %v4219_v30  ;;  %v3689_v19 = vpop.permute.xlu0 %3688 }
 0x5d3   : > { %v4228_v3 = vrot.slane %v3680_v21, %v6834_v39  ;;  %v4243_v5 = vrot.slane %v3689_v19, %v6865_v40 }
 0x5d5   : > { %v4229_v20 = vsel %vm3890_vm3, %v4228_v3, %v4224_v49 }
 0x5d6   : > { %v3686_v23 = vpop.permute.xlu1 %3685  ;;  %v4234_v26 = vsel %vm3897_vm4, %v4233_v50, %v4229_v20  ;;  %v3695_v11 = vpop.permute.xlu0 %3694 }
 0x5d7   : > { %v4238_v25 = vrot.slane %v3686_v23, %v6854_v58  ;;  %v4253_v14 = vrot.slane %v3695_v11, %v6888_v46 }
 0x5d9   : > { %v4239_v16 = vsel %vm3904_vm5, %v4238_v25, %v4234_v26 }
 0x5da   : > { %v3692_v6 = vpop.permute.xlu1 %3691  ;;  %v4244_v18 = vsel %vm3911_vm6, %v4243_v5, %v4239_v16  ;;  %v3701_v63 = vpop.permute.xlu0 %3700 }
 0x5db   : > { %v4248_v60 = vrot.slane %v3692_v6, %v6874_v7  ;;  %v4263_v27 = vrot.slane %v3701_v63, %v6905_v34 }
 0x5dd   : > { %v4249_v55 = vsel %vm3918_vm7, %v4248_v60, %v4244_v18 }
 0x5de   : > { %v3698_v44 = vpop.permute.xlu1 %3697  ;;  %v4254_v32 = vsel %vm3925_vm8, %v4253_v14, %v4249_v55  ;;  %v3707_v12 = vpop.permute.xlu0 %3706 }
 0x5df   : > { %v4258_v2 = vrot.slane %v3698_v44, %v6894_v57  ;;  %v4273_v15 = vrot.slane %v3707_v12, %v6928_v8 }
 0x5e1   : > { %v4259_v29 = vsel %vm3932_vm9, %v4258_v2, %v4254_v32 }
 0x5e2   : > { %v3704_v17 = vpop.permute.xlu1 %3703  ;;  %v4264_v54 = vsel %vm3939_vm10, %v4263_v27, %v4259_v29  ;;  %v3713_v1 = vpop.permute.xlu0 %3712 }
 0x5e3   : > { %v4268_v33 = vrot.slane %v3704_v17, %v6914_v45  ;;  %v4283_v52 = vrot.slane %v3713_v1, %v6940_v31 }
 0x5e5   : > { %v4269_v59 = vsel %vm8272_vm11, %v4268_v33, %v4264_v54 }
 0x5e6   : > { %v3710_v41 = vpop.permute.xlu1 %3709  ;;  %v4274_v22 = vsel %vm3953_vm12, %v4273_v15, %v4269_v59  ;;  %v3719_v47 = vpop.permute.xlu0 %3718 }
 0x5e7   : > { %v4278_v62 = vrot.slane %v3710_v41, %v6934_v28  ;;  %v4292_v13 = vrot.slane %v3719_v47, %v6809_v37 }
 0x5e9   : > { %v4279_v0 = vsel %vm3960_vm13, %v4278_v62, %v4274_v22 }
 0x5ea   : > { %v4284_v42 = vsel %vm3967_vm14, %v4283_v52, %v4279_v0  ;;  %v3716_v51 = vpop.permute.xlu1 %3715  ;;  %v3725_v10 = vpop.permute.xlu0 %3724 }
 0x5eb   : > { %v4529_v38 = vsel %vm4528_vm15, %v4284_v42, %v4527_v9  ;;  %v4288_v43 = vrot.slane %v3716_v51, %v6801_v53  ;;  %v4302_v30 = vrot.slane %v3725_v10, %v6825_v48  ;;  %vm4530_vm15 = vcmask 1045509   ;;  %v7256_v10 = vld [vmem:[%s8276_s19] sm:$0xff] }
 0x5ed   : > { %v4293_v56 = vsel %vm3869_vm0, %v4292_v13, %v4288_v43 }
 0x5ee   : > { %v3722_v36 = vpop.permute.xlu1 %3721  ;;  %v3731_v61 = vpop.permute.xlu0 %3730 }
 0x5ef   : > { %v4297_v4 = vrot.slane %v3722_v36, %v6815_v35  ;;  %v4312_v50 = vrot.slane %v3731_v61, %v6848_v24 }
 0x5f1   : > { %v4298_v21 = vsel %vm3876_vm1, %v4297_v4, %v4293_v56  ;;  %v7259_v56 = vmul.f32 0.01, %v7256_v10 }
 0x5f2   : > { %v3728_v49 = vpop.permute.xlu1 %3727  ;;  %v4303_v3 = vsel %vm3883_vm2, %v4302_v30, %v4298_v21  ;;  %v3737_v19 = vpop.permute.xlu0 %3736 }
 0x5f3   : > { %v4307_v9 = vrot.slane %v3728_v49, %v6834_v39  ;;  %v4322_v5 = vrot.slane %v3737_v19, %v6865_v40  ;;  %4813 = vrsqrt.f32 %v7259_v56 }
 0x5f5   : > { %v4308_v20 = vsel %vm3890_vm3, %v4307_v9, %v4303_v3 }
 0x5f6   : > { %v3734_v23 = vpop.permute.xlu1 %3733  ;;  %v4313_v26 = vsel %vm3897_vm4, %v4312_v50, %v4308_v20  ;;  %v3743_v11 = vpop.permute.xlu0 %3742 }
 0x5f7   : > { %v4317_v25 = vrot.slane %v3734_v23, %v6854_v58  ;;  %v4332_v14 = vrot.slane %v3743_v11, %v6888_v46 }
 0x5f9   : > { %v4318_v16 = vsel %vm3904_vm5, %v4317_v25, %v4313_v26  ;;  %v4727_v25 = vand.u32 2147483648, %v7259_v56 }
 0x5fa   : > { %v3740_v6 = vpop.permute.xlu1 %3739  ;;  %v4323_v18 = vsel %vm3911_vm6, %v4322_v5, %v4318_v16  ;;  %v3749_v63 = vpop.permute.xlu0 %3748 }
 0x5fb   : > { %v4327_v60 = vrot.slane %v3740_v6, %v6874_v7  ;;  %v4342_v27 = vrot.slane %v3749_v63, %v6905_v34 }
 0x5fd   : > { %v4328_v55 = vsel %vm3918_vm7, %v4327_v60, %v4323_v18 }
 0x5fe   : > { %v3746_v44 = vpop.permute.xlu1 %3745  ;;  %v4333_v32 = vsel %vm3925_vm8, %v4332_v14, %v4328_v55  ;;  %v3755_v12 = vpop.permute.xlu0 %3754 }
 0x5ff   : > { %v4337_v2 = vrot.slane %v3746_v44, %v6894_v57  ;;  %v4352_v15 = vrot.slane %v3755_v12, %v6928_v8 }
 0x600   : > { %v4814_v19 = vpop.eup %4813 }
 0x601   : > { %v4338_v29 = vsel %vm3932_vm9, %v4337_v2, %v4333_v32  ;;  %v4723_v20 = vmul.f32 %v4814_v19, %v7259_v56 }
 0x602   : > { %v3752_v17 = vpop.permute.xlu1 %3751  ;;  %v4343_v54 = vsel %vm3939_vm10, %v4342_v27, %v4338_v29  ;;  %v3761_v1 = vpop.permute.xlu0 %3760 }
 0x603   : > { %v4347_v33 = vrot.slane %v3752_v17, %v6914_v45  ;;  %v4362_v52 = vrot.slane %v3761_v1, %v6940_v31 }
 0x605   : > { %v4348_v59 = vsel %vm8272_vm11, %v4347_v33, %v4343_v54  ;;  %vm4724_vm11 = vcmp.eq.f32.partialorder %v7259_v56, inf }
 0x606   : > { %v3758_v41 = vpop.permute.xlu1 %3757  ;;  %v4353_v22 = vsel %vm3953_vm12, %v4352_v15, %v4348_v59  ;;  %v3767_v47 = vpop.permute.xlu0 %3766  ;;  %v4725_v11 = vsel %vm4724_vm11, %v7259_v56, %v4723_v20 }
 0x607   : > { %v4357_v62 = vrot.slane %v3758_v41, %v6934_v28  ;;  %v4371_v44 = vrot.slane %v3767_v47, %v6809_v37 }
 0x609   : > { %v4358_v0 = vsel %vm3960_vm13, %v4357_v62, %v4353_v22 }
 0x60a   : > { %v4363_v42 = vsel %vm3967_vm14, %v4362_v52, %v4358_v0  ;;  %v3764_v51 = vpop.permute.xlu1 %3763  ;;  %v3773_v13 = vpop.permute.xlu0 %3772 }
 0x60b   : > { %v7252_v43 = vsel %vm4530_vm15, %v4363_v42, %v4529_v38  ;;  %vm4718_vm15 = vcmp.eq.f32.partialorder %v7259_v56, 0.0  ;;  %v4367_v63 = vrot.slane %v3764_v51, %v6801_v53  ;;  %v4381_v33 = vrot.slane %v3773_v13, %v6825_v48 }
 0x60c   : > { %v4728_v6 = vsel %vm4718_vm15, %v4727_v25, %v4725_v11 }
 0x60d   : > { %4815 = vrsqrt.f32 %v4728_v6  ;;  %v4372_v12 = vsel %vm3869_vm0, %v4371_v44, %v4367_v63 }
 0x60e   : > { %v3770_v36 = vpop.permute.xlu1 %3769  ;;  %v3779_v4 = vpop.permute.xlu0 %3778 }
 0x60f   : > { %v4376_v14 = vrot.slane %v3770_v36, %v6815_v35  ;;  %v4391_v52 = vrot.slane %v3779_v4, %v6848_v24 }
 0x611   : > { %v4377_v27 = vsel %vm3876_vm1, %v4376_v14, %v4372_v12 }
 0x612   : > { %v3776_v61 = vpop.permute.xlu1 %3775  ;;  %v3785_v30 = vpop.permute.xlu0 %3784  ;;  %v4382_v41 = vsel %vm3883_vm2, %v4381_v33, %v4377_v27 }
 0x613   : > { %v4386_v29 = vrot.slane %v3776_v61, %v6834_v39 }
 0x615   : > { %v4387_v22 = vsel %vm3890_vm3, %v4386_v29, %v4382_v41 }
 0x616   : > { %v3782_v21 = vpop.permute.xlu1 %3781  ;;  %v7262_v49 = vpop.permute.xlu0 %3790 }
 0x617   : > { %v4396_v62 = vrot.slane %v3782_v21, %v6854_v58  ;;  %v4411_v11 = vrot.slane %v7262_v49, %v6888_v46 }
 0x61a   : > { %v3788_v3 = vpop.permute.xlu1 %3787  ;;  %v3812_v9 = vpop.permute.xlu0 %3811 }
 0x61b   : > { %v4446_v17 = vrot.slane %v3812_v9, %v6801_v53  ;;  %v4816_v42 = vpop.eup %4815  ;;  %v4406_v61 = vrot.slane %v3788_v3, %v6874_v7  ;;  %v4401_v9 = vrot.slane %v3785_v30, %v6865_v40 }
 0x61e   : > { %v7264_v38 = vpop.permute.xlu1 %3793  ;;  %v3818_v50 = vpop.permute.xlu0 %3817 }
 0x61f   : > { %v4416_v30 = vrot.slane %v7264_v38, %v6894_v57 }
 0x622   : > { %v3815_v23 = vpop.permute.xlu1 %3814  ;;  %v3824_v26 = vpop.permute.xlu0 %3823 }
 0x623   : > { %v4450_v2 = vrot.slane %v3815_v23, %v6809_v37  ;;  %v4455_v37 = vrot.slane %v3818_v50, %v6815_v35  ;;  %v4465_v36 = vrot.slane %v3824_v26, %v6834_v39  ;;  %v4730_v50 = vmul.f32 %v4816_v42, %v7259_v56 }
 0x624   : > { %v4720_v39 = vand.u32 2147483647, %v7259_v56 }
 0x625   : > { %v4451_v15 = vsel %vm3869_vm0, %v4450_v2, %v4446_v17  ;;  %vm4719_vm0 = vcmp.lt.f32.partialorder %v7259_v56, 0.0 }
 0x626   : > { %v3821_v5 = vpop.permute.xlu1 %3820  ;;  %v3830_v16 = vpop.permute.xlu0 %3829  ;;  %v4456_v53 = vsel %vm3876_vm1, %v4455_v37, %v4451_v15  ;;  %vm7317_vm1 = vcmp.eq.f32.partialorder %v4720_v39, inf }
 0x627   : > { %v4460_v59 = vrot.slane %v3821_v5, %v6825_v48  ;;  %v4392_v48 = vsel %vm3897_vm4, %v4391_v52, %v4387_v22  ;;  %v4475_v3 = vrot.slane %v3830_v16, %v6854_v58 }
 0x628   : > { %v4397_v35 = vsel %vm3904_vm5, %v4396_v62, %v4392_v48 }
 0x629   : > { %v4461_v51 = vsel %vm3883_vm2, %v4460_v59, %v4456_v53  ;;  %v4402_v23 = vsel %vm3911_vm6, %v4401_v9, %v4397_v35  ;;  %vm8279_vm2 = vcmask 851712  }
 0x62a   : > { %v3827_v18 = vpop.permute.xlu1 %3826  ;;  %v7273_v60 = vpop.permute.xlu0 %3835  ;;  %v4466_v4 = vsel %vm3890_vm3, %v4465_v36, %v4461_v51  ;;  %v4407_v26 = vsel %vm3918_vm7, %v4406_v61, %v4402_v23  ;;  %vm958_vm3 = vcmp.lt.f32.partialorder %v7256_v10, 100.0 }
 0x62b   : > { %v4470_v13 = vrot.slane %v3827_v18, %v6848_v24  ;;  %v4731_v18 = vsel %vm4719_vm0, nan, %v4730_v50  ;;  %v4412_v38 = vsel %vm3925_vm8, %v4411_v11, %v4407_v26  ;;  %v4485_v49 = vrot.slane %v7273_v60, %v6874_v7 }
 0x62c   : > { %v4732_v27 = vsel %vm4718_vm15, 0.0, %v4731_v18 }
 0x62d   : > { %v4471_v20 = vsel %vm3897_vm4, %v4470_v13, %v4466_v4  ;;  %v4733_v41 = vsel %vm7317_vm1, inf, %v4732_v27  ;;  %vm8280_vm4 = vmmov %vm8279_vm2 }
 0x62e   : > { %v3833_v55 = vpop.permute.xlu1 %3832  ;;  %v3797_v32 = vpop.permute.xlu0 %3796  ;;  %v4476_v5 = vsel %vm3904_vm5, %v4475_v3, %v4471_v20  ;;  %vm4532_vm5 = vcmask 1046534   ;;  %v962_v52 = vsel %vm958_vm3, %v4733_v41, 1.0 }
 0x62f   : > { %v4480_v24 = vrot.slane %v3833_v55, %v6865_v40  ;;  %v4421_v40 = vrot.slane %v3797_v32, %v6905_v34  ;;  %v4417_v32 = vsel %vm3932_vm9, %v4416_v30, %v4412_v38 }
 0x631   : > { %v4481_v63 = vsel %vm3911_vm6, %v4480_v24, %v4476_v5  ;;  %v4422_v29 = vsel %vm3939_vm10, %v4421_v40, %v4417_v32  ;;  %vm4534_vm6 = vcmask 1047559  }
 0x632   : > { %v3839_v54 = vpop.permute.xlu1 %3838  ;;  %v3800_v1 = vpop.permute.xlu0 %3799  ;;  %v4486_v17 = vsel %vm3918_vm7, %v4485_v49, %v4481_v63 }
 0x633   : > { %v4490_v14 = vrot.slane %v3839_v54, %v6888_v46  ;;  %v4426_v58 = vrot.slane %v3800_v1, %v6914_v45 }
 0x635   : > { %v4491_v60 = vsel %vm3925_vm8, %v4490_v14, %v4486_v17  ;;  %v4427_v54 = vsel %vm8279_vm2, %v4426_v58, %v4422_v29 }
 0x636   : > { %v3842_v47 = vpop.permute.xlu1 %3841  ;;  %v3803_v0 = vpop.permute.xlu0 %3802 }
 0x637   : > { %v4495_v55 = vrot.slane %v3842_v47, %v6894_v57  ;;  %v4431_v44 = vrot.slane %v3803_v0, %v6928_v8 }
 0x639   : > { %v4496_v33 = vsel %vm3932_vm9, %v4495_v55, %v4491_v60  ;;  %v4432_v1 = vsel %vm3953_vm12, %v4431_v44, %v4427_v54 }
 0x63a   : > { %v3845_v21 = vpop.permute.xlu1 %3844  ;;  %v3806_v19 = vpop.permute.xlu0 %3805 }
 0x63b   : > { %v4500_v2 = vrot.slane %v3845_v21, %v6905_v34  ;;  %v4436_v46 = vrot.slane %v3806_v19, %v6934_v28 }
 0x63d   : > { %v4501_v15 = vsel %vm3939_vm10, %v4500_v2, %v4496_v33  ;;  %v4437_v59 = vsel %vm3960_vm13, %v4436_v46, %v4432_v1 }
 0x63e   : > { %v3848_v25 = vpop.permute.xlu1 %3847  ;;  %v3809_v6 = vpop.permute.xlu0 %3808 }
 0x63f   : > { %v4505_v7 = vrot.slane %v3848_v25, %v6914_v45  ;;  %v4441_v57 = vrot.slane %v3809_v6, %v6940_v31 }
 0x641   : > { %v4506_v37 = vsel %vm8280_vm4, %v4505_v7, %v4501_v15 }
 0x642   : > { %v3851_v12 = vpop.permute.xlu1 %3850  ;;  %v3857_v56 = vpop.permute.xlu0 %3856 }
 0x643   : > { %v4510_v34 = vrot.slane %v3851_v12, %v6928_v8  ;;  %v4442_v8 = vsel %vm3967_vm14, %v4441_v57, %v4437_v59  ;;  %v4520_v47 = vrot.slane %v3857_v56, %v6940_v31 }
 0x644   : > { %v4533_v0 = vsel %vm4532_vm5, %v4442_v8, %v7252_v43 }
 0x645   : > { %v4511_v62 = vsel %vm3953_vm12, %v4510_v34, %v4506_v37 }
 0x646   : > { %v3854_v45 = vpop.permute.xlu1 %3853 }
 0x647   : > { %v4515_v22 = vrot.slane %v3854_v45, %v6934_v28 }
 0x649   : > { %v4516_v10 = vsel %vm3960_vm13, %v4515_v22, %v4511_v62 }
 0x64a   : > { %v4521_v53 = vsel %vm3967_vm14, %v4520_v47, %v4516_v10 }
 0x64b   : > { %v4535_v42 = vsel %vm4534_vm6, %v4521_v53, %v4533_v0 }
 0x64c   : > { %v4537_v28 = vmul.f32 %v4535_v42, %v962_v52 }
 0x64e   : > { %4538 = vst [vmem:[%s8282_s20] sm:$0xff] %v4537_v28 }
 0x64f   : > { %4975 = shalt.err (!%p4972_p6)
}
 0x650   : > { %s4976_s12 = scalar_lea.hbm %s4551_s26, 128  ;;  %s4980_s24 = scalar_lea.hbm %s7398_s7, 256 }
 0x651   : > { %p4977_p8 = scmp.ne.s32.totalorder %s4551_s26, %s4976_s12  ;;  %p4981_p3 = scmp.lt.s32.totalorder %s4551_s26, %s7398_s7 }
 0x652   : > { %p4982_p9 = scmp.lt.s32.totalorder %s4980_s24, %s4976_s12 }
 0x653   : > { %p4978_p10 = pnand %p4977_p8, %p8283_p12 }
 0x654   : > { %p4983_p0 = por %p4982_p9, %p4981_p3 }
 0x655   : > { %p4979_p1 = pneg %p4978_p10 }
 0x657   : > { %p4984_p11 = pnand %p4983_p0, %p4979_p1 }
 0x659   : > { %4987 = shalt.err (!%p4984_p11)
}
 0x65a   : > { %4740 = dma.vmem_to_hbm [thread:$0]  (%p8283_p12), %s4554_s27, 128, %s4551_s26, %s4540_s14  }
 0x65b PF: > { %s4565_s9 = sand.u32 1, %s5032_s30   ;;  %p8284_p4 = scmp.ne.s32.totalorder %s7417_s17, 0 }
 0x65c   : > { %p8285_p5 = scmp.ge.s32.totalorder %s5044_s0, 2  ;;  %s4566_s11 = scalar_lea.sflag [#allocation10], %s4565_s9 }
 0x65e   : > { %p4753_p7 = pnand %p8285_p5, %p8284_p4 }
 0x660   : > { %p4754_p2 = pneg %p4753_p7 }
 0x662   : > { %5027 = dma.done.wait (%p4754_p2), %s4566_s11, 128  }
 0x663   : > { %5029 = vsyncadd (%p4754_p2), %s4566_s11, 4294967168  ;;  %s8286_s0 = sld [smem:[#allocation28_spill]]  ;;  %s8289_s30 = smov %s5036_s8 }
 0x664   : > { %s8287_s18 = sld [smem:[#allocation27_spill]] }
 0x665   : > { %s8288_s9 = sld [smem:[#allocation29_spill]] }
 0x669   : > { %p29_p13 = scmp.ge.s32.totalorder %s8286_s0, 4  }
 0x66a   : > { %s8290_s8 = smov %s8287_s18 }
 0x66b   :  { %31 = sbr.rel (!%p29_p13) target bundleno = 15 (0xf), region = 152 }
 0x670   :  { %4571 = vsyncpa [#allocation9], 1 }
 0x671   :  { %4573 = vsyncpa [#allocation9 + $0x1], 1 }
 0x672   :  { %4574 = vsyncpa [#allocation12], 1 }
 0x673   :  { %4576 = vsyncpa [#allocation12 + $0x1], 1 }
 0x674   :  { %4577 = vsyncpa [#allocation10], 1 }
 0x675   :  { %4579 = vsyncpa [#allocation10 + $0x1], 1 }
 0x676   :  { %4580 = vsyncmov [#allocation4] }
 0x679   :  { %s4581_s16 = vpop.sfrf %4580 }
 0x67a   :  { %p4716_p12 = scmp.ne.s32.totalorder %s4581_s16, 0 }
 0x67c   :  { %4585 = shalt.err (%p4716_p12)  }
 0x67d   :  { %4587 = vsyncmov [#allocation4 + $0x1] }
 0x680   :  { %s4588_s17 = vpop.sfrf %4587 }
 0x681   :  { %p4717_p6 = scmp.ne.s32.totalorder %s4588_s17, 0 }
 0x683   :  { %4592 = shalt.err (%p4717_p6)  }

</bundles_post_ra>
